<compile_context>
chip_gen: v7x
topology: tpu7x:2x2x1
jax: 0.10.0
libtpu: 0.0.40
codegen_flags: <defaults>
</compile_context>

<pallas_src>
import jax
import jax.numpy as jnp
import numpy as np
from jax.experimental import pallas as pl
from jax.experimental.pallas import tpu as pltpu


# ----------------------------------------------------------------------------
# Fused kernel (one sample per grid step)
# ----------------------------------------------------------------------------
def _lenet_kernel(x_ref, w1t_ref, b1_ref, w2t_ref, b2_ref,
                  m1_ref, bf1_ref, wf2_ref, bf2_ref, wf3_ref, bf3_ref, o_ref):
    f32 = jnp.float32

    def dot(a, b):  # MXU matmul, f32 accumulation; operand dtype = weight dtype
        return jnp.dot(a.astype(b.dtype), b, preferred_element_type=f32)

    xv = x_ref[0]                                   # (4, 8, 96): rows grouped by h%4

    # ---- conv1: 5x5, 3->6, 32x32 -> 28x28, + bias + ReLU + 2x2/2 max pool ----
    # g[a][q, :] holds conv output row ho = 4q + a; columns = (wo%2, wo//2, co).
    g = []
    for a in range(4):
        acc = jnp.zeros((7, 168), f32)
        for kh in range(5):
            grp, off = (a + kh) % 4, (a + kh) // 4
            acc = acc + dot(xv[grp, off:off + 7, :], w1t_ref[kh])
        g.append(jnp.maximum(acc + b1_ref[...], 0.0))
    pe = jnp.maximum(g[0], g[1])                    # H pool: pooled rows hp = 0,2,...,12
    po = jnp.maximum(g[2], g[3])                    # H pool: pooled rows hp = 1,3,...,13
    p1e = jnp.maximum(pe[:, :84], pe[:, 84:])       # W pool -> (7, 84): cols = wp*6 + c
    p1o = jnp.maximum(po[:, :84], po[:, 84:])

    # ---- conv2: 5x5, 6->16, 14x14 -> 10x10, + bias + ReLU + 2x2/2 max pool ----
    acc_e = jnp.zeros((5, 160), f32)                # conv rows ho2 = 0,2,4,6,8
    acc_o = jnp.zeros((5, 160), f32)                # conv rows ho2 = 1,3,5,7,9
    for kh in range(5):
        w2k = w2t_ref[kh]
        m = kh // 2
        if kh % 2 == 0:
            acc_e = acc_e + dot(p1e[m:m + 5, :], w2k)
            acc_o = acc_o + dot(p1o[m:m + 5, :], w2k)
        else:
            acc_e = acc_e + dot(p1o[m:m + 5, :], w2k)
            acc_o = acc_o + dot(p1e[m + 1:m + 6, :], w2k)
    r2e = jnp.maximum(acc_e + b2_ref[...], 0.0)
    r2o = jnp.maximum(acc_o + b2_ref[...], 0.0)
    m2 = jnp.maximum(r2e, r2o)                      # H pool -> (5, 160)
    a2 = jnp.maximum(m2[:, :80], m2[:, 80:])        # W pool -> (5, 80): (h, wp2*16 + c2)

    # ---- fc1 (400->120): torch-order flatten folded into m1's layout ----
    h = jnp.zeros((1, 120), f32)
    for t in range(5):
        h = h + dot(a2[t:t + 1, :], m1_ref[t])
    h = jnp.maximum(h + bf1_ref[...], 0.0)
    # ---- fc2 (120->84) + ReLU, fc3 (84->10) ----
    h = jnp.maximum(dot(h, wf2_ref[...]) + bf2_ref[...], 0.0)
    o_ref[0] = (dot(h, wf3_ref[...]) + bf3_ref[...]).astype(o_ref.dtype)


# ----------------------------------------------------------------------------
# Wrapper-side weight preprocessing (pure XLA, tiny; runs under the same jit)
# ----------------------------------------------------------------------------
def _conv_toeplitz(w_oihw, w_in, out_w):
    """Per-kh block-Toeplitz matrices for a valid 5x5 conv expressed as matmul.

    Maps an input row laid out as (w_in * Cin) to conv outputs laid out as
    (s, wo//2, Cout) with s = wo % 2, so the W max-pool is max(left half,
    right half) of the output columns.
    Returns (K, w_in*Cin, 2*(out_w//2)*Cout)."""
    Cout, Cin, K, _ = w_oihw.shape
    w_k = jnp.transpose(w_oihw, (2, 3, 1, 0))               # (kh, kw, ci, co)
    wo = jnp.arange(out_w)
    wi = jnp.arange(w_in)
    kw = wi[None, :] - wo[:, None]                           # (out_w, w_in)
    valid = (kw >= 0) & (kw < K)
    kw_c = jnp.clip(kw, 0, K - 1)
    t = w_k[:, kw_c, :, :]                                   # (kh, out_w, w_in, ci, co)
    t = t * valid[None, :, :, None, None].astype(w_k.dtype)
    t = t.reshape(K, out_w // 2, 2, w_in, Cin, Cout)         # wo -> (wp, s)
    t = jnp.transpose(t, (0, 3, 4, 2, 1, 5))                 # (kh, w_in, ci, s, wp, co)
    return t.reshape(K, w_in * Cin, 2 * (out_w // 2) * Cout)


def net_forward(x_nchw, p, compute_dtype=jnp.float32):
    """Pallas forward pass. Accepts NCHW like the PyTorch module.

    compute_dtype=jnp.bfloat16 enables bf16 MXU operands (f32 accumulation)
    for v6e/v7x throughput; default f32 keeps the tight correctness check."""
    N = x_nchw.shape[0]
    cdt = compute_dtype

    # Input: NCHW -> NHWC -> (N, 32, W*C) -> split H rows by (h mod 4).
    xm = jnp.transpose(x_nchw, (0, 2, 3, 1)).reshape(N, 32, 96)
    x4 = xm.reshape(N, 8, 4, 96).transpose(0, 2, 1, 3)       # (N, 4, 8, 96)

    # Weights (could be precomputed once per weight update in a real setting).
    w1t = _conv_toeplitz(p["conv1_w"], 32, 28).astype(cdt)   # (5, 96, 168)
    w2t = _conv_toeplitz(p["conv2_w"], 14, 10).astype(cdt)   # (5, 84, 160)
    b1t = jnp.tile(p["conv1_b"], 28).reshape(1, 168)
    b2t = jnp.tile(p["conv2_b"], 10).reshape(1, 160)
    # fc1 with the torch (c2, h, w) flatten folded into the weight layout:
    # m1[t][w*16 + c, k] = fc1_w[k, c*25 + t*5 + w]
    m1 = (p["fc1_w"].reshape(120, 16, 5, 5)
          .transpose(2, 3, 1, 0).reshape(5, 80, 120)).astype(cdt)
    wf2 = p["fc2_w"].T.astype(cdt)                            # (120, 84)
    wf3 = p["fc3_w"].T.astype(cdt)                            # (84, 10)
    bf1 = p["fc1_b"].reshape(1, 120)
    bf2 = p["fc2_b"].reshape(1, 84)
    bf3 = p["fc3_b"].reshape(1, 10)

    def full_spec(a):
        nd = a.ndim
        return pl.BlockSpec(a.shape, lambda n, _nd=nd: (0,) * _nd)

    weights = (w1t, b1t, w2t, b2t, m1, bf1, wf2, bf2, wf3, bf3)
    out = pl.pallas_call(
        _lenet_kernel,
        out_shape=jax.ShapeDtypeStruct((N, 1, 10), jnp.float32),
        grid=(N,),
        in_specs=[pl.BlockSpec((1, 4, 8, 96), lambda n: (n, 0, 0, 0))]
                 + [full_spec(a) for a in weights],
        out_specs=pl.BlockSpec((1, 1, 10), lambda n: (n, 0, 0)),
        compiler_params=pltpu.CompilerParams(
            dimension_semantics=("parallel",)),
    )(x4, *weights)
    return out.reshape(N, 10)


# ----------------------------------------------------------------------------
# Parameters (deterministic, PyTorch layouts: conv OIHW, linear (out, in))
# ----------------------------------------------------------------------------
def init_params(key):
    ks = jax.random.split(key, 10)
    s = 0.1
    return {
        "conv1_w": jax.random.normal(ks[0], (6, 3, 5, 5), jnp.float32) * s,
        "conv1_b": jax.random.normal(ks[1], (6,), jnp.float32) * s,
        "conv2_w": jax.random.normal(ks[2], (16, 6, 5, 5), jnp.float32) * s,
        "conv2_b": jax.random.normal(ks[3], (16,), jnp.float32) * s,
        "fc1_w": jax.random.normal(ks[4], (120, 400), jnp.float32) * s,
        "fc1_b": jax.random.normal(ks[5], (120,), jnp.float32) * s,
        "fc2_w": jax.random.normal(ks[6], (84, 120), jnp.float32) * s,
        "fc2_b": jax.random.normal(ks[7], (84,), jnp.float32) * s,
        "fc3_w": jax.random.normal(ks[8], (10, 84), jnp.float32) * s,
        "fc3_b": jax.random.normal(ks[9], (10,), jnp.float32) * s,
    }


# ----------------------------------------------------------------------------
# Pure-JAX reference (mirrors PyTorch semantics) for the correctness check
# ----------------------------------------------------------------------------
def _maxpool2_nchw(y):
    N, C, H, W = y.shape
    return y.reshape(N, C, H // 2, 2, W // 2, 2).max(axis=(3, 5))


def reference_forward(x, p):
    hi = jax.lax.Precision.HIGHEST
    y = jax.lax.conv_general_dilated(
        x, p["conv1_w"], (1, 1), "VALID",
        dimension_numbers=("NCHW", "OIHW", "NCHW"), precision=hi)
    y = _maxpool2_nchw(jnp.maximum(y + p["conv1_b"][None, :, None, None], 0.0))
    y = jax.lax.conv_general_dilated(
        y, p["conv2_w"], (1, 1), "VALID",
        dimension_numbers=("NCHW", "OIHW", "NCHW"), precision=hi)
    y = _maxpool2_nchw(jnp.maximum(y + p["conv2_b"][None, :, None, None], 0.0))
    flat = y.reshape(y.shape[0], 16 * 5 * 5)
    h = jnp.maximum(jnp.dot(flat, p["fc1_w"].T, precision=hi) + p["fc1_b"], 0.0)
    h = jnp.maximum(jnp.dot(h, p["fc2_w"].T, precision=hi) + p["fc2_b"], 0.0)
    return jnp.dot(h, p["fc3_w"].T, precision=hi) + p["fc3_b"]


if __name__ == "__main__":
    key = jax.random.PRNGKey(0)
    pkey, xkey = jax.random.split(key)
    params = init_params(pkey)
    # Small batch; spatial size 32 is forced by the module's view(-1, 16*5*5).
    x = jax.random.normal(xkey, (2, 3, 32, 32), jnp.float32)   # NCHW like PyTorch

    fwd = jax.jit(net_forward)
    out = jax.block_until_ready(fwd(x, params))
    assert out.shape == (2, 10)

    ref = reference_forward(x, params)
    np.testing.assert_allclose(np.asarray(out), np.asarray(ref),
                               rtol=2e-2, atol=2e-2)
    print("KERNEL_OK")
</pallas_src>

<mosaic_0001>
module attributes {stable_mosaic.version = 11 : i64} {
  func.func @_lenet_kernel(%arg0: i32, %arg1: memref<1x4x8x96xf32, #tpu.memory_space<vmem>>, %arg2: memref<5x96x168xf32, #tpu.memory_space<vmem>>, %arg3: memref<1x168xf32, #tpu.memory_space<vmem>>, %arg4: memref<5x84x160xf32, #tpu.memory_space<vmem>>, %arg5: memref<1x160xf32, #tpu.memory_space<vmem>>, %arg6: memref<5x80x120xf32, #tpu.memory_space<vmem>>, %arg7: memref<1x120xf32, #tpu.memory_space<vmem>>, %arg8: memref<120x84xf32, #tpu.memory_space<vmem>>, %arg9: memref<1x84xf32, #tpu.memory_space<vmem>>, %arg10: memref<84x10xf32, #tpu.memory_space<vmem>>, %arg11: memref<1x10xf32, #tpu.memory_space<vmem>>, %arg12: memref<1x1x10xf32, #tpu.memory_space<vmem>>) attributes {dimension_semantics = [#tpu.dimension_semantics<parallel>], iteration_bounds = array<i64: 2>, scalar_prefetch = 0 : i64, scratch_operands = 0 : i64, tpu.core_type = #tpu.core_type<tc>, window_params = [{transform_indices = @transform_0, window_bounds = array<i64: 1, 4, 8, 96>}, {pipeline_mode = #tpu.pipeline_mode<synchronous>, transform_indices = @transform_1, window_bounds = array<i64: 5, 96, 168>}, {pipeline_mode = #tpu.pipeline_mode<synchronous>, transform_indices = @transform_2, window_bounds = array<i64: 1, 168>}, {pipeline_mode = #tpu.pipeline_mode<synchronous>, transform_indices = @transform_3, window_bounds = array<i64: 5, 84, 160>}, {pipeline_mode = #tpu.pipeline_mode<synchronous>, transform_indices = @transform_4, window_bounds = array<i64: 1, 160>}, {pipeline_mode = #tpu.pipeline_mode<synchronous>, transform_indices = @transform_5, window_bounds = array<i64: 5, 80, 120>}, {pipeline_mode = #tpu.pipeline_mode<synchronous>, transform_indices = @transform_6, window_bounds = array<i64: 1, 120>}, {pipeline_mode = #tpu.pipeline_mode<synchronous>, transform_indices = @transform_7, window_bounds = array<i64: 120, 84>}, {pipeline_mode = #tpu.pipeline_mode<synchronous>, transform_indices = @transform_8, window_bounds = array<i64: 1, 84>}, {pipeline_mode = #tpu.pipeline_mode<synchronous>, transform_indices = @transform_9, window_bounds = array<i64: 84, 10>}, {pipeline_mode = #tpu.pipeline_mode<synchronous>, transform_indices = @transform_10, window_bounds = array<i64: 1, 10>}, {transform_indices = @transform_11, window_bounds = array<i64: 1, 1, 10>}]} {
    %c0 = arith.constant 0 : index
    %c0_0 = arith.constant 0 : index
    %c0_1 = arith.constant 0 : index
    %c0_2 = arith.constant 0 : index
    %0 = vector.load %arg1[%c0, %c0_0, %c0_1, %c0_2] : memref<1x4x8x96xf32, #tpu.memory_space<vmem>>, vector<1x4x8x96xf32>
    %1 = vector.shape_cast %0 : vector<1x4x8x96xf32> to vector<4x8x96xf32>
    %cst = arith.constant 0.000000e+00 : f32
    %2 = vector.broadcast %cst : f32 to vector<7x168xf32>
    %3 = vector.extract_strided_slice %1 {offsets = [0, 0, 0], sizes = [1, 7, 96], strides = [1, 1, 1]} : vector<4x8x96xf32> to vector<1x7x96xf32>
    %4 = vector.shape_cast %3 : vector<1x7x96xf32> to vector<7x96xf32>
    %c0_3 = arith.constant 0 : index
    %c0_4 = arith.constant 0 : index
    %c0_5 = arith.constant 0 : index
    %5 = vector.load %arg2[%c0_3, %c0_4, %c0_5] : memref<5x96x168xf32, #tpu.memory_space<vmem>>, vector<1x96x168xf32>
    %6 = vector.shape_cast %5 : vector<1x96x168xf32> to vector<96x168xf32>
    %cst_6 = arith.constant dense<0.000000e+00> : vector<7x168xf32>
    %7 = tpu.matmul %4, %6, %cst_6 {dimension_numbers = #tpu.dot_dimension_numbers<[1], [0], [0], [1], [0, 0, 1, 1], [], []>} : vector<7x96xf32>, vector<96x168xf32>, vector<7x168xf32> -> vector<7x168xf32>
    %8 = arith.addf %2, %7 : vector<7x168xf32>
    %9 = vector.extract_strided_slice %1 {offsets = [1, 0, 0], sizes = [1, 7, 96], strides = [1, 1, 1]} : vector<4x8x96xf32> to vector<1x7x96xf32>
    %10 = vector.shape_cast %9 : vector<1x7x96xf32> to vector<7x96xf32>
    %c1 = arith.constant 1 : index
    %c0_7 = arith.constant 0 : index
    %c0_8 = arith.constant 0 : index
    %11 = vector.load %arg2[%c1, %c0_7, %c0_8] : memref<5x96x168xf32, #tpu.memory_space<vmem>>, vector<1x96x168xf32>
    %12 = vector.shape_cast %11 : vector<1x96x168xf32> to vector<96x168xf32>
    %cst_9 = arith.constant dense<0.000000e+00> : vector<7x168xf32>
    %13 = tpu.matmul %10, %12, %cst_9 {dimension_numbers = #tpu.dot_dimension_numbers<[1], [0], [0], [1], [0, 0, 1, 1], [], []>} : vector<7x96xf32>, vector<96x168xf32>, vector<7x168xf32> -> vector<7x168xf32>
    %14 = arith.addf %8, %13 : vector<7x168xf32>
    %15 = vector.extract_strided_slice %1 {offsets = [2, 0, 0], sizes = [1, 7, 96], strides = [1, 1, 1]} : vector<4x8x96xf32> to vector<1x7x96xf32>
    %16 = vector.shape_cast %15 : vector<1x7x96xf32> to vector<7x96xf32>
    %c2 = arith.constant 2 : index
    %c0_10 = arith.constant 0 : index
    %c0_11 = arith.constant 0 : index
    %17 = vector.load %arg2[%c2, %c0_10, %c0_11] : memref<5x96x168xf32, #tpu.memory_space<vmem>>, vector<1x96x168xf32>
    %18 = vector.shape_cast %17 : vector<1x96x168xf32> to vector<96x168xf32>
    %cst_12 = arith.constant dense<0.000000e+00> : vector<7x168xf32>
    %19 = tpu.matmul %16, %18, %cst_12 {dimension_numbers = #tpu.dot_dimension_numbers<[1], [0], [0], [1], [0, 0, 1, 1], [], []>} : vector<7x96xf32>, vector<96x168xf32>, vector<7x168xf32> -> vector<7x168xf32>
    %20 = arith.addf %14, %19 : vector<7x168xf32>
    %21 = vector.extract_strided_slice %1 {offsets = [3, 0, 0], sizes = [1, 7, 96], strides = [1, 1, 1]} : vector<4x8x96xf32> to vector<1x7x96xf32>
    %22 = vector.shape_cast %21 : vector<1x7x96xf32> to vector<7x96xf32>
    %c3 = arith.constant 3 : index
    %c0_13 = arith.constant 0 : index
    %c0_14 = arith.constant 0 : index
    %23 = vector.load %arg2[%c3, %c0_13, %c0_14] : memref<5x96x168xf32, #tpu.memory_space<vmem>>, vector<1x96x168xf32>
    %24 = vector.shape_cast %23 : vector<1x96x168xf32> to vector<96x168xf32>
    %cst_15 = arith.constant dense<0.000000e+00> : vector<7x168xf32>
    %25 = tpu.matmul %22, %24, %cst_15 {dimension_numbers = #tpu.dot_dimension_numbers<[1], [0], [0], [1], [0, 0, 1, 1], [], []>} : vector<7x96xf32>, vector<96x168xf32>, vector<7x168xf32> -> vector<7x168xf32>
    %26 = arith.addf %20, %25 : vector<7x168xf32>
    %27 = vector.extract_strided_slice %1 {offsets = [0, 1, 0], sizes = [1, 7, 96], strides = [1, 1, 1]} : vector<4x8x96xf32> to vector<1x7x96xf32>
    %28 = vector.shape_cast %27 : vector<1x7x96xf32> to vector<7x96xf32>
    %c4 = arith.constant 4 : index
    %c0_16 = arith.constant 0 : index
    %c0_17 = arith.constant 0 : index
    %29 = vector.load %arg2[%c4, %c0_16, %c0_17] : memref<5x96x168xf32, #tpu.memory_space<vmem>>, vector<1x96x168xf32>
    %30 = vector.shape_cast %29 : vector<1x96x168xf32> to vector<96x168xf32>
    %cst_18 = arith.constant dense<0.000000e+00> : vector<7x168xf32>
    %31 = tpu.matmul %28, %30, %cst_18 {dimension_numbers = #tpu.dot_dimension_numbers<[1], [0], [0], [1], [0, 0, 1, 1], [], []>} : vector<7x96xf32>, vector<96x168xf32>, vector<7x168xf32> -> vector<7x168xf32>
    %32 = arith.addf %26, %31 : vector<7x168xf32>
    %c0_19 = arith.constant 0 : index
    %c0_20 = arith.constant 0 : index
    %33 = vector.load %arg3[%c0_19, %c0_20] : memref<1x168xf32, #tpu.memory_space<vmem>>, vector<1x168xf32>
    %34 = vector.broadcast %33 : vector<1x168xf32> to vector<7x168xf32>
    %35 = arith.addf %32, %34 : vector<7x168xf32>
    %cst_21 = arith.constant 0.000000e+00 : f32
    %36 = vector.broadcast %cst_21 : f32 to vector<7x168xf32>
    %37 = arith.maximumf %35, %36 : vector<7x168xf32>
    %cst_22 = arith.constant 0.000000e+00 : f32
    %38 = vector.broadcast %cst_22 : f32 to vector<7x168xf32>
    %39 = vector.extract_strided_slice %1 {offsets = [1, 0, 0], sizes = [1, 7, 96], strides = [1, 1, 1]} : vector<4x8x96xf32> to vector<1x7x96xf32>
    %40 = vector.shape_cast %39 : vector<1x7x96xf32> to vector<7x96xf32>
    %c0_23 = arith.constant 0 : index
    %c0_24 = arith.constant 0 : index
    %c0_25 = arith.constant 0 : index
    %41 = vector.load %arg2[%c0_23, %c0_24, %c0_25] : memref<5x96x168xf32, #tpu.memory_space<vmem>>, vector<1x96x168xf32>
    %42 = vector.shape_cast %41 : vector<1x96x168xf32> to vector<96x168xf32>
    %cst_26 = arith.constant dense<0.000000e+00> : vector<7x168xf32>
    %43 = tpu.matmul %40, %42, %cst_26 {dimension_numbers = #tpu.dot_dimension_numbers<[1], [0], [0], [1], [0, 0, 1, 1], [], []>} : vector<7x96xf32>, vector<96x168xf32>, vector<7x168xf32> -> vector<7x168xf32>
    %44 = arith.addf %38, %43 : vector<7x168xf32>
    %45 = vector.extract_strided_slice %1 {offsets = [2, 0, 0], sizes = [1, 7, 96], strides = [1, 1, 1]} : vector<4x8x96xf32> to vector<1x7x96xf32>
    %46 = vector.shape_cast %45 : vector<1x7x96xf32> to vector<7x96xf32>
    %c1_27 = arith.constant 1 : index
    %c0_28 = arith.constant 0 : index
    %c0_29 = arith.constant 0 : index
    %47 = vector.load %arg2[%c1_27, %c0_28, %c0_29] : memref<5x96x168xf32, #tpu.memory_space<vmem>>, vector<1x96x168xf32>
    %48 = vector.shape_cast %47 : vector<1x96x168xf32> to vector<96x168xf32>
    %cst_30 = arith.constant dense<0.000000e+00> : vector<7x168xf32>
    %49 = tpu.matmul %46, %48, %cst_30 {dimension_numbers = #tpu.dot_dimension_numbers<[1], [0], [0], [1], [0, 0, 1, 1], [], []>} : vector<7x96xf32>, vector<96x168xf32>, vector<7x168xf32> -> vector<7x168xf32>
    %50 = arith.addf %44, %49 : vector<7x168xf32>
    %51 = vector.extract_strided_slice %1 {offsets = [3, 0, 0], sizes = [1, 7, 96], strides = [1, 1, 1]} : vector<4x8x96xf32> to vector<1x7x96xf32>
    %52 = vector.shape_cast %51 : vector<1x7x96xf32> to vector<7x96xf32>
    %c2_31 = arith.constant 2 : index
    %c0_32 = arith.constant 0 : index
    %c0_33 = arith.constant 0 : index
    %53 = vector.load %arg2[%c2_31, %c0_32, %c0_33] : memref<5x96x168xf32, #tpu.memory_space<vmem>>, vector<1x96x168xf32>
    %54 = vector.shape_cast %53 : vector<1x96x168xf32> to vector<96x168xf32>
    %cst_34 = arith.constant dense<0.000000e+00> : vector<7x168xf32>
    %55 = tpu.matmul %52, %54, %cst_34 {dimension_numbers = #tpu.dot_dimension_numbers<[1], [0], [0], [1], [0, 0, 1, 1], [], []>} : vector<7x96xf32>, vector<96x168xf32>, vector<7x168xf32> -> vector<7x168xf32>
    %56 = arith.addf %50, %55 : vector<7x168xf32>
    %57 = vector.extract_strided_slice %1 {offsets = [0, 1, 0], sizes = [1, 7, 96], strides = [1, 1, 1]} : vector<4x8x96xf32> to vector<1x7x96xf32>
    %58 = vector.shape_cast %57 : vector<1x7x96xf32> to vector<7x96xf32>
    %c3_35 = arith.constant 3 : index
    %c0_36 = arith.constant 0 : index
    %c0_37 = arith.constant 0 : index
    %59 = vector.load %arg2[%c3_35, %c0_36, %c0_37] : memref<5x96x168xf32, #tpu.memory_space<vmem>>, vector<1x96x168xf32>
    %60 = vector.shape_cast %59 : vector<1x96x168xf32> to vector<96x168xf32>
    %cst_38 = arith.constant dense<0.000000e+00> : vector<7x168xf32>
    %61 = tpu.matmul %58, %60, %cst_38 {dimension_numbers = #tpu.dot_dimension_numbers<[1], [0], [0], [1], [0, 0, 1, 1], [], []>} : vector<7x96xf32>, vector<96x168xf32>, vector<7x168xf32> -> vector<7x168xf32>
    %62 = arith.addf %56, %61 : vector<7x168xf32>
    %63 = vector.extract_strided_slice %1 {offsets = [1, 1, 0], sizes = [1, 7, 96], strides = [1, 1, 1]} : vector<4x8x96xf32> to vector<1x7x96xf32>
    %64 = vector.shape_cast %63 : vector<1x7x96xf32> to vector<7x96xf32>
    %c4_39 = arith.constant 4 : index
    %c0_40 = arith.constant 0 : index
    %c0_41 = arith.constant 0 : index
    %65 = vector.load %arg2[%c4_39, %c0_40, %c0_41] : memref<5x96x168xf32, #tpu.memory_space<vmem>>, vector<1x96x168xf32>
    %66 = vector.shape_cast %65 : vector<1x96x168xf32> to vector<96x168xf32>
    %cst_42 = arith.constant dense<0.000000e+00> : vector<7x168xf32>
    %67 = tpu.matmul %64, %66, %cst_42 {dimension_numbers = #tpu.dot_dimension_numbers<[1], [0], [0], [1], [0, 0, 1, 1], [], []>} : vector<7x96xf32>, vector<96x168xf32>, vector<7x168xf32> -> vector<7x168xf32>
    %68 = arith.addf %62, %67 : vector<7x168xf32>
    %c0_43 = arith.constant 0 : index
    %c0_44 = arith.constant 0 : index
    %69 = vector.load %arg3[%c0_43, %c0_44] : memref<1x168xf32, #tpu.memory_space<vmem>>, vector<1x168xf32>
    %70 = vector.broadcast %69 : vector<1x168xf32> to vector<7x168xf32>
    %71 = arith.addf %68, %70 : vector<7x168xf32>
    %cst_45 = arith.constant 0.000000e+00 : f32
    %72 = vector.broadcast %cst_45 : f32 to vector<7x168xf32>
    %73 = arith.maximumf %71, %72 : vector<7x168xf32>
    %cst_46 = arith.constant 0.000000e+00 : f32
    %74 = vector.broadcast %cst_46 : f32 to vector<7x168xf32>
    %75 = vector.extract_strided_slice %1 {offsets = [2, 0, 0], sizes = [1, 7, 96], strides = [1, 1, 1]} : vector<4x8x96xf32> to vector<1x7x96xf32>
    %76 = vector.shape_cast %75 : vector<1x7x96xf32> to vector<7x96xf32>
    %c0_47 = arith.constant 0 : index
    %c0_48 = arith.constant 0 : index
    %c0_49 = arith.constant 0 : index
    %77 = vector.load %arg2[%c0_47, %c0_48, %c0_49] : memref<5x96x168xf32, #tpu.memory_space<vmem>>, vector<1x96x168xf32>
    %78 = vector.shape_cast %77 : vector<1x96x168xf32> to vector<96x168xf32>
    %cst_50 = arith.constant dense<0.000000e+00> : vector<7x168xf32>
    %79 = tpu.matmul %76, %78, %cst_50 {dimension_numbers = #tpu.dot_dimension_numbers<[1], [0], [0], [1], [0, 0, 1, 1], [], []>} : vector<7x96xf32>, vector<96x168xf32>, vector<7x168xf32> -> vector<7x168xf32>
    %80 = arith.addf %74, %79 : vector<7x168xf32>
    %81 = vector.extract_strided_slice %1 {offsets = [3, 0, 0], sizes = [1, 7, 96], strides = [1, 1, 1]} : vector<4x8x96xf32> to vector<1x7x96xf32>
    %82 = vector.shape_cast %81 : vector<1x7x96xf32> to vector<7x96xf32>
    %c1_51 = arith.constant 1 : index
    %c0_52 = arith.constant 0 : index
    %c0_53 = arith.constant 0 : index
    %83 = vector.load %arg2[%c1_51, %c0_52, %c0_53] : memref<5x96x168xf32, #tpu.memory_space<vmem>>, vector<1x96x168xf32>
    %84 = vector.shape_cast %83 : vector<1x96x168xf32> to vector<96x168xf32>
    %cst_54 = arith.constant dense<0.000000e+00> : vector<7x168xf32>
    %85 = tpu.matmul %82, %84, %cst_54 {dimension_numbers = #tpu.dot_dimension_numbers<[1], [0], [0], [1], [0, 0, 1, 1], [], []>} : vector<7x96xf32>, vector<96x168xf32>, vector<7x168xf32> -> vector<7x168xf32>
    %86 = arith.addf %80, %85 : vector<7x168xf32>
    %87 = vector.extract_strided_slice %1 {offsets = [0, 1, 0], sizes = [1, 7, 96], strides = [1, 1, 1]} : vector<4x8x96xf32> to vector<1x7x96xf32>
    %88 = vector.shape_cast %87 : vector<1x7x96xf32> to vector<7x96xf32>
    %c2_55 = arith.constant 2 : index
    %c0_56 = arith.constant 0 : index
    %c0_57 = arith.constant 0 : index
    %89 = vector.load %arg2[%c2_55, %c0_56, %c0_57] : memref<5x96x168xf32, #tpu.memory_space<vmem>>, vector<1x96x168xf32>
    %90 = vector.shape_cast %89 : vector<1x96x168xf32> to vector<96x168xf32>
    %cst_58 = arith.constant dense<0.000000e+00> : vector<7x168xf32>
    %91 = tpu.matmul %88, %90, %cst_58 {dimension_numbers = #tpu.dot_dimension_numbers<[1], [0], [0], [1], [0, 0, 1, 1], [], []>} : vector<7x96xf32>, vector<96x168xf32>, vector<7x168xf32> -> vector<7x168xf32>
    %92 = arith.addf %86, %91 : vector<7x168xf32>
    %93 = vector.extract_strided_slice %1 {offsets = [1, 1, 0], sizes = [1, 7, 96], strides = [1, 1, 1]} : vector<4x8x96xf32> to vector<1x7x96xf32>
    %94 = vector.shape_cast %93 : vector<1x7x96xf32> to vector<7x96xf32>
    %c3_59 = arith.constant 3 : index
    %c0_60 = arith.constant 0 : index
    %c0_61 = arith.constant 0 : index
    %95 = vector.load %arg2[%c3_59, %c0_60, %c0_61] : memref<5x96x168xf32, #tpu.memory_space<vmem>>, vector<1x96x168xf32>
    %96 = vector.shape_cast %95 : vector<1x96x168xf32> to vector<96x168xf32>
    %cst_62 = arith.constant dense<0.000000e+00> : vector<7x168xf32>
    %97 = tpu.matmul %94, %96, %cst_62 {dimension_numbers = #tpu.dot_dimension_numbers<[1], [0], [0], [1], [0, 0, 1, 1], [], []>} : vector<7x96xf32>, vector<96x168xf32>, vector<7x168xf32> -> vector<7x168xf32>
    %98 = arith.addf %92, %97 : vector<7x168xf32>
    %99 = vector.extract_strided_slice %1 {offsets = [2, 1, 0], sizes = [1, 7, 96], strides = [1, 1, 1]} : vector<4x8x96xf32> to vector<1x7x96xf32>
    %100 = vector.shape_cast %99 : vector<1x7x96xf32> to vector<7x96xf32>
    %c4_63 = arith.constant 4 : index
    %c0_64 = arith.constant 0 : index
    %c0_65 = arith.constant 0 : index
    %101 = vector.load %arg2[%c4_63, %c0_64, %c0_65] : memref<5x96x168xf32, #tpu.memory_space<vmem>>, vector<1x96x168xf32>
    %102 = vector.shape_cast %101 : vector<1x96x168xf32> to vector<96x168xf32>
    %cst_66 = arith.constant dense<0.000000e+00> : vector<7x168xf32>
    %103 = tpu.matmul %100, %102, %cst_66 {dimension_numbers = #tpu.dot_dimension_numbers<[1], [0], [0], [1], [0, 0, 1, 1], [], []>} : vector<7x96xf32>, vector<96x168xf32>, vector<7x168xf32> -> vector<7x168xf32>
    %104 = arith.addf %98, %103 : vector<7x168xf32>
    %c0_67 = arith.constant 0 : index
    %c0_68 = arith.constant 0 : index
    %105 = vector.load %arg3[%c0_67, %c0_68] : memref<1x168xf32, #tpu.memory_space<vmem>>, vector<1x168xf32>
    %106 = vector.broadcast %105 : vector<1x168xf32> to vector<7x168xf32>
    %107 = arith.addf %104, %106 : vector<7x168xf32>
    %cst_69 = arith.constant 0.000000e+00 : f32
    %108 = vector.broadcast %cst_69 : f32 to vector<7x168xf32>
    %109 = arith.maximumf %107, %108 : vector<7x168xf32>
    %cst_70 = arith.constant 0.000000e+00 : f32
    %110 = vector.broadcast %cst_70 : f32 to vector<7x168xf32>
    %111 = vector.extract_strided_slice %1 {offsets = [3, 0, 0], sizes = [1, 7, 96], strides = [1, 1, 1]} : vector<4x8x96xf32> to vector<1x7x96xf32>
    %112 = vector.shape_cast %111 : vector<1x7x96xf32> to vector<7x96xf32>
    %c0_71 = arith.constant 0 : index
    %c0_72 = arith.constant 0 : index
    %c0_73 = arith.constant 0 : index
    %113 = vector.load %arg2[%c0_71, %c0_72, %c0_73] : memref<5x96x168xf32, #tpu.memory_space<vmem>>, vector<1x96x168xf32>
    %114 = vector.shape_cast %113 : vector<1x96x168xf32> to vector<96x168xf32>
    %cst_74 = arith.constant dense<0.000000e+00> : vector<7x168xf32>
    %115 = tpu.matmul %112, %114, %cst_74 {dimension_numbers = #tpu.dot_dimension_numbers<[1], [0], [0], [1], [0, 0, 1, 1], [], []>} : vector<7x96xf32>, vector<96x168xf32>, vector<7x168xf32> -> vector<7x168xf32>
    %116 = arith.addf %110, %115 : vector<7x168xf32>
    %117 = vector.extract_strided_slice %1 {offsets = [0, 1, 0], sizes = [1, 7, 96], strides = [1, 1, 1]} : vector<4x8x96xf32> to vector<1x7x96xf32>
    %118 = vector.shape_cast %117 : vector<1x7x96xf32> to vector<7x96xf32>
    %c1_75 = arith.constant 1 : index
    %c0_76 = arith.constant 0 : index
    %c0_77 = arith.constant 0 : index
    %119 = vector.load %arg2[%c1_75, %c0_76, %c0_77] : memref<5x96x168xf32, #tpu.memory_space<vmem>>, vector<1x96x168xf32>
    %120 = vector.shape_cast %119 : vector<1x96x168xf32> to vector<96x168xf32>
    %cst_78 = arith.constant dense<0.000000e+00> : vector<7x168xf32>
    %121 = tpu.matmul %118, %120, %cst_78 {dimension_numbers = #tpu.dot_dimension_numbers<[1], [0], [0], [1], [0, 0, 1, 1], [], []>} : vector<7x96xf32>, vector<96x168xf32>, vector<7x168xf32> -> vector<7x168xf32>
    %122 = arith.addf %116, %121 : vector<7x168xf32>
    %123 = vector.extract_strided_slice %1 {offsets = [1, 1, 0], sizes = [1, 7, 96], strides = [1, 1, 1]} : vector<4x8x96xf32> to vector<1x7x96xf32>
    %124 = vector.shape_cast %123 : vector<1x7x96xf32> to vector<7x96xf32>
    %c2_79 = arith.constant 2 : index
    %c0_80 = arith.constant 0 : index
    %c0_81 = arith.constant 0 : index
    %125 = vector.load %arg2[%c2_79, %c0_80, %c0_81] : memref<5x96x168xf32, #tpu.memory_space<vmem>>, vector<1x96x168xf32>
    %126 = vector.shape_cast %125 : vector<1x96x168xf32> to vector<96x168xf32>
    %cst_82 = arith.constant dense<0.000000e+00> : vector<7x168xf32>
    %127 = tpu.matmul %124, %126, %cst_82 {dimension_numbers = #tpu.dot_dimension_numbers<[1], [0], [0], [1], [0, 0, 1, 1], [], []>} : vector<7x96xf32>, vector<96x168xf32>, vector<7x168xf32> -> vector<7x168xf32>
    %128 = arith.addf %122, %127 : vector<7x168xf32>
    %129 = vector.extract_strided_slice %1 {offsets = [2, 1, 0], sizes = [1, 7, 96], strides = [1, 1, 1]} : vector<4x8x96xf32> to vector<1x7x96xf32>
    %130 = vector.shape_cast %129 : vector<1x7x96xf32> to vector<7x96xf32>
    %c3_83 = arith.constant 3 : index
    %c0_84 = arith.constant 0 : index
    %c0_85 = arith.constant 0 : index
    %131 = vector.load %arg2[%c3_83, %c0_84, %c0_85] : memref<5x96x168xf32, #tpu.memory_space<vmem>>, vector<1x96x168xf32>
    %132 = vector.shape_cast %131 : vector<1x96x168xf32> to vector<96x168xf32>
    %cst_86 = arith.constant dense<0.000000e+00> : vector<7x168xf32>
    %133 = tpu.matmul %130, %132, %cst_86 {dimension_numbers = #tpu.dot_dimension_numbers<[1], [0], [0], [1], [0, 0, 1, 1], [], []>} : vector<7x96xf32>, vector<96x168xf32>, vector<7x168xf32> -> vector<7x168xf32>
    %134 = arith.addf %128, %133 : vector<7x168xf32>
    %135 = vector.extract_strided_slice %1 {offsets = [3, 1, 0], sizes = [1, 7, 96], strides = [1, 1, 1]} : vector<4x8x96xf32> to vector<1x7x96xf32>
    %136 = vector.shape_cast %135 : vector<1x7x96xf32> to vector<7x96xf32>
    %c4_87 = arith.constant 4 : index
    %c0_88 = arith.constant 0 : index
    %c0_89 = arith.constant 0 : index
    %137 = vector.load %arg2[%c4_87, %c0_88, %c0_89] : memref<5x96x168xf32, #tpu.memory_space<vmem>>, vector<1x96x168xf32>
    %138 = vector.shape_cast %137 : vector<1x96x168xf32> to vector<96x168xf32>
    %cst_90 = arith.constant dense<0.000000e+00> : vector<7x168xf32>
    %139 = tpu.matmul %136, %138, %cst_90 {dimension_numbers = #tpu.dot_dimension_numbers<[1], [0], [0], [1], [0, 0, 1, 1], [], []>} : vector<7x96xf32>, vector<96x168xf32>, vector<7x168xf32> -> vector<7x168xf32>
    %140 = arith.addf %134, %139 : vector<7x168xf32>
    %c0_91 = arith.constant 0 : index
    %c0_92 = arith.constant 0 : index
    %141 = vector.load %arg3[%c0_91, %c0_92] : memref<1x168xf32, #tpu.memory_space<vmem>>, vector<1x168xf32>
    %142 = vector.broadcast %141 : vector<1x168xf32> to vector<7x168xf32>
    %143 = arith.addf %140, %142 : vector<7x168xf32>
    %cst_93 = arith.constant 0.000000e+00 : f32
    %144 = vector.broadcast %cst_93 : f32 to vector<7x168xf32>
    %145 = arith.maximumf %143, %144 : vector<7x168xf32>
    %146 = arith.maximumf %37, %73 : vector<7x168xf32>
    %147 = arith.maximumf %109, %145 : vector<7x168xf32>
    %148 = vector.extract_strided_slice %146 {offsets = [0, 0], sizes = [7, 84], strides = [1, 1]} : vector<7x168xf32> to vector<7x84xf32>
    %149 = vector.extract_strided_slice %146 {offsets = [0, 84], sizes = [7, 84], strides = [1, 1]} : vector<7x168xf32> to vector<7x84xf32>
    %150 = arith.maximumf %148, %149 : vector<7x84xf32>
    %151 = vector.extract_strided_slice %147 {offsets = [0, 0], sizes = [7, 84], strides = [1, 1]} : vector<7x168xf32> to vector<7x84xf32>
    %152 = vector.extract_strided_slice %147 {offsets = [0, 84], sizes = [7, 84], strides = [1, 1]} : vector<7x168xf32> to vector<7x84xf32>
    %153 = arith.maximumf %151, %152 : vector<7x84xf32>
    %cst_94 = arith.constant 0.000000e+00 : f32
    %154 = vector.broadcast %cst_94 : f32 to vector<5x160xf32>
    %cst_95 = arith.constant 0.000000e+00 : f32
    %155 = vector.broadcast %cst_95 : f32 to vector<5x160xf32>
    %c0_96 = arith.constant 0 : index
    %c0_97 = arith.constant 0 : index
    %c0_98 = arith.constant 0 : index
    %156 = vector.load %arg4[%c0_96, %c0_97, %c0_98] : memref<5x84x160xf32, #tpu.memory_space<vmem>>, vector<1x84x160xf32>
    %157 = vector.shape_cast %156 : vector<1x84x160xf32> to vector<84x160xf32>
    %158 = vector.extract_strided_slice %150 {offsets = [0, 0], sizes = [5, 84], strides = [1, 1]} : vector<7x84xf32> to vector<5x84xf32>
    %cst_99 = arith.constant dense<0.000000e+00> : vector<5x160xf32>
    %159 = tpu.matmul %158, %157, %cst_99 {dimension_numbers = #tpu.dot_dimension_numbers<[1], [0], [0], [1], [0, 0, 1, 1], [], []>} : vector<5x84xf32>, vector<84x160xf32>, vector<5x160xf32> -> vector<5x160xf32>
    %160 = arith.addf %154, %159 : vector<5x160xf32>
    %161 = vector.extract_strided_slice %153 {offsets = [0, 0], sizes = [5, 84], strides = [1, 1]} : vector<7x84xf32> to vector<5x84xf32>
    %cst_100 = arith.constant dense<0.000000e+00> : vector<5x160xf32>
    %162 = tpu.matmul %161, %157, %cst_100 {dimension_numbers = #tpu.dot_dimension_numbers<[1], [0], [0], [1], [0, 0, 1, 1], [], []>} : vector<5x84xf32>, vector<84x160xf32>, vector<5x160xf32> -> vector<5x160xf32>
    %163 = arith.addf %155, %162 : vector<5x160xf32>
    %c1_101 = arith.constant 1 : index
    %c0_102 = arith.constant 0 : index
    %c0_103 = arith.constant 0 : index
    %164 = vector.load %arg4[%c1_101, %c0_102, %c0_103] : memref<5x84x160xf32, #tpu.memory_space<vmem>>, vector<1x84x160xf32>
    %165 = vector.shape_cast %164 : vector<1x84x160xf32> to vector<84x160xf32>
    %166 = vector.extract_strided_slice %153 {offsets = [0, 0], sizes = [5, 84], strides = [1, 1]} : vector<7x84xf32> to vector<5x84xf32>
    %cst_104 = arith.constant dense<0.000000e+00> : vector<5x160xf32>
    %167 = tpu.matmul %166, %165, %cst_104 {dimension_numbers = #tpu.dot_dimension_numbers<[1], [0], [0], [1], [0, 0, 1, 1], [], []>} : vector<5x84xf32>, vector<84x160xf32>, vector<5x160xf32> -> vector<5x160xf32>
    %168 = arith.addf %160, %167 : vector<5x160xf32>
    %169 = vector.extract_strided_slice %150 {offsets = [1, 0], sizes = [5, 84], strides = [1, 1]} : vector<7x84xf32> to vector<5x84xf32>
    %cst_105 = arith.constant dense<0.000000e+00> : vector<5x160xf32>
    %170 = tpu.matmul %169, %165, %cst_105 {dimension_numbers = #tpu.dot_dimension_numbers<[1], [0], [0], [1], [0, 0, 1, 1], [], []>} : vector<5x84xf32>, vector<84x160xf32>, vector<5x160xf32> -> vector<5x160xf32>
    %171 = arith.addf %163, %170 : vector<5x160xf32>
    %c2_106 = arith.constant 2 : index
    %c0_107 = arith.constant 0 : index
    %c0_108 = arith.constant 0 : index
    %172 = vector.load %arg4[%c2_106, %c0_107, %c0_108] : memref<5x84x160xf32, #tpu.memory_space<vmem>>, vector<1x84x160xf32>
    %173 = vector.shape_cast %172 : vector<1x84x160xf32> to vector<84x160xf32>
    %174 = vector.extract_strided_slice %150 {offsets = [1, 0], sizes = [5, 84], strides = [1, 1]} : vector<7x84xf32> to vector<5x84xf32>
    %cst_109 = arith.constant dense<0.000000e+00> : vector<5x160xf32>
    %175 = tpu.matmul %174, %173, %cst_109 {dimension_numbers = #tpu.dot_dimension_numbers<[1], [0], [0], [1], [0, 0, 1, 1], [], []>} : vector<5x84xf32>, vector<84x160xf32>, vector<5x160xf32> -> vector<5x160xf32>
    %176 = arith.addf %168, %175 : vector<5x160xf32>
    %177 = vector.extract_strided_slice %153 {offsets = [1, 0], sizes = [5, 84], strides = [1, 1]} : vector<7x84xf32> to vector<5x84xf32>
    %cst_110 = arith.constant dense<0.000000e+00> : vector<5x160xf32>
    %178 = tpu.matmul %177, %173, %cst_110 {dimension_numbers = #tpu.dot_dimension_numbers<[1], [0], [0], [1], [0, 0, 1, 1], [], []>} : vector<5x84xf32>, vector<84x160xf32>, vector<5x160xf32> -> vector<5x160xf32>
    %179 = arith.addf %171, %178 : vector<5x160xf32>
    %c3_111 = arith.constant 3 : index
    %c0_112 = arith.constant 0 : index
    %c0_113 = arith.constant 0 : index
    %180 = vector.load %arg4[%c3_111, %c0_112, %c0_113] : memref<5x84x160xf32, #tpu.memory_space<vmem>>, vector<1x84x160xf32>
    %181 = vector.shape_cast %180 : vector<1x84x160xf32> to vector<84x160xf32>
    %182 = vector.extract_strided_slice %153 {offsets = [1, 0], sizes = [5, 84], strides = [1, 1]} : vector<7x84xf32> to vector<5x84xf32>
    %cst_114 = arith.constant dense<0.000000e+00> : vector<5x160xf32>
    %183 = tpu.matmul %182, %181, %cst_114 {dimension_numbers = #tpu.dot_dimension_numbers<[1], [0], [0], [1], [0, 0, 1, 1], [], []>} : vector<5x84xf32>, vector<84x160xf32>, vector<5x160xf32> -> vector<5x160xf32>
    %184 = arith.addf %176, %183 : vector<5x160xf32>
    %185 = vector.extract_strided_slice %150 {offsets = [2, 0], sizes = [5, 84], strides = [1, 1]} : vector<7x84xf32> to vector<5x84xf32>
    %cst_115 = arith.constant dense<0.000000e+00> : vector<5x160xf32>
    %186 = tpu.matmul %185, %181, %cst_115 {dimension_numbers = #tpu.dot_dimension_numbers<[1], [0], [0], [1], [0, 0, 1, 1], [], []>} : vector<5x84xf32>, vector<84x160xf32>, vector<5x160xf32> -> vector<5x160xf32>
    %187 = arith.addf %179, %186 : vector<5x160xf32>
    %c4_116 = arith.constant 4 : index
    %c0_117 = arith.constant 0 : index
    %c0_118 = arith.constant 0 : index
    %188 = vector.load %arg4[%c4_116, %c0_117, %c0_118] : memref<5x84x160xf32, #tpu.memory_space<vmem>>, vector<1x84x160xf32>
    %189 = vector.shape_cast %188 : vector<1x84x160xf32> to vector<84x160xf32>
    %190 = vector.extract_strided_slice %150 {offsets = [2, 0], sizes = [5, 84], strides = [1, 1]} : vector<7x84xf32> to vector<5x84xf32>
    %cst_119 = arith.constant dense<0.000000e+00> : vector<5x160xf32>
    %191 = tpu.matmul %190, %189, %cst_119 {dimension_numbers = #tpu.dot_dimension_numbers<[1], [0], [0], [1], [0, 0, 1, 1], [], []>} : vector<5x84xf32>, vector<84x160xf32>, vector<5x160xf32> -> vector<5x160xf32>
    %192 = arith.addf %184, %191 : vector<5x160xf32>
    %193 = vector.extract_strided_slice %153 {offsets = [2, 0], sizes = [5, 84], strides = [1, 1]} : vector<7x84xf32> to vector<5x84xf32>
    %cst_120 = arith.constant dense<0.000000e+00> : vector<5x160xf32>
    %194 = tpu.matmul %193, %189, %cst_120 {dimension_numbers = #tpu.dot_dimension_numbers<[1], [0], [0], [1], [0, 0, 1, 1], [], []>} : vector<5x84xf32>, vector<84x160xf32>, vector<5x160xf32> -> vector<5x160xf32>
    %195 = arith.addf %187, %194 : vector<5x160xf32>
    %c0_121 = arith.constant 0 : index
    %c0_122 = arith.constant 0 : index
    %196 = vector.load %arg5[%c0_121, %c0_122] : memref<1x160xf32, #tpu.memory_space<vmem>>, vector<1x160xf32>
    %197 = vector.broadcast %196 : vector<1x160xf32> to vector<5x160xf32>
    %198 = arith.addf %192, %197 : vector<5x160xf32>
    %cst_123 = arith.constant 0.000000e+00 : f32
    %199 = vector.broadcast %cst_123 : f32 to vector<5x160xf32>
    %200 = arith.maximumf %198, %199 : vector<5x160xf32>
    %c0_124 = arith.constant 0 : index
    %c0_125 = arith.constant 0 : index
    %201 = vector.load %arg5[%c0_124, %c0_125] : memref<1x160xf32, #tpu.memory_space<vmem>>, vector<1x160xf32>
    %202 = vector.broadcast %201 : vector<1x160xf32> to vector<5x160xf32>
    %203 = arith.addf %195, %202 : vector<5x160xf32>
    %cst_126 = arith.constant 0.000000e+00 : f32
    %204 = vector.broadcast %cst_126 : f32 to vector<5x160xf32>
    %205 = arith.maximumf %203, %204 : vector<5x160xf32>
    %206 = arith.maximumf %200, %205 : vector<5x160xf32>
    %207 = vector.extract_strided_slice %206 {offsets = [0, 0], sizes = [5, 80], strides = [1, 1]} : vector<5x160xf32> to vector<5x80xf32>
    %208 = vector.extract_strided_slice %206 {offsets = [0, 80], sizes = [5, 80], strides = [1, 1]} : vector<5x160xf32> to vector<5x80xf32>
    %209 = arith.maximumf %207, %208 : vector<5x80xf32>
    %cst_127 = arith.constant 0.000000e+00 : f32
    %210 = vector.broadcast %cst_127 : f32 to vector<1x120xf32>
    %211 = vector.extract_strided_slice %209 {offsets = [0, 0], sizes = [1, 80], strides = [1, 1]} : vector<5x80xf32> to vector<1x80xf32>
    %c0_128 = arith.constant 0 : index
    %c0_129 = arith.constant 0 : index
    %c0_130 = arith.constant 0 : index
    %212 = vector.load %arg6[%c0_128, %c0_129, %c0_130] : memref<5x80x120xf32, #tpu.memory_space<vmem>>, vector<1x80x120xf32>
    %213 = vector.shape_cast %212 : vector<1x80x120xf32> to vector<80x120xf32>
    %cst_131 = arith.constant dense<0.000000e+00> : vector<1x120xf32>
    %214 = tpu.matmul %211, %213, %cst_131 {dimension_numbers = #tpu.dot_dimension_numbers<[1], [0], [0], [1], [0, 0, 1, 1], [], []>} : vector<1x80xf32>, vector<80x120xf32>, vector<1x120xf32> -> vector<1x120xf32>
    %215 = arith.addf %210, %214 : vector<1x120xf32>
    %216 = vector.extract_strided_slice %209 {offsets = [1, 0], sizes = [1, 80], strides = [1, 1]} : vector<5x80xf32> to vector<1x80xf32>
    %c1_132 = arith.constant 1 : index
    %c0_133 = arith.constant 0 : index
    %c0_134 = arith.constant 0 : index
    %217 = vector.load %arg6[%c1_132, %c0_133, %c0_134] : memref<5x80x120xf32, #tpu.memory_space<vmem>>, vector<1x80x120xf32>
    %218 = vector.shape_cast %217 : vector<1x80x120xf32> to vector<80x120xf32>
    %cst_135 = arith.constant dense<0.000000e+00> : vector<1x120xf32>
    %219 = tpu.matmul %216, %218, %cst_135 {dimension_numbers = #tpu.dot_dimension_numbers<[1], [0], [0], [1], [0, 0, 1, 1], [], []>} : vector<1x80xf32>, vector<80x120xf32>, vector<1x120xf32> -> vector<1x120xf32>
    %220 = arith.addf %215, %219 : vector<1x120xf32>
    %221 = vector.extract_strided_slice %209 {offsets = [2, 0], sizes = [1, 80], strides = [1, 1]} : vector<5x80xf32> to vector<1x80xf32>
    %c2_136 = arith.constant 2 : index
    %c0_137 = arith.constant 0 : index
    %c0_138 = arith.constant 0 : index
    %222 = vector.load %arg6[%c2_136, %c0_137, %c0_138] : memref<5x80x120xf32, #tpu.memory_space<vmem>>, vector<1x80x120xf32>
    %223 = vector.shape_cast %222 : vector<1x80x120xf32> to vector<80x120xf32>
    %cst_139 = arith.constant dense<0.000000e+00> : vector<1x120xf32>
    %224 = tpu.matmul %221, %223, %cst_139 {dimension_numbers = #tpu.dot_dimension_numbers<[1], [0], [0], [1], [0, 0, 1, 1], [], []>} : vector<1x80xf32>, vector<80x120xf32>, vector<1x120xf32> -> vector<1x120xf32>
    %225 = arith.addf %220, %224 : vector<1x120xf32>
    %226 = vector.extract_strided_slice %209 {offsets = [3, 0], sizes = [1, 80], strides = [1, 1]} : vector<5x80xf32> to vector<1x80xf32>
    %c3_140 = arith.constant 3 : index
    %c0_141 = arith.constant 0 : index
    %c0_142 = arith.constant 0 : index
    %227 = vector.load %arg6[%c3_140, %c0_141, %c0_142] : memref<5x80x120xf32, #tpu.memory_space<vmem>>, vector<1x80x120xf32>
    %228 = vector.shape_cast %227 : vector<1x80x120xf32> to vector<80x120xf32>
    %cst_143 = arith.constant dense<0.000000e+00> : vector<1x120xf32>
    %229 = tpu.matmul %226, %228, %cst_143 {dimension_numbers = #tpu.dot_dimension_numbers<[1], [0], [0], [1], [0, 0, 1, 1], [], []>} : vector<1x80xf32>, vector<80x120xf32>, vector<1x120xf32> -> vector<1x120xf32>
    %230 = arith.addf %225, %229 : vector<1x120xf32>
    %231 = vector.extract_strided_slice %209 {offsets = [4, 0], sizes = [1, 80], strides = [1, 1]} : vector<5x80xf32> to vector<1x80xf32>
    %c4_144 = arith.constant 4 : index
    %c0_145 = arith.constant 0 : index
    %c0_146 = arith.constant 0 : index
    %232 = vector.load %arg6[%c4_144, %c0_145, %c0_146] : memref<5x80x120xf32, #tpu.memory_space<vmem>>, vector<1x80x120xf32>
    %233 = vector.shape_cast %232 : vector<1x80x120xf32> to vector<80x120xf32>
    %cst_147 = arith.constant dense<0.000000e+00> : vector<1x120xf32>
    %234 = tpu.matmul %231, %233, %cst_147 {dimension_numbers = #tpu.dot_dimension_numbers<[1], [0], [0], [1], [0, 0, 1, 1], [], []>} : vector<1x80xf32>, vector<80x120xf32>, vector<1x120xf32> -> vector<1x120xf32>
    %235 = arith.addf %230, %234 : vector<1x120xf32>
    %c0_148 = arith.constant 0 : index
    %c0_149 = arith.constant 0 : index
    %236 = vector.load %arg7[%c0_148, %c0_149] : memref<1x120xf32, #tpu.memory_space<vmem>>, vector<1x120xf32>
    %237 = arith.addf %235, %236 : vector<1x120xf32>
    %cst_150 = arith.constant 0.000000e+00 : f32
    %238 = vector.broadcast %cst_150 : f32 to vector<1x120xf32>
    %239 = arith.maximumf %237, %238 : vector<1x120xf32>
    %c0_151 = arith.constant 0 : index
    %c0_152 = arith.constant 0 : index
    %240 = vector.load %arg8[%c0_151, %c0_152] : memref<120x84xf32, #tpu.memory_space<vmem>>, vector<120x84xf32>
    %cst_153 = arith.constant dense<0.000000e+00> : vector<1x84xf32>
    %241 = tpu.matmul %239, %240, %cst_153 {dimension_numbers = #tpu.dot_dimension_numbers<[1], [0], [0], [1], [0, 0, 1, 1], [], []>} : vector<1x120xf32>, vector<120x84xf32>, vector<1x84xf32> -> vector<1x84xf32>
    %c0_154 = arith.constant 0 : index
    %c0_155 = arith.constant 0 : index
    %242 = vector.load %arg9[%c0_154, %c0_155] : memref<1x84xf32, #tpu.memory_space<vmem>>, vector<1x84xf32>
    %243 = arith.addf %241, %242 : vector<1x84xf32>
    %cst_156 = arith.constant 0.000000e+00 : f32
    %244 = vector.broadcast %cst_156 : f32 to vector<1x84xf32>
    %245 = arith.maximumf %243, %244 : vector<1x84xf32>
    %c0_157 = arith.constant 0 : index
    %c0_158 = arith.constant 0 : index
    %246 = vector.load %arg10[%c0_157, %c0_158] : memref<84x10xf32, #tpu.memory_space<vmem>>, vector<84x10xf32>
    %cst_159 = arith.constant dense<0.000000e+00> : vector<1x10xf32>
    %247 = tpu.matmul %245, %246, %cst_159 {dimension_numbers = #tpu.dot_dimension_numbers<[1], [0], [0], [1], [0, 0, 1, 1], [], []>} : vector<1x84xf32>, vector<84x10xf32>, vector<1x10xf32> -> vector<1x10xf32>
    %c0_160 = arith.constant 0 : index
    %c0_161 = arith.constant 0 : index
    %248 = vector.load %arg11[%c0_160, %c0_161] : memref<1x10xf32, #tpu.memory_space<vmem>>, vector<1x10xf32>
    %249 = arith.addf %247, %248 : vector<1x10xf32>
    %c0_162 = arith.constant 0 : index
    %c0_163 = arith.constant 0 : index
    %c0_164 = arith.constant 0 : index
    %250 = vector.load %arg12[%c0_162, %c0_163, %c0_164] : memref<1x1x10xf32, #tpu.memory_space<vmem>>, vector<1x1x10xf32>
    %251 = vector.shape_cast %250 : vector<1x1x10xf32> to vector<1x10xf32>
    %252 = vector.shape_cast %249 : vector<1x10xf32> to vector<1x1x10xf32>
    tpu.vector_store %arg12[%c0_162, %c0_163, %c0_164], %252 {strides = array<i32>} : memref<1x1x10xf32, #tpu.memory_space<vmem>>, vector<1x1x10xf32>,
    return
  }
  func.func @transform_0(%arg0: i32) -> (i32, i32, i32, i32) {
    %c0_i32 = arith.constant 0 : i32
    %c0_i32_0 = arith.constant 0 : i32
    %c0_i32_1 = arith.constant 0 : i32
    %c0_i32_2 = arith.constant 0 : i32
    return %arg0, %c0_i32, %c0_i32_0, %c0_i32_1 : i32, i32, i32, i32
  }
  func.func @transform_1(%arg0: i32) -> (i32, i32, i32) {
    %c0_i32 = arith.constant 0 : i32
    %c0_i32_0 = arith.constant 0 : i32
    %c0_i32_1 = arith.constant 0 : i32
    %c0_i32_2 = arith.constant 0 : i32
    return %c0_i32, %c0_i32_0, %c0_i32_1 : i32, i32, i32
  }
  func.func @transform_2(%arg0: i32) -> (i32, i32) {
    %c0_i32 = arith.constant 0 : i32
    %c0_i32_0 = arith.constant 0 : i32
    %c0_i32_1 = arith.constant 0 : i32
    return %c0_i32, %c0_i32_0 : i32, i32
  }
  func.func @transform_3(%arg0: i32) -> (i32, i32, i32) {
    %c0_i32 = arith.constant 0 : i32
    %c0_i32_0 = arith.constant 0 : i32
    %c0_i32_1 = arith.constant 0 : i32
    %c0_i32_2 = arith.constant 0 : i32
    return %c0_i32, %c0_i32_0, %c0_i32_1 : i32, i32, i32
  }
  func.func @transform_4(%arg0: i32) -> (i32, i32) {
    %c0_i32 = arith.constant 0 : i32
    %c0_i32_0 = arith.constant 0 : i32
    %c0_i32_1 = arith.constant 0 : i32
    return %c0_i32, %c0_i32_0 : i32, i32
  }
  func.func @transform_5(%arg0: i32) -> (i32, i32, i32) {
    %c0_i32 = arith.constant 0 : i32
    %c0_i32_0 = arith.constant 0 : i32
    %c0_i32_1 = arith.constant 0 : i32
    %c0_i32_2 = arith.constant 0 : i32
    return %c0_i32, %c0_i32_0, %c0_i32_1 : i32, i32, i32
  }
  func.func @transform_6(%arg0: i32) -> (i32, i32) {
    %c0_i32 = arith.constant 0 : i32
    %c0_i32_0 = arith.constant 0 : i32
    %c0_i32_1 = arith.constant 0 : i32
    return %c0_i32, %c0_i32_0 : i32, i32
  }
  func.func @transform_7(%arg0: i32) -> (i32, i32) {
    %c0_i32 = arith.constant 0 : i32
    %c0_i32_0 = arith.constant 0 : i32
    %c0_i32_1 = arith.constant 0 : i32
    return %c0_i32, %c0_i32_0 : i32, i32
  }
  func.func @transform_8(%arg0: i32) -> (i32, i32) {
    %c0_i32 = arith.constant 0 : i32
    %c0_i32_0 = arith.constant 0 : i32
    %c0_i32_1 = arith.constant 0 : i32
    return %c0_i32, %c0_i32_0 : i32, i32
  }
  func.func @transform_9(%arg0: i32) -> (i32, i32) {
    %c0_i32 = arith.constant 0 : i32
    %c0_i32_0 = arith.constant 0 : i32
    %c0_i32_1 = arith.constant 0 : i32
    return %c0_i32, %c0_i32_0 : i32, i32
  }
  func.func @transform_10(%arg0: i32) -> (i32, i32) {
    %c0_i32 = arith.constant 0 : i32
    %c0_i32_0 = arith.constant 0 : i32
    %c0_i32_1 = arith.constant 0 : i32
    return %c0_i32, %c0_i32_0 : i32, i32
  }
  func.func @transform_11(%arg0: i32) -> (i32, i32, i32) {
    %c0_i32 = arith.constant 0 : i32
    %c0_i32_0 = arith.constant 0 : i32
    %c0_i32_1 = arith.constant 0 : i32
    return %arg0, %c0_i32, %c0_i32_0 : i32, i32, i32
  }
}

</mosaic_0001>

<bundles_post_ra>
// kernel: tile.13
= control target key start
LH: loop header
LB: loop body
LE: loop exit
PB: predicated region body
PF: predicated region fallthrough
CT: control target
= control target key end

     0   :  { %s40_s0 = inlined_call_operand.vmem [shape: f32[6], index: 0, kind: input, shape index: {}]   ;;  %s41_s1 = inlined_call_operand.vmem [shape: f32[28,6], index: 1, kind: output, shape index: {}]  }
   0x1   :  { %v4_v0 = vld [vmem:[%s40_s0] ss:$0 sm:$0xff] }
   0x2   :  { %5 = vst [vmem:[%s41_s1] sm:$0xff] %v4_v0  ;;  %12 = vst [vmem:[%s41_s1 + $0x8] sm:$0xff] %v4_v0 }
   0x3   :  { %13 = vst [vmem:[%s41_s1 + $0x10] sm:$0xff] %v4_v0  ;;  %14 = vst [vmem:[%s41_s1 + $0x18] sm:$0xff] %v4_v0 }

// kernel: tile.14
= control target key start
LH: loop header
LB: loop body
LE: loop exit
PB: predicated region body
PF: predicated region fallthrough
CT: control target
= control target key end

     0   :  { %vm9_vm0 = vcmask 15360   ;;  %s247_s12 = smov 126   ;;  %s248_s13 = smov 114   ;;  %vm3_vm1 = vcmask 48128   ;;  %vm13_vm2 = vcmask 31744   ;;  %vm16_vm3 = vcmask 1048560   ;;  %s377_s0 = inlined_call_operand.vmem [shape: f32[28,6], index: 0, kind: input, shape index: {}]   ;;  %s378_s1 = inlined_call_operand.vmem [shape: f32[1,168], index: 1, kind: output, shape index: {}]  }
   0x1   :  { %v191_v0 = vld [vmem:[%s377_s0 + $0x15] sm:$0x1]   ;;  %v194_v3 = vld [vmem:[%s377_s0 + $0x13] sm:$0x1]   ;;  %v193_v4 = vld [vmem:[%s377_s0 + $0x14] sm:$0x1]  }
   0x2   :  { %v192_v1 = vld [vmem:[%s377_s0 + $0x15] sm:$0x1]   ;;  %26 = vrot.lane.b32.xlu1 %v194_v3, %s248_s13  ;;  %v195_v5 = vld [vmem:[%s377_s0 + $0x12] sm:$0x1]   ;;  %s249_s18 = smov 120   ;;  %s250_s19 = smov 108  }
   0x3   :  { %v10_v2 = vsel %vm9_vm0, %v192_v1, %v191_v0  ;;  %v196_v6 = vld [vmem:[%s377_s0 + $0x11] sm:$0x1]   ;;  %v197_v7 = vld [vmem:[%s377_s0 + $0x10] sm:$0x1]   ;;  %s251_s24 = smov 102   ;;  %s252_s25 = smov 96  }
   0x4   :  { %11 = vrot.lane.b32.xlu0 %v10_v2, %s247_s12  ;;  %v198_v8 = vld [vmem:[%s377_s0 + $0xf] sm:$0x1]   ;;  %v199_v9 = vld [vmem:[%s377_s0 + $0xe] sm:$0x1]   ;;  %s253_s30 = smov 90   ;;  %s254_s2 = smov 84  }
   0x5   :  { %v2_v10 = vld [vmem:[%s377_s0] sm:$0x1]   ;;  %v200_v11 = vld [vmem:[%s377_s0 + $0xd] sm:$0x1]   ;;  %v201_v12 = vld [vmem:[%s377_s0 + $0xc] sm:$0x1]  }
   0x6   :  { %32 = vrot.lane.b32.xlu1 %v195_v5, %s250_s19  ;;  %4 = vst.msk [vmem:[#allocation0] sm:$0x1] %vm3_vm1, %v2_v10   ;;  %s255_s9 = smov 78   ;;  %s256_s10 = smov 72   ;;  %v202_v13 = vld [vmem:[%s377_s0 + $0xb] sm:$0x1]  }
   0x7   :  { %v203_v14 = vld [vmem:[%s377_s0 + $0xa] sm:$0x1]   ;;  %s257_s15 = smov 66   ;;  %s258_s16 = smov 60   ;;  %v204_v15 = vld [vmem:[%s377_s0 + $0x9] sm:$0x1]  }
   0x8   :  { %20 = vrot.lane.b32.xlu0 %v193_v4, %s249_s18  ;;  %v205_v16 = vld [vmem:[%s377_s0 + $0x8] sm:$0x1]   ;;  %s259_s21 = smov 54   ;;  %s260_s22 = smov 48   ;;  %v206_v17 = vld [vmem:[%s377_s0 + $0x7] sm:$0x1]  }
   0x9   :  { %v207_v18 = vld [vmem:[%s377_s0 + $0x6] sm:$0x1]   ;;  %s261_s27 = smov 42   ;;  %s262_s28 = smov 36   ;;  %v208_v19 = vld [vmem:[%s377_s0 + $0x1b] sm:$0x1]  }
   0xa   :  { %44 = vrot.lane.b32.xlu1 %v197_v7, %s252_s25  ;;  %v209_v20 = vld [vmem:[%s377_s0 + $0x5] sm:$0x1]   ;;  %s263_s4 = smov 34   ;;  %s264_s5 = smov 30   ;;  %v210_v21 = vld [vmem:[%s377_s0 + $0x1a] sm:$0x1]  }
   0xb   :  { %v211_v22 = vld [vmem:[%s377_s0 + $0x4] sm:$0x1]   ;;  %s266_s11 = smov 24   ;;  %v212_v23 = vld [vmem:[%s377_s0 + $0x19] sm:$0x1]   ;;  %s268_s17 = smov 18  }
   0xc   :  { %38 = vrot.lane.b32.xlu0 %v196_v6, %s251_s24  ;;  %v213_v24 = vld [vmem:[%s377_s0 + $0x3] sm:$0x1]   ;;  %v214_v25 = vld [vmem:[%s377_s0 + $0x18] sm:$0x1]   ;;  %v215_v26 = vld [vmem:[%s377_s0 + $0x2] sm:$0x1]  }
   0xd   :  { %s270_s23 = smov 12   ;;  %v216_v27 = vld [vmem:[%s377_s0 + $0x17] sm:$0x1]   ;;  %v217_v28 = vld [vmem:[%s377_s0 + $0x1] sm:$0x1]   ;;  %s272_s29 = smov 6  }
   0xe   :  { %56 = vrot.lane.b32.xlu1 %v199_v9, %s254_s2  ;;  %v218_v29 = vld [vmem:[%s377_s0 + $0x16] sm:$0x1]   ;;  %s273_s0 = smov 4   ;;  %vm22_vm4 = vcmask 1032128   ;;  %vm28_vm5 = vcmask 982928   ;;  %vm34_vm6 = vcmask 933728  }
   0xf   :  { %vm40_vm7 = vcmask 884528   ;;  %vm46_vm8 = vcmask 835328   ;;  %vm52_vm9 = vcmask 786128   ;;  %vm58_vm10 = vcmask 736928  }
  0x10   :  { %50 = vrot.lane.b32.xlu0 %v198_v8, %s253_s30  ;;  %vm64_vm11 = vcmask 687728   ;;  %vm70_vm12 = vcmask 638528   ;;  %vm76_vm13 = vcmask 589328   ;;  %vm82_vm14 = vcmask 540128  }
  0x11   :  { %vm88_vm15 = vcmask 490928   ;;  %vm94_vm0 = vcmask 441728   ;;  %vm100_vm1 = vcmask 392528  }
  0x12   :  { %68 = vrot.lane.b32.xlu1 %v201_v12, %s256_s10  ;;  %s265_s10 = smov 28  }
  0x14   :  { %62 = vrot.lane.b32.xlu0 %v200_v11, %s255_s9 }
  0x16   :  { %80 = vrot.lane.b32.xlu1 %v203_v14, %s258_s16  ;;  %s267_s16 = smov 22  }
  0x18   :  { %74 = vrot.lane.b32.xlu0 %v202_v13, %s257_s15 }
  0x1a   :  { %92 = vrot.lane.b32.xlu1 %v205_v16, %s260_s22  ;;  %s269_s22 = smov 16  }
  0x1c   :  { %86 = vrot.lane.b32.xlu0 %v204_v15, %s259_s21 }
  0x1e   :  { %104 = vrot.lane.b32.xlu1 %v207_v18, %s262_s28  ;;  %s271_s28 = smov 10  }
  0x20   :  { %98 = vrot.lane.b32.xlu0 %v206_v17, %s261_s27 }
  0x22   :  { %117 = vrot.lane.b32.xlu1 %v209_v20, %s264_s5 }
  0x24   :  { %110 = vrot.lane.b32.xlu0 %v208_v19, %s263_s4 }
  0x26   :  { %130 = vrot.lane.b32.xlu1 %v211_v22, %s266_s11 }
  0x28   :  { %123 = vrot.lane.b32.xlu0 %v210_v21, %s265_s10 }
  0x2a   :  { %143 = vrot.lane.b32.xlu1 %v213_v24, %s268_s17 }
  0x2c   :  { %136 = vrot.lane.b32.xlu0 %v212_v23, %s267_s16 }
  0x2e   :  { %156 = vrot.lane.b32.xlu1 %v215_v26, %s270_s23 }
  0x30   :  { %149 = vrot.lane.b32.xlu0 %v214_v25, %s269_s22 }
  0x32   :  { %169 = vrot.lane.b32.xlu1 %v217_v28, %s272_s29 }
  0x34   :  { %162 = vrot.lane.b32.xlu0 %v216_v27, %s271_s28 }
  0x38   :  { %175 = vrot.lane.b32.xlu0 %v218_v29, %s273_s0 }
  0x74   :  { %v27_v31 = vpop.permute.xlu1 %26  }
  0x76   :  { %v12_v30 = vpop.permute.xlu0 %11  }
  0x77   :  { %15 = vst.msk [vmem:[#allocation0 + $0x8] sm:$0x1] %vm13_vm2, %v12_v30   ;;  %vm106_vm2 = vcmask 343328  }
  0x78   :  { %17 = vst.msk [vmem:[#allocation0] sm:$0x1] %vm16_vm3, %v12_v30   ;;  %v33_v33 = vpop.permute.xlu1 %32   ;;  %vm112_vm3 = vcmask 326928  }
  0x7a   :  { %v21_v32 = vpop.permute.xlu0 %20  }
  0x7b   :  { %23 = vst.msk [vmem:[#allocation0] sm:$0x1] %vm22_vm4, %v21_v32   ;;  %vm119_vm4 = vcmask 294128  }
  0x7c   :  { %29 = vst.msk [vmem:[#allocation0] sm:$0x1] %vm28_vm5, %v27_v31   ;;  %v45_v35 = vpop.permute.xlu1 %44   ;;  %vm125_vm5 = vcmask 277728  }
  0x7d   :  { %35 = vst.msk [vmem:[#allocation0] sm:$0x1] %vm34_vm6, %v33_v33   ;;  %vm132_vm6 = vcmask 244928  }
  0x7e   :  { %v39_v34 = vpop.permute.xlu0 %38  }
  0x7f   :  { %41 = vst.msk [vmem:[#allocation0] sm:$0x1] %vm40_vm7, %v39_v34   ;;  %vm138_vm7 = vcmask 228528  }
  0x80   :  { %47 = vst.msk [vmem:[#allocation0] sm:$0x1] %vm46_vm8, %v45_v35   ;;  %v57_v37 = vpop.permute.xlu1 %56   ;;  %vm145_vm8 = vcmask 195728  }
  0x82   :  { %v51_v36 = vpop.permute.xlu0 %50  }
  0x83   :  { %53 = vst.msk [vmem:[#allocation0] sm:$0x1] %vm52_vm9, %v51_v36   ;;  %vm151_vm9 = vcmask 179328  }
  0x84   :  { %59 = vst.msk [vmem:[#allocation0] sm:$0x1] %vm58_vm10, %v57_v37   ;;  %v69_v39 = vpop.permute.xlu1 %68   ;;  %vm158_vm10 = vcmask 146528  }
  0x86   :  { %v63_v38 = vpop.permute.xlu0 %62  }
  0x87   :  { %65 = vst.msk [vmem:[#allocation0] sm:$0x1] %vm64_vm11, %v63_v38   ;;  %vm164_vm11 = vcmask 130128  }
  0x88   :  { %71 = vst.msk [vmem:[#allocation0] sm:$0x1] %vm70_vm12, %v69_v39   ;;  %v81_v41 = vpop.permute.xlu1 %80   ;;  %vm171_vm12 = vcmask 97328  }
  0x8a   :  { %v75_v40 = vpop.permute.xlu0 %74  }
  0x8b   :  { %77 = vst.msk [vmem:[#allocation0] sm:$0x1] %vm76_vm13, %v75_v40   ;;  %vm177_vm13 = vcmask 80928  }
  0x8c   :  { %83 = vst.msk [vmem:[#allocation0] sm:$0x1] %vm82_vm14, %v81_v41   ;;  %v93_v43 = vpop.permute.xlu1 %92  }
  0x8e   :  { %v87_v42 = vpop.permute.xlu0 %86  }
  0x8f   :  { %89 = vst.msk [vmem:[#allocation0] sm:$0x1] %vm88_vm15, %v87_v42  }
  0x90   :  { %95 = vst.msk [vmem:[#allocation0] sm:$0x1] %vm94_vm0, %v93_v43   ;;  %v105_v45 = vpop.permute.xlu1 %104  }
  0x92   :  { %v99_v44 = vpop.permute.xlu0 %98  }
  0x93   :  { %101 = vst.msk [vmem:[#allocation0] sm:$0x1] %vm100_vm1, %v99_v44  }
  0x94   :  { %107 = vst.msk [vmem:[#allocation0] sm:$0x1] %vm106_vm2, %v105_v45   ;;  %v118_v47 = vpop.permute.xlu1 %117  }
  0x95   :  { %120 = vst.msk [vmem:[#allocation0] sm:$0x1] %vm119_vm4, %v118_v47  }
  0x96   :  { %v111_v46 = vpop.permute.xlu0 %110  }
  0x97   :  { %114 = vst.msk [vmem:[#allocation0 + $0x8] sm:$0x1] %vm112_vm3, %v111_v46  }
  0x98   :  { %v131_v49 = vpop.permute.xlu1 %130  }
  0x99   :  { %133 = vst.msk [vmem:[#allocation0] sm:$0x1] %vm132_vm6, %v131_v49  }
  0x9a   :  { %v124_v48 = vpop.permute.xlu0 %123  }
  0x9b   :  { %127 = vst.msk [vmem:[#allocation0 + $0x8] sm:$0x1] %vm125_vm5, %v124_v48  }
  0x9c   :  { %v144_v51 = vpop.permute.xlu1 %143  }
  0x9d   :  { %146 = vst.msk [vmem:[#allocation0] sm:$0x1] %vm145_vm8, %v144_v51  }
  0x9e   :  { %v137_v50 = vpop.permute.xlu0 %136  }
  0x9f   :  { %140 = vst.msk [vmem:[#allocation0 + $0x8] sm:$0x1] %vm138_vm7, %v137_v50  }
  0xa0   :  { %v157_v53 = vpop.permute.xlu1 %156  }
  0xa1   :  { %159 = vst.msk [vmem:[#allocation0] sm:$0x1] %vm158_vm10, %v157_v53  }
  0xa2   :  { %v150_v52 = vpop.permute.xlu0 %149  }
  0xa3   :  { %153 = vst.msk [vmem:[#allocation0 + $0x8] sm:$0x1] %vm151_vm9, %v150_v52  }
  0xa4   :  { %v170_v55 = vpop.permute.xlu1 %169  }
  0xa5   :  { %172 = vst.msk [vmem:[#allocation0] sm:$0x1] %vm171_vm12, %v170_v55  }
  0xa6   :  { %v163_v54 = vpop.permute.xlu0 %162  }
  0xa7   :  { %166 = vst.msk [vmem:[#allocation0 + $0x8] sm:$0x1] %vm164_vm11, %v163_v54  }
  0xaa   :  { %v176_v56 = vpop.permute.xlu0 %175  }
  0xab   :  { %179 = vst.msk [vmem:[#allocation0 + $0x8] sm:$0x1] %vm177_vm13, %v176_v56  }
  0xac   :  { %v183_v57 = vld [vmem:[#allocation0] sm:$0x1] }
  0xad   :  { %185 = vst [vmem:[%s378_s1] sm:$0x1] %v183_v57 }
  0xb2   :  { %v187_v58 = vld [vmem:[#allocation0 + $0x8] sm:$0x1] }
  0xb3   :  { %219 = vst [vmem:[%s378_s1 + $0x1] sm:$0x1] %v187_v58 }

// kernel: tile.18
= control target key start
LH: loop header
LB: loop body
LE: loop exit
PB: predicated region body
PF: predicated region fallthrough
CT: control target
= control target key end

     0   :  { %s28_s0 = inlined_call_operand.vmem [shape: f32[16], index: 0, kind: input, shape index: {}]   ;;  %s29_s1 = inlined_call_operand.vmem [shape: f32[10,16], index: 1, kind: output, shape index: {}]  }
   0x1   :  { %v4_v0 = vld [vmem:[%s28_s0] ss:$0 sm:$0xff] }
   0x2   :  { %5 = vst [vmem:[%s29_s1] sm:$0xff] %v4_v0  ;;  %8 = vst [vmem:[%s29_s1 + $0x8] sm:$0xff] %v4_v0 }

// kernel: tile.19
= control target key start
LH: loop header
LB: loop body
LE: loop exit
PB: predicated region body
PF: predicated region fallthrough
CT: control target
= control target key end

     0   :  { %s75_s10 = smov 112   ;;  %s76_s11 = smov 80   ;;  %vm4_vm0 = vcmask 130048   ;;  %vm10_vm1 = vcmask 1048448   ;;  %vm16_vm2 = vcmask 917248   ;;  %vm22_vm3 = vcmask 786048   ;;  %s122_s0 = inlined_call_operand.vmem [shape: f32[10,16], index: 0, kind: input, shape index: {}]   ;;  %s123_s1 = inlined_call_operand.vmem [shape: f32[1,160], index: 1, kind: output, shape index: {}]  }
   0x1   :  { %v60_v0 = vld [vmem:[%s122_s0 + $0x7] sm:$0x1]   ;;  %v62_v1 = vld [vmem:[%s122_s0 + $0x5] sm:$0x1]   ;;  %v61_v2 = vld [vmem:[%s122_s0 + $0x6] sm:$0x1]  }
   0x2   :  { %8 = vrot.lane.b32.xlu0 %v60_v0, %s75_s10  ;;  %20 = vrot.lane.b32.xlu1 %v62_v1, %s76_s11  ;;  %v63_v3 = vld [vmem:[%s122_s0 + $0x4] sm:$0x1]   ;;  %s2_s16 = smov 3  ;;  %s77_s17 = smov 96   ;;  %v64_v5 = vld [vmem:[%s122_s0 + $0x3] sm:$0x1]  }
   0x3   :  { %s78_s18 = smov 64   ;;  %v3_v4 = vld [vmem:[%s122_s0] ss:$8 sm:%s2_s16]   ;;  %v65_v6 = vld [vmem:[%s122_s0 + $0x2] sm:$0x1]   ;;  %s43_s25 = smov 3 }
   0x4   :  { %5 = vst.msk [vmem:[#allocation0] ss:$8 sm:$0x3] %vm4_vm0, %v3_v4   ;;  %s79_s26 = smov 48   ;;  %s80_s27 = smov 32   ;;  %vm28_vm4 = vcmask 654848  }
   0x5   :  { %v66_v7 = vld [vmem:[%s122_s0 + $0x1] ss:$8 sm:%s43_s25]   ;;  %s81_s0 = smov 16   ;;  %vm34_vm5 = vcmask 523648   ;;  %vm40_vm6 = vcmask 392448   ;;  %vm47_vm7 = vcmask 261248  }
   0x6   :  { %14 = vrot.lane.b32.xlu0 %v61_v2, %s77_s17  ;;  %26 = vrot.lane.b32.xlu1 %v63_v3, %s78_s18 }
   0xa   :  { %32 = vrot.lane.b32.xlu0 %v64_v5, %s79_s26  ;;  %38 = vrot.lane.b32.xlu1 %v65_v6, %s80_s27 }
   0xe   :  { %45 = vrot.lane.b32.xlu0 %v66_v7, %s81_s0 }
  0x74   :  { %v9_v8 = vpop.permute.xlu0 %8   ;;  %v21_v9 = vpop.permute.xlu1 %20  }
  0x75   :  { %11 = vst.msk [vmem:[#allocation0] sm:$0x1] %vm10_vm1, %v9_v8  }
  0x78   :  { %v15_v10 = vpop.permute.xlu0 %14   ;;  %v27_v11 = vpop.permute.xlu1 %26  }
  0x79   :  { %17 = vst.msk [vmem:[#allocation0] sm:$0x1] %vm16_vm2, %v15_v10  }
  0x7a   :  { %23 = vst.msk [vmem:[#allocation0] sm:$0x1] %vm22_vm3, %v21_v9  }
  0x7b   :  { %29 = vst.msk [vmem:[#allocation0] sm:$0x1] %vm28_vm4, %v27_v11  }
  0x7c   :  { %v33_v12 = vpop.permute.xlu0 %32   ;;  %v39_v13 = vpop.permute.xlu1 %38  }
  0x7d   :  { %35 = vst.msk [vmem:[#allocation0] sm:$0x1] %vm34_vm5, %v33_v12  }
  0x7e   :  { %41 = vst.msk [vmem:[#allocation0] sm:$0x1] %vm40_vm6, %v39_v13  }
  0x80   :  { %v46_v14 = vpop.permute.xlu0 %45  }
  0x81   :  { %48 = vst.msk [vmem:[#allocation0] ss:$8 sm:$0x3] %vm47_vm7, %v46_v14  }
  0x88   :  { %v52_v15 = vld [vmem:[#allocation0] sm:$0x1]  ;;  %v56_v16 = vld [vmem:[#allocation0 + $0x8] sm:$0x1] }
  0x89   :  { %54 = vst [vmem:[%s123_s1] sm:$0x1] %v52_v15  ;;  %67 = vst [vmem:[%s123_s1 + $0x1] sm:$0x1] %v56_v16 }

// kernel: net_forward.1
= control target key start
LH: loop header
LB: loop body
LE: loop exit
PB: predicated region body
PF: predicated region fallthrough
CT: control target
= control target key end

     0   :  { %16 = vsyncpa [#allocation3], 0  ;;  %s6918_s0 = inlined_call_operand.vmem [shape: f32[2,4,8,96], index: 0, kind: input, shape index: {}]   ;;  %s6919_s1 = inlined_call_operand.vmem [shape: f32[5,96,168], index: 1, kind: input, shape index: {}]   ;;  %s6920_s2 = inlined_call_operand.vmem [shape: f32[1,168], index: 2, kind: input, shape index: {}]   ;;  %s6921_s3 = inlined_call_operand.vmem [shape: f32[5,84,160], index: 3, kind: input, shape index: {}]   ;;  %s6922_s4 = inlined_call_operand.vmem [shape: f32[1,160], index: 4, kind: input, shape index: {}]   ;;  %s6923_s5 = inlined_call_operand.vmem [shape: f32[5,80,120], index: 5, kind: input, shape index: {}]   ;;  %s6924_s6 = inlined_call_operand.vmem [shape: f32[1,120], index: 6, kind: input, shape index: {}]   ;;  %s6925_s7 = inlined_call_operand.vmem [shape: f32[120,84], index: 7, kind: input, shape index: {}]   ;;  %s6926_s8 = inlined_call_operand.vmem [shape: f32[1,84], index: 8, kind: input, shape index: {}]   ;;  %s6927_s9 = inlined_call_operand.vmem [shape: f32[84,10], index: 9, kind: input, shape index: {}]   ;;  %s6928_s10 = inlined_call_operand.vmem [shape: f32[1,10], index: 10, kind: input, shape index: {}]   ;;  %s6929_s11 = inlined_call_operand.hbm [shape: f32[2,1,10], index: 11, kind: output, shape index: {}]  }
   0x1   :  { %18 = vsyncpa [#allocation3 + $0x1], 0  ;;  %s5186_s17 = smov 0   ;;  %s5188_s18 = smov 0  }
   0x2   :  { %s5190_s19 = smov 0   ;;  %s5192_s20 = smov 0  }
   0x3 LB: > { %6945 = sst [smem:[#allocation5_spill]] %s5114_s19  ;;  %s5207_s21 = sadd.s32 4294967295, %s5118_s20   ;;  %s5118_s20 = sphi %s5192_s20, %s6966_s20   ;;  %s5114_s19 = sphi %s5190_s19, %s6963_s19   ;;  %s5110_s18 = sphi %s5188_s18, %s6965_s18   ;;  %s5106_s17 = sphi %s5186_s17, %s6964_s17  }
   0x4   : > { %s3625_s22 = sadd.s32 4294967294, %s5118_s20   ;;  %s5211_s23 = sadd.s32 1, %s5118_s20  }
   0x5   : > { %s267_s24 = sadd.s32 1, %s5114_s19  ;;  %s264_s25 = ssub.s32 %s5118_s20, %s5211_s23 }
   0x6   : > { %p277_p0 = scmp.ne.s32.totalorder %s5114_s19, %s5110_s18  ;;  %p265_p1 = scmp.eq.s32.totalorder %s264_s25, 0 }
   0x7   : > { %p278_p2 = scmp.eq.s32.totalorder %s5207_s21, 1  ;;  %p283_p3 = scmp.ne.s32.totalorder %s5110_s18, %s5106_s17 }
   0x8   : > { %p284_p4 = scmp.eq.s32.totalorder %s3625_s22, 1  ;;  %p3628_p7 = scmp.ge.s32.totalorder %s5118_s20, 1 }
   0x9   : > { %s5222_s26 = scalar_select %p265_p1, %s5114_s19, %s267_s24  }
   0xa   : > { %p5224_p5 = por %p278_p2, %p277_p0  ;;  %p5228_p6 = por %p284_p4, %p283_p3 }
   0xb   : > { %6946 = sst [smem:[#allocation6_spill]] %s5222_s26  ;;  %p340_p8 = scmp.lt.s32.totalorder %s5118_s20, 3 }
   0xd   : > { %p341_p9 = pnand %p3628_p7, %p340_p8 }
   0xf   : > { %344 = sbr.rel (%p341_p9) target bundleno = 1736 (0x6c8), region = 64 }
  0x16   : > { %v3632_v0 = vld [vmem:[%s6919_s1 + $0xc8] sm:$0xff]  ;;  %v3634_v1 = vld [vmem:[%s6919_s1 + $0xd8] sm:$0xff]  ;;  %v3631_v2 = vld [vmem:[%s6919_s1 + $0xc0] sm:$0xff]  ;;  %v6931_v7 = vmov 0.0   ;;  %p379_p10 = scmp.lt.s32.totalorder %s5207_s21, 1  ;;  %vm437_vm0 = vcmask 785408  }
  0x17   : > { %v5243_v3 = vpack.c.bf16 %v3634_v1, %v3632_v0  ;;  %v3633_v4 = vld [vmem:[%s6919_s1 + $0xd0] sm:$0xff]  ;;  %v3636_v5 = vld [vmem:[%s6919_s1 + $0xe8] sm:$0xff]  ;;  %v3638_v6 = vld [vmem:[%s6919_s1 + $0xf8] sm:$0xff]  ;;  %505 = vmatprep.mubr.f32.mxu0 %v6931_v7  ;;  %969 = vmatprep.mubr.f32.mxu1 %v6931_v7  ;;  %vm2081_vm1 = vcmask 1043456   ;;  %s5121_s12 = smov 44   ;;  %vm2019_vm2 = vcmask 359424  }
  0x18   : > { %v5256_v8 = vpack.c.bf16 %v3633_v4, %v3631_v2  ;;  %v5258_v9 = vpack.c.bf16 %v3638_v6, %v3636_v5  ;;  %v3635_v10 = vld [vmem:[%s6919_s1 + $0xe0] sm:$0xff]  ;;  %v3637_v11 = vld [vmem:[%s6919_s1 + $0xf0] sm:$0xff]  ;;  %v3640_v12 = vld [vmem:[%s6919_s1 + $0x108] sm:$0xff]  ;;  %s380_s14 = scalar_select %p379_p10, %s5207_s21, 1  ;;  %vm2077_vm3 = vcmask 687104   ;;  %vm5123_vm4 = vmmov 0  }
  0x19   : > { %4174 = vmatprep.subr.bf16.mxu0 %v5243_v3  ;;  %4294 = vmatprep.subr.bf16.mxu1 %v5243_v3  ;;  %v3642_v13 = vld [vmem:[%s6919_s1 + $0x118] sm:$0xff]  ;;  %v5276_v14 = vpack.c.bf16 %v3637_v11, %v3635_v10  ;;  %v3639_v16 = vld [vmem:[%s6919_s1 + $0x100] sm:$0xff]  ;;  %v3641_v17 = vld [vmem:[%s6919_s1 + $0x110] sm:$0xff]  ;;  %s5124_s30 = smov 48   ;;  %vm2946_vm5 = vcmask 392192   ;;  %vm2973_vm6 = vcmask 654336  }
  0x1a   : > { %4176 = vmatpush1.bf16.msra.mxu0 %v5256_v8  ;;  %4296 = vmatpush1.bf16.msra.mxu1 %v5256_v8  ;;  %v5280_v15 = vpack.c.bf16 %v3642_v13, %v3640_v12  ;;  %v3644_v18 = vld [vmem:[%s6919_s1 + $0x128] sm:$0xff]  ;;  %v3646_v19 = vld [vmem:[%s6919_s1 + $0x138] sm:$0xff]  ;;  %v5296_v20 = vpack.c.bf16 %v3641_v17, %v3639_v16  ;;  %v3643_v22 = vld [vmem:[%s6919_s1 + $0x120] sm:$0xff]  ;;  %s3916_s13 = sshll.u32 %s380_s14, 5  ;;  %vm3392_vm7 = vcmask 982016   ;;  %s377_s14 = sand.u32 1, %s5110_s18  }
  0x1b   : > { %4178 = vmatprep.subr.bf16.mxu0 %v5258_v9  ;;  %4298 = vmatprep.subr.bf16.mxu1 %v5258_v9  ;;  %v5300_v21 = vpack.c.bf16 %v3646_v19, %v3644_v18  ;;  %v3645_v23 = vld [vmem:[%s6919_s1 + $0x130] sm:$0xff]  ;;  %v3648_v24 = vld [vmem:[%s6919_s1 + $0x148] sm:$0xff]  ;;  %v3650_v25 = vld [vmem:[%s6919_s1 + $0x158] sm:$0xff]  ;;  %s5367_s22 = scalar_lea.vmem %s6918_s0, %s3916_s13  ;;  %s378_s13 = scalar_lea.vmem [#allocation2], %s377_s14  ;;  %vm3555_vm8 = vcmask 73728  }
  0x1c   : > { %v5317_v26 = vpack.c.bf16 %v3645_v23, %v3643_v22  ;;  %v5321_v27 = vpack.c.bf16 %v3650_v25, %v3648_v24  ;;  %v3647_v28 = vld [vmem:[%s6919_s1 + $0x140] sm:$0xff]  ;;  %v3649_v29 = vld [vmem:[%s6919_s1 + $0x150] sm:$0xff]  ;;  %v3652_v30 = vld [vmem:[%s6919_s1 + $0x168] sm:$0xff]  ;;  %s3570_s19 = sshll.u32 %s378_s13, 4  ;;  %s3558_s16 = scalar_lea.sflag [#allocation3], %s377_s14  ;;  %s6878_s19 = int_to_ptr.vmem [resolvable:$true] %s3570_s19 }
  0x1d   : > { %v3654_v31 = vld [vmem:[%s6919_s1 + $0x178] sm:$0xff]  ;;  %v5338_v32 = vpack.c.bf16 %v3649_v29, %v3647_v28  ;;  %v3651_v34 = vld [vmem:[%s6919_s1 + $0x160] sm:$0xff]  ;;  %v3653_v35 = vld [vmem:[%s6919_s1 + $0x170] sm:$0xff]  ;;  %s5056_s24 = scalar_lea.vmem %s6878_s19, 16 }
  0x1e   : > { %4180 = vmatpush1.bf16.msra.mxu0 %v5276_v14  ;;  %4300 = vmatpush1.bf16.msra.mxu1 %v5276_v14  ;;  %v5342_v33 = vpack.c.bf16 %v3654_v31, %v3652_v30  ;;  %v389_v36 = vld [vmem:[%s6919_s1 + $0x8] sm:$0xff]  ;;  %v391_v37 = vld [vmem:[%s6919_s1 + $0x18] sm:$0xff]  ;;  %v5358_v38 = vpack.c.bf16 %v3653_v35, %v3651_v34  ;;  %v388_v40 = vld [vmem:[%s6919_s1] sm:$0xff]  ;;  %p5057_p11 = scmp.ne.s32.totalorder %s6878_s19, %s5056_s24 }
  0x1f   : > { %4182 = vmatprep.subr.bf16.mxu0 %v5280_v15  ;;  %4302 = vmatprep.subr.bf16.mxu1 %v5280_v15  ;;  %v5362_v39 = vpack.c.bf16 %v391_v37, %v389_v36  ;;  %v390_v41 = vld [vmem:[%s6919_s1 + $0x10] sm:$0xff]  ;;  %v393_v42 = vld [vmem:[%s6919_s1 + $0x28] sm:$0xff]  ;;  %v395_v43 = vld [vmem:[%s6919_s1 + $0x38] sm:$0xff] }
  0x20   : > { %v5384_v44 = vld [vmem:[%s5367_s22 + $0x8] sm:$0xff]  ;;  %v5386_v45 = vpack.c.bf16 %v390_v41, %v388_v40  ;;  %v5389_v46 = vld [vmem:[%s5367_s22 + $0x10] sm:$0xff]  ;;  %v5393_v47 = vpack.c.bf16 %v395_v43, %v393_v42  ;;  %v392_v48 = vld [vmem:[%s6919_s1 + $0x20] sm:$0xff]  ;;  %p5058_p12 = pnand %p5057_p11, %p5224_p5 }
  0x21   : > { %v394_v49 = vld [vmem:[%s6919_s1 + $0x30] sm:$0xff]  ;;  %v397_v50 = vld [vmem:[%s6919_s1 + $0x48] sm:$0xff]  ;;  %v399_v51 = vld [vmem:[%s6919_s1 + $0x58] sm:$0xff] }
  0x22   : > { %4184 = vmatpush1.bf16.msra.mxu0 %v5296_v20  ;;  %4304 = vmatpush1.bf16.msra.mxu1 %v5296_v20  ;;  %v5413_v52 = vpack.c.bf16 %v394_v49, %v392_v48  ;;  %v5417_v53 = vpack.c.bf16 %v399_v51, %v397_v50  ;;  %v396_v54 = vld [vmem:[%s6919_s1 + $0x40] sm:$0xff]  ;;  %v398_v55 = vld [vmem:[%s6919_s1 + $0x50] sm:$0xff]  ;;  %v401_v56 = vld [vmem:[%s6919_s1 + $0x68] sm:$0xff]  ;;  %p5059_p13 = pneg %p5058_p12 }
  0x23   : > { %4186 = vmatprep.subr.bf16.mxu0 %v5300_v21  ;;  %4306 = vmatprep.subr.bf16.mxu1 %v5300_v21  ;;  %v403_v57 = vld [vmem:[%s6919_s1 + $0x78] sm:$0xff]  ;;  %v5435_v58 = vpack.c.bf16 %v398_v55, %v396_v54  ;;  %v400_v60 = vld [vmem:[%s6919_s1 + $0x60] sm:$0xff]  ;;  %v402_v61 = vld [vmem:[%s6919_s1 + $0x70] sm:$0xff] }
  0x24   : > { %v5439_v59 = vpack.c.bf16 %v403_v57, %v401_v56  ;;  %v405_v62 = vld [vmem:[%s6919_s1 + $0x88] sm:$0xff]  ;;  %v407_v63 = vld [vmem:[%s6919_s1 + $0x98] sm:$0xff]  ;;  %v5455_v0 = vpack.c.bf16 %v402_v61, %v400_v60  ;;  %v404_v2 = vld [vmem:[%s6919_s1 + $0x80] sm:$0xff] }
  0x25   : > { %v5459_v1 = vpack.c.bf16 %v407_v63, %v405_v62  ;;  %v406_v4 = vld [vmem:[%s6919_s1 + $0x90] sm:$0xff]  ;;  %v409_v5 = vld [vmem:[%s6919_s1 + $0xa8] sm:$0xff]  ;;  %v411_v6 = vld [vmem:[%s6919_s1 + $0xb8] sm:$0xff] }
  0x26   : > { %4188 = vmatpush1.bf16.msra.mxu0 %v5317_v26  ;;  %4308 = vmatpush1.bf16.msra.mxu1 %v5317_v26  ;;  %v5475_v10 = vpack.c.bf16 %v406_v4, %v404_v2  ;;  %v5479_v11 = vpack.c.bf16 %v411_v6, %v409_v5  ;;  %v408_v12 = vld [vmem:[%s6919_s1 + $0xa0] sm:$0xff]  ;;  %v410_v13 = vld [vmem:[%s6919_s1 + $0xb0] sm:$0xff]  ;;  %v3658_v16 = vld [vmem:[%s6919_s1 + $0x188] sm:$0xff] }
  0x27   : > { %4190 = vmatprep.subr.bf16.mxu0 %v5321_v27  ;;  %4310 = vmatprep.subr.bf16.mxu1 %v5321_v27  ;;  %v3660_v17 = vld [vmem:[%s6919_s1 + $0x198] sm:$0xff]  ;;  %v5495_v18 = vpack.c.bf16 %v410_v13, %v408_v12  ;;  %v3657_v22 = vld [vmem:[%s6919_s1 + $0x180] sm:$0xff]  ;;  %v3659_v23 = vld [vmem:[%s6919_s1 + $0x190] sm:$0xff] }
  0x28   : > { %v5499_v19 = vpack.c.bf16 %v3660_v17, %v3658_v16  ;;  %v3662_v24 = vld [vmem:[%s6919_s1 + $0x1a8] sm:$0xff]  ;;  %v3664_v25 = vld [vmem:[%s6919_s1 + $0x1b8] sm:$0xff]  ;;  %v5516_v28 = vld [vmem:[%s5367_s22] sm:$0xff]  ;;  %v5518_v29 = vpack.c.bf16 %v3659_v23, %v3657_v22 }
  0x29   : > { %v5522_v30 = vpack.c.bf16 %v3664_v25, %v3662_v24  ;;  %v3661_v31 = vld [vmem:[%s6919_s1 + $0x1a0] sm:$0xff]  ;;  %v3663_v34 = vld [vmem:[%s6919_s1 + $0x1b0] sm:$0xff]  ;;  %v3666_v35 = vld [vmem:[%s6919_s1 + $0x1c8] sm:$0xff] }
  0x2a   : > { %4192 = vmatpush1.bf16.msra.mxu0 %v5338_v32  ;;  %4312 = vmatpush1.bf16.msra.mxu1 %v5338_v32  ;;  %v3668_v36 = vld [vmem:[%s6919_s1 + $0x1d8] sm:$0xff]  ;;  %v5542_v37 = vpack.c.bf16 %v3663_v34, %v3661_v31  ;;  %v3665_v41 = vld [vmem:[%s6919_s1 + $0x1c0] sm:$0xff]  ;;  %v3667_v42 = vld [vmem:[%s6919_s1 + $0x1d0] sm:$0xff] }
  0x2b   : > { %4194 = vmatprep.subr.bf16.mxu0 %v5342_v33  ;;  %4314 = vmatprep.subr.bf16.mxu1 %v5342_v33  ;;  %v5546_v40 = vpack.c.bf16 %v3668_v36, %v3666_v35  ;;  %v3670_v43 = vld [vmem:[%s6919_s1 + $0x1e8] sm:$0xff]  ;;  %v3672_v48 = vld [vmem:[%s6919_s1 + $0x1f8] sm:$0xff]  ;;  %v5564_v49 = vpack.c.bf16 %v3667_v42, %v3665_v41  ;;  %v3669_v51 = vld [vmem:[%s6919_s1 + $0x1e0] sm:$0xff] }
  0x2c   : > { %v5568_v50 = vpack.c.bf16 %v3672_v48, %v3670_v43  ;;  %v3671_v54 = vld [vmem:[%s6919_s1 + $0x1f0] sm:$0xff]  ;;  %v3674_v55 = vld [vmem:[%s6919_s1 + $0x208] sm:$0xff]  ;;  %v3676_v56 = vld [vmem:[%s6919_s1 + $0x218] sm:$0xff] }
  0x2d   : > { %v5584_v57 = vpack.c.bf16 %v3671_v54, %v3669_v51  ;;  %v5588_v60 = vpack.c.bf16 %v3676_v56, %v3674_v55  ;;  %v3673_v61 = vld [vmem:[%s6919_s1 + $0x200] sm:$0xff]  ;;  %v3675_v62 = vld [vmem:[%s6919_s1 + $0x210] sm:$0xff]  ;;  %v3678_v63 = vld [vmem:[%s6919_s1 + $0x228] sm:$0xff] }
  0x2e   : > { %4196 = vmatpush1.bf16.msra.mxu0 %v5358_v38  ;;  %4316 = vmatpush1.bf16.msra.mxu1 %v5358_v38  ;;  %v3680_v2 = vld [vmem:[%s6919_s1 + $0x238] sm:$0xff]  ;;  %v5604_v4 = vpack.c.bf16 %v3675_v62, %v3673_v61  ;;  %v3677_v6 = vld [vmem:[%s6919_s1 + $0x220] sm:$0xff]  ;;  %v3679_v12 = vld [vmem:[%s6919_s1 + $0x230] sm:$0xff] }
  0x2f   : > { %4198 = vmatprep.subr.bf16.mxu0 %v5362_v39  ;;  %4318 = vmatprep.subr.bf16.mxu1 %v5362_v39  ;;  %v5608_v5 = vpack.c.bf16 %v3680_v2, %v3678_v63  ;;  %v3683_v13 = vld [vmem:[%s6919_s1 + $0x248] sm:$0xff]  ;;  %v3685_v16 = vld [vmem:[%s6919_s1 + $0x258] sm:$0xff]  ;;  %v5624_v17 = vpack.c.bf16 %v3679_v12, %v3677_v6  ;;  %v3682_v23 = vld [vmem:[%s6919_s1 + $0x240] sm:$0xff] }
  0x30   : > { %v5628_v22 = vpack.c.bf16 %v3685_v16, %v3683_v13  ;;  %v3684_v24 = vld [vmem:[%s6919_s1 + $0x250] sm:$0xff]  ;;  %v3687_v25 = vld [vmem:[%s6919_s1 + $0x268] sm:$0xff]  ;;  %v3689_v31 = vld [vmem:[%s6919_s1 + $0x278] sm:$0xff] }
  0x31   : > { %3655 = vmatmul.mubr.msk.f32.vlgmr.msra.gmra.mrb[0].mxu0 %vm437_vm0, %v5384_v44  ;;  %3732 = vmatmul.mubr.msk.f32.vlgmr.msra.gmra.mrb[0].mxu1 %vm437_vm0, %v5389_v46  ;;  %v5644_v34 = vpack.c.bf16 %v3684_v24, %v3682_v23  ;;  %v5647_v35 = vld [vmem:[%s5367_s22 + $0x18] sm:$0xff]  ;;  %v5651_v36 = vpack.c.bf16 %v3689_v31, %v3687_v25  ;;  %v3686_v41 = vld [vmem:[%s6919_s1 + $0x260] sm:$0xff]  ;;  %v3688_v42 = vld [vmem:[%s6919_s1 + $0x270] sm:$0xff] }
  0x32   : > { %4200 = vmatpush1.bf16.msra.mxu0 %v5386_v45  ;;  %4320 = vmatpush1.bf16.msra.mxu1 %v5386_v45  ;;  %v3691_v43 = vld [vmem:[%s6919_s1 + $0x288] sm:$0xff]  ;;  %v3693_v48 = vld [vmem:[%s6919_s1 + $0x298] sm:$0xff]  ;;  %v5671_v51 = vpack.c.bf16 %v3688_v42, %v3686_v41  ;;  %v3690_v55 = vld [vmem:[%s6919_s1 + $0x280] sm:$0xff] }
  0x33   : > { %4202 = vmatprep.subr.bf16.mxu0 %v5393_v47  ;;  %4322 = vmatprep.subr.bf16.mxu1 %v5393_v47  ;;  %v5675_v54 = vpack.c.bf16 %v3693_v48, %v3691_v43  ;;  %v3692_v56 = vld [vmem:[%s6919_s1 + $0x290] sm:$0xff]  ;;  %v3695_v61 = vld [vmem:[%s6919_s1 + $0x2a8] sm:$0xff]  ;;  %v3697_v62 = vld [vmem:[%s6919_s1 + $0x2b8] sm:$0xff] }
  0x34   : > { %579 = vmatprep.mubr.f32.mxu0 %v6931_v7  ;;  %1040 = vmatprep.mubr.f32.mxu1 %v6931_v7  ;;  %v5693_v63 = vpack.c.bf16 %v3692_v56, %v3690_v55  ;;  %v5697_v2 = vpack.c.bf16 %v3697_v62, %v3695_v61  ;;  %v3694_v6 = vld [vmem:[%s6919_s1 + $0x2a0] sm:$0xff]  ;;  %v3696_v12 = vld [vmem:[%s6919_s1 + $0x2b0] sm:$0xff]  ;;  %v3699_v13 = vld [vmem:[%s6919_s1 + $0x2c8] sm:$0xff] }
  0x35   : > { %v3701_v16 = vld [vmem:[%s6919_s1 + $0x2d8] sm:$0xff]  ;;  %v5713_v23 = vpack.c.bf16 %v3696_v12, %v3694_v6  ;;  %v3698_v25 = vld [vmem:[%s6919_s1 + $0x2c0] sm:$0xff]  ;;  %v3700_v31 = vld [vmem:[%s6919_s1 + $0x2d0] sm:$0xff] }
  0x36   : > { %4204 = vmatpush1.bf16.msra.mxu0 %v5413_v52  ;;  %4324 = vmatpush1.bf16.msra.mxu1 %v5413_v52  ;;  %v5717_v24 = vpack.c.bf16 %v3701_v16, %v3699_v13  ;;  %v3703_v41 = vld [vmem:[%s6919_s1 + $0x2e8] sm:$0xff]  ;;  %v3705_v42 = vld [vmem:[%s6919_s1 + $0x2f8] sm:$0xff]  ;;  %v5733_v43 = vpack.c.bf16 %v3700_v31, %v3698_v25  ;;  %v3702_v55 = vld [vmem:[%s6919_s1 + $0x2e0] sm:$0xff] }
  0x37   : > { %4206 = vmatprep.subr.bf16.mxu0 %v5417_v53  ;;  %4326 = vmatprep.subr.bf16.mxu1 %v5417_v53  ;;  %v5737_v48 = vpack.c.bf16 %v3705_v42, %v3703_v41  ;;  %v3704_v56 = vld [vmem:[%s6919_s1 + $0x2f0] sm:$0xff]  ;;  %v3708_v61 = vld [vmem:[%s6919_s1 + $0x308] sm:$0xff]  ;;  %v3710_v62 = vld [vmem:[%s6919_s1 + $0x318] sm:$0xff]  ;;  %v5772_v41 = vrot.slane %v5516_v28, 1 }
  0x38   : > { %v5753_v6 = vpack.c.bf16 %v3704_v56, %v3702_v55  ;;  %v5757_v12 = vpack.c.bf16 %v3710_v62, %v3708_v61  ;;  %v3707_v13 = vld [vmem:[%s6919_s1 + $0x300] sm:$0xff]  ;;  %v3709_v16 = vld [vmem:[%s6919_s1 + $0x310] sm:$0xff]  ;;  %v3712_v25 = vld [vmem:[%s6919_s1 + $0x328] sm:$0xff] }
  0x39   : > { %v3714_v31 = vld [vmem:[%s6919_s1 + $0x338] sm:$0xff]  ;;  %v5776_v42 = vpack.c.bf16 %v3709_v16, %v3707_v13  ;;  %v3711_v56 = vld [vmem:[%s6919_s1 + $0x320] sm:$0xff]  ;;  %v3716_v61 = vld [vmem:[%s6919_s1 + $0x348] sm:$0xff] }
  0x3a   : > { %4208 = vmatpush1.bf16.msra.mxu0 %v5435_v58  ;;  %4328 = vmatpush1.bf16.msra.mxu1 %v5435_v58  ;;  %v5780_v55 = vpack.c.bf16 %v3714_v31, %v3712_v25  ;;  %v3718_v62 = vld [vmem:[%s6919_s1 + $0x358] sm:$0xff]  ;;  %v3715_v25 = vld [vmem:[%s6919_s1 + $0x340] sm:$0xff]  ;;  %v3717_v31 = vld [vmem:[%s6919_s1 + $0x350] sm:$0xff] }
  0x3b   : > { %4210 = vmatprep.subr.bf16.mxu0 %v5439_v59  ;;  %4330 = vmatprep.subr.bf16.mxu1 %v5439_v59  ;;  %6949 = vst [vmem:[#allocation7_spill] sm:$0xff] %v5776_v42  ;;  %v5804_v16 = vpack.c.bf16 %v3718_v62, %v3716_v61  ;;  %v5822_v61 = vpack.c.bf16 %v3717_v31, %v3715_v25  ;;  %v3726_v25 = vld [vmem:[%s6919_s1 + $0x398] sm:$0xff] }
  0x3c   : > { %6950 = vst [vmem:[#allocation8_spill] sm:$0xff] %v5780_v55 }
  0x3d   : > { %6952 = vst [vmem:[#allocation10_spill] sm:$0xff] %v5804_v16  ;;  %6954 = vst [vmem:[#allocation11_spill] sm:$0xff] %v5822_v61 }
  0x3e   : > { %4212 = vmatpush1.bf16.msra.mxu0 %v5455_v0  ;;  %4332 = vmatpush1.bf16.msra.mxu1 %v5455_v0 }
  0x3f   : > { %4214 = vmatprep.subr.bf16.mxu0 %v5459_v1  ;;  %4334 = vmatprep.subr.bf16.mxu1 %v5459_v1 }
  0x42   : > { %4216 = vmatpush1.bf16.msra.mxu0 %v5475_v10  ;;  %4336 = vmatpush1.bf16.msra.mxu1 %v5475_v10 }
  0x43   : > { %4218 = vmatprep.subr.bf16.mxu0 %v5479_v11  ;;  %4338 = vmatprep.subr.bf16.mxu1 %v5479_v11 }
  0x46   : > { %4220 = vmatpush1.bf16.msra.mxu0 %v5495_v18  ;;  %4340 = vmatpush1.bf16.msra.mxu1 %v5495_v18 }
  0x47   : > { %4222 = vmatprep.subr.bf16.mxu0 %v5499_v19  ;;  %4342 = vmatprep.subr.bf16.mxu1 %v5499_v19 }
  0x49   : > { %3656 = vmatmul.mubr.msk.f32.vlgmr.msra.gmra.mrb[0].mxu0 %vm437_vm0, %v5516_v28  ;;  %3733 = vmatmul.mubr.msk.f32.vlgmr.msra.gmra.mrb[0].mxu1 %vm437_vm0, %v5384_v44  ;;  %v3713_v28 = vld [vmem:[%s6919_s1 + $0x330] sm:$0xff] }
  0x4a   : > { %4224 = vmatpush1.bf16.msra.mxu0 %v5518_v29  ;;  %4344 = vmatpush1.bf16.msra.mxu1 %v5518_v29  ;;  %v5800_v13 = vpack.c.bf16 %v3713_v28, %v3711_v56  ;;  %v3722_v56 = vld [vmem:[%s6919_s1 + $0x378] sm:$0xff]  ;;  %v6953_v28 = vmov 0.0  }
  0x4b   : > { %4226 = vmatprep.subr.bf16.mxu0 %v5522_v30  ;;  %4346 = vmatprep.subr.bf16.mxu1 %v5522_v30 }
  0x4c   : > { %678 = vmatprep.mubr.f32.mxu0 %v6931_v7  ;;  %1111 = vmatprep.mubr.f32.mxu1 %v6931_v7  ;;  %6951 = vst [vmem:[#allocation9_spill] sm:$0xff] %v5800_v13 }
  0x4e   : > { %4228 = vmatpush1.bf16.msra.mxu0 %v5542_v37  ;;  %4348 = vmatpush1.bf16.msra.mxu1 %v5542_v37 }
  0x4f   : > { %4230 = vmatprep.subr.bf16.mxu0 %v5546_v40  ;;  %4350 = vmatprep.subr.bf16.mxu1 %v5546_v40 }
  0x52   : > { %4232 = vmatpush1.bf16.msra.mxu0 %v5564_v49  ;;  %4352 = vmatpush1.bf16.msra.mxu1 %v5564_v49 }
  0x53   : > { %4234 = vmatprep.subr.bf16.mxu0 %v5568_v50  ;;  %4354 = vmatprep.subr.bf16.mxu1 %v5568_v50 }
  0x56   : > { %4236 = vmatpush1.bf16.msra.mxu0 %v5584_v57  ;;  %4356 = vmatpush1.bf16.msra.mxu1 %v5584_v57 }
  0x57   : > { %4238 = vmatprep.subr.bf16.mxu0 %v5588_v60  ;;  %4358 = vmatprep.subr.bf16.mxu1 %v5588_v60 }
  0x5a   : > { %4240 = vmatpush1.bf16.msra.mxu0 %v5604_v4  ;;  %4360 = vmatpush1.bf16.msra.mxu1 %v5604_v4 }
  0x5b   : > { %4242 = vmatprep.subr.bf16.mxu0 %v5608_v5  ;;  %4362 = vmatprep.subr.bf16.mxu1 %v5608_v5 }
  0x5e   : > { %4244 = vmatpush1.bf16.msra.mxu0 %v5624_v17  ;;  %4364 = vmatpush1.bf16.msra.mxu1 %v5624_v17 }
  0x5f   : > { %4246 = vmatprep.subr.bf16.mxu0 %v5628_v22  ;;  %4366 = vmatprep.subr.bf16.mxu1 %v5628_v22 }
  0x61   : > { %3681 = vmatmul.mubr.msk.f32.vlgmr.msra.gmra.mrb[0].mxu0 %vm437_vm0, %v5389_v46  ;;  %3734 = vmatmul.mubr.msk.f32.vlgmr.msra.gmra.mrb[0].mxu1 %vm437_vm0, %v5647_v35 }
  0x62   : > { %4248 = vmatpush1.bf16.msra.mxu0 %v5644_v34  ;;  %4368 = vmatpush1.bf16.msra.mxu1 %v5644_v34 }
  0x63   : > { %4250 = vmatprep.subr.bf16.mxu0 %v5651_v36  ;;  %4370 = vmatprep.subr.bf16.mxu1 %v5651_v36 }
  0x64   : > { %779 = vmatprep.mubr.f32.mxu0 %v6931_v7  ;;  %1184 = vmatprep.mubr.f32.mxu1 %v6931_v7  ;;  %v3720_v7 = vld [vmem:[%s6919_s1 + $0x368] sm:$0xff] }
  0x65   : > { %v5826_v62 = vpack.c.bf16 %v3722_v56, %v3720_v7  ;;  %v3723_v56 = vld [vmem:[%s6919_s1 + $0x380] sm:$0xff] }
  0x66   : > { %4252 = vmatpush1.bf16.msra.mxu0 %v5671_v51  ;;  %4372 = vmatpush1.bf16.msra.mxu1 %v5671_v51 }
  0x67   : > { %4254 = vmatprep.subr.bf16.mxu0 %v5675_v54  ;;  %4374 = vmatprep.subr.bf16.mxu1 %v5675_v54  ;;  %6955 = vst [vmem:[#allocation12_spill] sm:$0xff] %v5826_v62 }
  0x6a   : > { %4256 = vmatpush1.bf16.msra.mxu0 %v5693_v63  ;;  %4376 = vmatpush1.bf16.msra.mxu1 %v5693_v63 }
  0x6b   : > { %4258 = vmatprep.subr.bf16.mxu0 %v5697_v2  ;;  %4378 = vmatprep.subr.bf16.mxu1 %v5697_v2 }
  0x6e   : > { %4260 = vmatpush1.bf16.msra.mxu0 %v5713_v23  ;;  %4380 = vmatpush1.bf16.msra.mxu1 %v5713_v23 }
  0x6f   : > { %4262 = vmatprep.subr.bf16.mxu0 %v5717_v24  ;;  %4382 = vmatprep.subr.bf16.mxu1 %v5717_v24 }
  0x72   : > { %4264 = vmatpush1.bf16.msra.mxu0 %v5733_v43  ;;  %4384 = vmatpush1.bf16.msra.mxu1 %v5733_v43 }
  0x73   : > { %4266 = vmatprep.subr.bf16.mxu0 %v5737_v48  ;;  %4386 = vmatprep.subr.bf16.mxu1 %v5737_v48 }
  0x76   : > { %4268 = vmatpush1.bf16.msra.mxu0 %v5753_v6  ;;  %4388 = vmatpush1.bf16.msra.mxu1 %v5753_v6 }
  0x77   : > { %4270 = vmatprep.subr.bf16.mxu0 %v5757_v12  ;;  %4390 = vmatprep.subr.bf16.mxu1 %v5757_v12 }
  0x79   : > { %3706 = vmatmul.mubr.msk.f32.vlgmr.msra.gmra.mrb[0].mxu0 %vm437_vm0, %v5647_v35  ;;  %3735 = vmatmul.mubr.msk.f32.vlgmr.msra.gmra.mrb[0].mxu1 %vm437_vm0, %v5772_v41 }
  0x7a   : > { %4272 = vmatpush1.bf16.msra.mxu0 %v5776_v42  ;;  %4392 = vmatpush1.bf16.msra.mxu1 %v5776_v42  ;;  %v3721_v42 = vld [vmem:[%s6919_s1 + $0x370] sm:$0xff] }
  0x7b   : > { %4274 = vmatprep.subr.bf16.mxu0 %v5780_v55  ;;  %4394 = vmatprep.subr.bf16.mxu1 %v5780_v55  ;;  %v3719_v55 = vld [vmem:[%s6919_s1 + $0x360] sm:$0xff] }
  0x7c   : > { %880 = vmatprep.mubr.f32.mxu0 %v6953_v28  ;;  %1260 = vmatprep.mubr.f32.mxu1 %v6953_v28  ;;  %v5842_v7 = vpack.c.bf16 %v3721_v42, %v3719_v55  ;;  %v3730_v42 = vld [vmem:[%s6919_s1 + $0x3b8] sm:$0xff] }
  0x7e   : > { %4276 = vmatpush1.bf16.msra.mxu0 %v5800_v13  ;;  %4396 = vmatpush1.bf16.msra.mxu1 %v5800_v13  ;;  %v3724_v13 = vld [vmem:[%s6919_s1 + $0x388] sm:$0xff] }
  0x7f   : > { %4278 = vmatprep.subr.bf16.mxu0 %v5804_v16  ;;  %4398 = vmatprep.subr.bf16.mxu1 %v5804_v16  ;;  %v5846_v31 = vpack.c.bf16 %v3726_v25, %v3724_v13  ;;  %v3725_v16 = vld [vmem:[%s6919_s1 + $0x390] sm:$0xff]  ;;  %v3727_v25 = vld [vmem:[%s6919_s1 + $0x3a0] sm:$0xff] }
  0x80   : > { %v5862_v55 = vpack.c.bf16 %v3725_v16, %v3723_v56 }
  0x82   : > { %4280 = vmatpush1.bf16.msra.mxu0 %v5822_v61  ;;  %4400 = vmatpush1.bf16.msra.mxu1 %v5822_v61  ;;  %v3728_v61 = vld [vmem:[%s6919_s1 + $0x3a8] sm:$0xff] }
  0x83   : > { %4282 = vmatprep.subr.bf16.mxu0 %v5826_v62  ;;  %4402 = vmatprep.subr.bf16.mxu1 %v5826_v62  ;;  %v5866_v13 = vpack.c.bf16 %v3730_v42, %v3728_v61  ;;  %v3729_v62 = vld [vmem:[%s6919_s1 + $0x3b0] sm:$0xff]  ;;  %v5881_v61 = vrot.slane %v5384_v44, 1  ;;  %v3754_v44 = vld [vmem:[%s6921_s3 + $0xe8] sm:$0xff] }
  0x84   : > { %v5876_v16 = vpack.c.bf16 %v3729_v62, %v3727_v25  ;;  %v2033_v42 = vld [vmem:[%s6921_s3 + $0x8] sm:$0xff] }
  0x86   : > { %4284 = vmatpush1.bf16.msra.mxu0 %v5842_v7  ;;  %4404 = vmatpush1.bf16.msra.mxu1 %v5842_v7 }
  0x87   : > { %4286 = vmatprep.subr.bf16.mxu0 %v5846_v31  ;;  %4406 = vmatprep.subr.bf16.mxu1 %v5846_v31 }
  0x8a   : > { %4288 = vmatpush1.bf16.msra.mxu0 %v5862_v55  ;;  %4408 = vmatpush1.bf16.msra.mxu1 %v5862_v55 }
  0x8b   : > { %4290 = vmatprep.subr.bf16.mxu0 %v5866_v13  ;;  %4410 = vmatprep.subr.bf16.mxu1 %v5866_v13 }
  0x8e   : > { %4292 = vmatpush1.bf16.msra.mxu0 %v5876_v16  ;;  %4412 = vmatpush1.bf16.msra.mxu1 %v5876_v16 }
  0x8f   : > { %4414 = vmatprep.subr.bf16.mxu0 %v5243_v3  ;;  %4534 = vmatprep.subr.bf16.mxu1 %v5243_v3  ;;  %v1561_v3 = vrot.slane %v5389_v46, 1 }
  0x91   : > { %3731 = vmatmul.mubr.msk.f32.vlgmr.msra.gmra.mrb[0].mxu0 %vm437_vm0, %v5772_v41  ;;  %3736 = vmatmul.mubr.msk.f32.vlgmr.msra.gmra.mrb[0].mxu1 %vm437_vm0, %v5881_v61 }
  0x92   : > { %4416 = vmatpush1.bf16.msra.mxu0 %v5256_v8  ;;  %4536 = vmatpush1.bf16.msra.mxu1 %v5256_v8  ;;  %v6956_v8 = vld [vmem:[#allocation7_spill] sm:$0xff] }
  0x93   : > { %4418 = vmatprep.subr.bf16.mxu0 %v5258_v9  ;;  %4538 = vmatprep.subr.bf16.mxu1 %v5258_v9  ;;  %v6957_v9 = vld [vmem:[#allocation8_spill] sm:$0xff] }
  0x94   : > { %1337 = vmatprep.mubr.f32.mxu0 %v6953_v28  ;;  %1705 = vmatprep.mubr.f32.mxu1 %v6953_v28 }
  0x96   : > { %4420 = vmatpush1.bf16.msra.mxu0 %v5276_v14  ;;  %4540 = vmatpush1.bf16.msra.mxu1 %v5276_v14  ;;  %v6958_v14 = vld [vmem:[#allocation9_spill] sm:$0xff] }
  0x97   : > { %4422 = vmatprep.subr.bf16.mxu0 %v5280_v15  ;;  %4542 = vmatprep.subr.bf16.mxu1 %v5280_v15  ;;  %v6959_v15 = vld [vmem:[#allocation10_spill] sm:$0xff] }
  0x9a   : > { %4424 = vmatpush1.bf16.msra.mxu0 %v5296_v20  ;;  %4544 = vmatpush1.bf16.msra.mxu1 %v5296_v20  ;;  %v6960_v20 = vld [vmem:[#allocation11_spill] sm:$0xff] }
  0x9b   : > { %4426 = vmatprep.subr.bf16.mxu0 %v5300_v21  ;;  %4546 = vmatprep.subr.bf16.mxu1 %v5300_v21  ;;  %v6961_v21 = vld [vmem:[#allocation12_spill] sm:$0xff] }
  0x9e   : > { %4428 = vmatpush1.bf16.msra.mxu0 %v5317_v26  ;;  %4548 = vmatpush1.bf16.msra.mxu1 %v5317_v26  ;;  %v3748_v26 = vld [vmem:[%s6921_s3 + $0xb8] sm:$0xff] }
  0x9f   : > { %4430 = vmatprep.subr.bf16.mxu0 %v5321_v27  ;;  %4550 = vmatprep.subr.bf16.mxu1 %v5321_v27  ;;  %v3750_v27 = vld [vmem:[%s6921_s3 + $0xc8] sm:$0xff] }
  0xa2   : > { %4432 = vmatpush1.bf16.msra.mxu0 %v5338_v32  ;;  %4552 = vmatpush1.bf16.msra.mxu1 %v5338_v32  ;;  %v4653_v32 = vpack.c.bf16 %v3750_v27, %v3748_v26 }
  0xa3   : > { %4434 = vmatprep.subr.bf16.mxu0 %v5342_v33  ;;  %4554 = vmatprep.subr.bf16.mxu1 %v5342_v33  ;;  %v3747_v33 = vld [vmem:[%s6921_s3 + $0xb0] sm:$0xff] }
  0xa6   : > { %4436 = vmatpush1.bf16.msra.mxu0 %v5358_v38  ;;  %4556 = vmatpush1.bf16.msra.mxu1 %v5358_v38  ;;  %v3749_v38 = vld [vmem:[%s6921_s3 + $0xc0] sm:$0xff] }
  0xa7   : > { %4438 = vmatprep.subr.bf16.mxu0 %v5362_v39  ;;  %4558 = vmatprep.subr.bf16.mxu1 %v5362_v39  ;;  %v3752_v39 = vld [vmem:[%s6921_s3 + $0xd8] sm:$0xff] }
  0xa9   : > { %3737 = vmatmul.mubr.msk.f32.vlgmr.msra.gmra.mrb[2].mxu0 %vm437_vm0, %v5647_v35  ;;  %3742 = vmatmul.mubr.msk.f32.vlgmr.msra.gmra.mrb[2].mxu1 %vm437_vm0, %v5772_v41 }
  0xaa   : > { %4440 = vmatpush1.bf16.msra.mxu0 %v5386_v45  ;;  %4560 = vmatpush1.bf16.msra.mxu1 %v5386_v45  ;;  %v1929_v45 = vrot.slane %v5647_v35, 1 }
  0xab   : > { %4442 = vmatprep.subr.bf16.mxu0 %v5393_v47  ;;  %4562 = vmatprep.subr.bf16.mxu1 %v5393_v47  ;;  %v4657_v47 = vpack.c.bf16 %v3754_v44, %v3752_v39 }
  0xac   : > { %1408 = vmatprep.mubr.f32.mxu0 %v6953_v28  ;;  %1776 = vmatprep.mubr.f32.mxu1 %v6953_v28 }
  0xae   : > { %4444 = vmatpush1.bf16.msra.mxu0 %v5413_v52  ;;  %4564 = vmatpush1.bf16.msra.mxu1 %v5413_v52  ;;  %v3751_v52 = vld [vmem:[%s6921_s3 + $0xd0] sm:$0xff] }
  0xaf   : > { %4446 = vmatprep.subr.bf16.mxu0 %v5417_v53  ;;  %4566 = vmatprep.subr.bf16.mxu1 %v5417_v53  ;;  %v3753_v53 = vld [vmem:[%s6921_s3 + $0xe0] sm:$0xff] }
  0xb2   : > { %4448 = vmatpush1.bf16.msra.mxu0 %v5435_v58  ;;  %4568 = vmatpush1.bf16.msra.mxu1 %v5435_v58  ;;  %v3756_v58 = vld [vmem:[%s6921_s3 + $0xf8] sm:$0xff] }
  0xb3   : > { %4450 = vmatprep.subr.bf16.mxu0 %v5439_v59  ;;  %4570 = vmatprep.subr.bf16.mxu1 %v5439_v59  ;;  %v3758_v59 = vld [vmem:[%s6921_s3 + $0x108] sm:$0xff] }
  0xb6   : > { %4452 = vmatpush1.bf16.msra.mxu0 %v5455_v0  ;;  %4572 = vmatpush1.bf16.msra.mxu1 %v5455_v0  ;;  %v4659_v0 = vpack.c.bf16 %v3753_v53, %v3751_v52  ;;  %v2034_v52 = vld [vmem:[%s6921_s3 + $0x10] sm:$0xff] }
  0xb7   : > { %4454 = vmatprep.subr.bf16.mxu0 %v5459_v1  ;;  %4574 = vmatprep.subr.bf16.mxu1 %v5459_v1  ;;  %v4661_v1 = vpack.c.bf16 %v3758_v59, %v3756_v58  ;;  %v2037_v58 = vld [vmem:[%s6921_s3 + $0x28] sm:$0xff]  ;;  %v2039_v59 = vld [vmem:[%s6921_s3 + $0x38] sm:$0xff] }
  0xba   : > { %4456 = vmatpush1.bf16.msra.mxu0 %v5475_v10  ;;  %4576 = vmatpush1.bf16.msra.mxu1 %v5475_v10  ;;  %v3755_v10 = vld [vmem:[%s6921_s3 + $0xf0] sm:$0xff] }
  0xbb   : > { %4458 = vmatprep.subr.bf16.mxu0 %v5479_v11  ;;  %4578 = vmatprep.subr.bf16.mxu1 %v5479_v11  ;;  %v3757_v11 = vld [vmem:[%s6921_s3 + $0x100] sm:$0xff] }
  0xbe   : > { %4460 = vmatpush1.bf16.msra.mxu0 %v5495_v18  ;;  %4580 = vmatpush1.bf16.msra.mxu1 %v5495_v18  ;;  %v4663_v18 = vpack.c.bf16 %v3757_v11, %v3755_v10 }
  0xbf   : > { %4462 = vmatprep.subr.bf16.mxu0 %v5499_v19  ;;  %4582 = vmatprep.subr.bf16.mxu1 %v5499_v19  ;;  %v891_v19 = vlaneseq }
  0xc1   : > { %3738 = vmatmul.mubr.msk.f32.vlgmr.msra.gmra.mrb[2].mxu0 %vm437_vm0, %v5389_v46  ;;  %3743 = vmatmul.mubr.msk.f32.vlgmr.msra.gmra.mrb[2].mxu1 %vm437_vm0, %v5647_v35  ;;  %v4655_v46 = vpack.c.bf16 %v3749_v38, %v3747_v33  ;;  %v3763_v35 = vld [vmem:[%s6921_s3 + $0x130] sm:$0xff] }
  0xc2   : > { %4464 = vmatpush1.bf16.msra.mxu0 %v5518_v29  ;;  %4584 = vmatpush1.bf16.msra.mxu1 %v5518_v29  ;;  %v6076_v29 = vshrl.u32 %v891_v19, 7  ;;  %v2036_v19 = vld [vmem:[%s6921_s3 + $0x20] sm:$0xff] }
  0xc3   : > { %4466 = vmatprep.subr.bf16.mxu0 %v5522_v30  ;;  %4586 = vmatprep.subr.bf16.mxu1 %v5522_v30  ;;  %v3760_v30 = vld [vmem:[%s6921_s3 + $0x118] sm:$0xff] }
  0xc4   : > { %1479 = vmatprep.mubr.f32.mxu0 %v6953_v28  ;;  %1847 = vmatprep.mubr.f32.mxu1 %v6953_v28 }
  0xc6   : > { %4468 = vmatpush1.bf16.msra.mxu0 %v5542_v37  ;;  %4588 = vmatpush1.bf16.msra.mxu1 %v5542_v37  ;;  %v3762_v37 = vld [vmem:[%s6921_s3 + $0x128] sm:$0xff] }
  0xc7   : > { %4470 = vmatprep.subr.bf16.mxu0 %v5546_v40  ;;  %4590 = vmatprep.subr.bf16.mxu1 %v5546_v40  ;;  %v4665_v40 = vpack.c.bf16 %v3762_v37, %v3760_v30  ;;  %v2038_v30 = vld [vmem:[%s6921_s3 + $0x30] sm:$0xff]  ;;  %v2041_v37 = vld [vmem:[%s6921_s3 + $0x48] sm:$0xff] }
  0xca   : > { %4472 = vmatpush1.bf16.msra.mxu0 %v5564_v49  ;;  %4592 = vmatpush1.bf16.msra.mxu1 %v5564_v49  ;;  %v3759_v49 = vld [vmem:[%s6921_s3 + $0x110] sm:$0xff] }
  0xcb   : > { %4474 = vmatprep.subr.bf16.mxu0 %v5568_v50  ;;  %4594 = vmatprep.subr.bf16.mxu1 %v5568_v50  ;;  %v3761_v50 = vld [vmem:[%s6921_s3 + $0x120] sm:$0xff] }
  0xce   : > { %4476 = vmatpush1.bf16.msra.mxu0 %v5584_v57  ;;  %4596 = vmatpush1.bf16.msra.mxu1 %v5584_v57  ;;  %v893_v57 = vsub.s32 0, %v6076_v29 }
  0xcf   : > { %4478 = vmatprep.subr.bf16.mxu0 %v5588_v60  ;;  %4598 = vmatprep.subr.bf16.mxu1 %v5588_v60  ;;  %v4667_v60 = vpack.c.bf16 %v3761_v50, %v3759_v49  ;;  %v4679_v49 = vpack.c.bf16 %v2038_v30, %v2036_v19  ;;  %v3810_v19 = vld [vmem:[%s6921_s3 + $0x218] sm:$0xff]  ;;  %v3812_v30 = vld [vmem:[%s6921_s3 + $0x228] sm:$0xff] }
  0xd2   : > { %4480 = vmatpush1.bf16.msra.mxu0 %v5604_v4  ;;  %4600 = vmatpush1.bf16.msra.mxu1 %v5604_v4  ;;  %v889_v4 = vld [vmem:[%s6920_s2] sm:$0x3] }
  0xd3   : > { %4482 = vmatprep.subr.bf16.mxu0 %v5608_v5  ;;  %4602 = vmatprep.subr.bf16.mxu1 %v5608_v5  ;;  %v897_v5 = vsub.s32 1, %v6076_v29 }
  0xd6   : > { %4484 = vmatpush1.bf16.msra.mxu0 %v5624_v17  ;;  %4604 = vmatpush1.bf16.msra.mxu1 %v5624_v17  ;;  %v3764_v17 = vld [vmem:[%s6921_s3 + $0x138] sm:$0xff] }
  0xd7   : > { %4486 = vmatprep.subr.bf16.mxu0 %v5628_v22  ;;  %4606 = vmatprep.subr.bf16.mxu1 %v5628_v22  ;;  %v3766_v22 = vld [vmem:[%s6921_s3 + $0x148] sm:$0xff] }
  0xd9   : > { %3739 = vmatmul.mubr.msk.f32.vlgmr.msra.gmra.mrb[2].mxu0 %vm437_vm0, %v5772_v41  ;;  %3744 = vmatmul.mubr.msk.f32.vlgmr.msra.gmra.mrb[2].mxu1 %vm437_vm0, %v5881_v61 }
  0xda   : > { %4488 = vmatpush1.bf16.msra.mxu0 %v5644_v34  ;;  %4608 = vmatpush1.bf16.msra.mxu1 %v5644_v34  ;;  %v4669_v34 = vpack.c.bf16 %v3766_v22, %v3764_v17  ;;  %v2045_v17 = vld [vmem:[%s6921_s3 + $0x68] sm:$0xff]  ;;  %v2047_v22 = vld [vmem:[%s6921_s3 + $0x78] sm:$0xff] }
  0xdb   : > { %4490 = vmatprep.subr.bf16.mxu0 %v5651_v36  ;;  %4610 = vmatprep.subr.bf16.mxu1 %v5651_v36  ;;  %v3765_v36 = vld [vmem:[%s6921_s3 + $0x140] sm:$0xff] }
  0xdc   : > { %1552 = vmatprep.mubr.f32.mxu0 %v6953_v28  ;;  %1920 = vmatprep.mubr.f32.mxu1 %v6953_v28 }
  0xde   : > { %4492 = vmatpush1.bf16.msra.mxu0 %v5671_v51  ;;  %4612 = vmatpush1.bf16.msra.mxu1 %v5671_v51  ;;  %v894_v51 = vrot.slane %v889_v4, %v893_v57 }
  0xdf   : > { %4494 = vmatprep.subr.bf16.mxu0 %v5675_v54  ;;  %4614 = vmatprep.subr.bf16.mxu1 %v5675_v54  ;;  %v4671_v54 = vpack.c.bf16 %v3765_v36, %v3763_v35  ;;  %v6175_v35 = vpack.c.bf16 %v2047_v22, %v2045_v17  ;;  %v2044_v36 = vld [vmem:[%s6921_s3 + $0x60] sm:$0xff] }
  0xe2   : > { %4496 = vmatpush1.bf16.msra.mxu0 %v5693_v63  ;;  %4616 = vmatpush1.bf16.msra.mxu1 %v5693_v63  ;;  %v898_v63 = vrot.slane %v889_v4, %v897_v5  ;;  %v2042_v4 = vld [vmem:[%s6921_s3 + $0x50] sm:$0xff] }
  0xe3   : > { %4498 = vmatprep.subr.bf16.mxu0 %v5697_v2  ;;  %4618 = vmatprep.subr.bf16.mxu1 %v5697_v2 }
  0xe6   : > { %4500 = vmatpush1.bf16.msra.mxu0 %v5713_v23  ;;  %4620 = vmatpush1.bf16.msra.mxu1 %v5713_v23 }
  0xe7   : > { %4502 = vmatprep.subr.bf16.mxu0 %v5717_v24  ;;  %4622 = vmatprep.subr.bf16.mxu1 %v5717_v24 }
  0xea   : > { %4504 = vmatpush1.bf16.msra.mxu0 %v5733_v43  ;;  %4624 = vmatpush1.bf16.msra.mxu1 %v5733_v43 }
  0xeb   : > { %4506 = vmatprep.subr.bf16.mxu0 %v5737_v48  ;;  %4626 = vmatprep.subr.bf16.mxu1 %v5737_v48 }
  0xee   : > { %4508 = vmatpush1.bf16.msra.mxu0 %v5753_v6  ;;  %4628 = vmatpush1.bf16.msra.mxu1 %v5753_v6 }
  0xef   : > { %4510 = vmatprep.subr.bf16.mxu0 %v5757_v12  ;;  %4630 = vmatprep.subr.bf16.mxu1 %v5757_v12  ;;  %v3768_v12 = vld [vmem:[%s6921_s3 + $0x158] sm:$0xf] }
  0xf1   : > { %3740 = vmatmul.mubr.msk.f32.vlgmr.msra.gmra.mrb[2].mxu0 %vm437_vm0, %v5881_v61  ;;  %3745 = vmatmul.mubr.msk.f32.vlgmr.msra.gmra.mrb[2].mxu1 %vm437_vm0, %v1561_v3 }
  0xf2   : > { %4512 = vmatpush1.bf16.msra.mxu0 %v6956_v8  ;;  %4632 = vmatpush1.bf16.msra.mxu1 %v6956_v8 }
  0xf3   : > { %4514 = vmatprep.subr.bf16.mxu0 %v6957_v9  ;;  %4634 = vmatprep.subr.bf16.mxu1 %v6957_v9 }
  0xf4   : > { %1628 = vmatprep.mubr.f32.mxu0 %v6953_v28  ;;  %1996 = vmatprep.mubr.f32.mxu1 %v6953_v28 }
  0xf6   : > { %4516 = vmatpush1.bf16.msra.mxu0 %v6958_v14  ;;  %4636 = vmatpush1.bf16.msra.mxu1 %v6958_v14 }
  0xf7   : > { %4518 = vmatprep.subr.bf16.mxu0 %v6959_v15  ;;  %4638 = vmatprep.subr.bf16.mxu1 %v6959_v15 }
  0xfa   : > { %4520 = vmatpush1.bf16.msra.mxu0 %v6960_v20  ;;  %4640 = vmatpush1.bf16.msra.mxu1 %v6960_v20 }
  0xfb   : > { %4522 = vmatprep.subr.bf16.mxu0 %v6961_v21  ;;  %4642 = vmatprep.subr.bf16.mxu1 %v6961_v21 }
  0xfe   : > { %4524 = vmatpush1.bf16.msra.mxu0 %v5842_v7  ;;  %4644 = vmatpush1.bf16.msra.mxu1 %v5842_v7  ;;  %v3767_v7 = vld [vmem:[%s6921_s3 + $0x150] sm:$0xf] }
  0xff   : > { %4526 = vmatprep.subr.bf16.mxu0 %v5846_v31  ;;  %4646 = vmatprep.subr.bf16.mxu1 %v5846_v31 }
 0x102   : > { %4528 = vmatpush1.bf16.msra.mxu0 %v5862_v55  ;;  %4648 = vmatpush1.bf16.msra.mxu1 %v5862_v55  ;;  %v2035_v55 = vld [vmem:[%s6921_s3 + $0x18] sm:$0xff] }
 0x103   : > { %4530 = vmatprep.subr.bf16.mxu0 %v5866_v13  ;;  %4650 = vmatprep.subr.bf16.mxu1 %v5866_v13 }
 0x106   : > { %4532 = vmatpush1.bf16.msra.mxu0 %v5876_v16  ;;  %4652 = vmatpush1.bf16.msra.mxu1 %v5876_v16  ;;  %v4673_v16 = vpack.c.bf16 %v2035_v55, %v2033_v42  ;;  %v3783_v42 = vld [vmem:[%s6921_s3 + $0x170] sm:$0xff]  ;;  %v3786_v55 = vld [vmem:[%s6921_s3 + $0x188] sm:$0xff] }
 0x107   : > { %4694 = vmatprep.subr.bf16.mxu1 %v4653_v32  ;;  %4654 = vmatprep.subr.bf16.mxu0 %v4653_v32 }
 0x109   : > { %3741 = vmatmul.mubr.msk.f32.vlgmr.msra.gmra.mrb[2].mxu0 %vm437_vm0, %v1561_v3  ;;  %3746 = vmatmul.mubr.msk.f32.vlgmr.msra.gmra.mrb[2].mxu1 %vm437_vm0, %v1929_v45 }
 0x10a   : > { %4696 = vmatpush1.bf16.msra.mxu1 %v4655_v46  ;;  %2306 = vmatprep.mubr.f32.mxu1 %v6953_v28 }
 0x10b   : > { %4698 = vmatprep.subr.bf16.mxu1 %v4657_v47  ;;  %4656 = vmatpush1.bf16.msra.mxu0 %v4655_v46 }
 0x10c   : > { %4658 = vmatprep.subr.bf16.mxu0 %v4657_v47  ;;  %2152 = vmatprep.mubr.f32.mxu0 %v6953_v28  ;;  %v2032_v47 = vld [vmem:[%s6921_s3] sm:$0xff] }
 0x10d   : > { %v4675_v10 = vpack.c.bf16 %v2034_v52, %v2032_v47  ;;  %v3798_v47 = vld [vmem:[%s6921_s3 + $0x1e8] sm:$0xff]  ;;  %v3800_v52 = vld [vmem:[%s6921_s3 + $0x1f8] sm:$0xff] }
 0x10e   : > { %4700 = vmatpush1.bf16.msra.mxu1 %v4659_v0 }
 0x10f   : > { %4702 = vmatprep.subr.bf16.mxu1 %v4661_v1  ;;  %4660 = vmatpush1.bf16.msra.mxu0 %v4659_v0 }
 0x110   : > { %4662 = vmatprep.subr.bf16.mxu0 %v4661_v1 }
 0x112   : > { %4704 = vmatpush1.bf16.msra.mxu1 %v4663_v18 }
 0x113   : > { %4664 = vmatpush1.bf16.msra.mxu0 %v4663_v18  ;;  %4706 = vmatprep.subr.bf16.mxu1 %v4665_v40  ;;  %v4677_v18 = vpack.c.bf16 %v2039_v59, %v2037_v58  ;;  %v6303_v58 = vpack.c.bf16 %v3800_v52, %v3798_v47  ;;  %v3797_v59 = vld [vmem:[%s6921_s3 + $0x1e0] sm:$0xff]  ;;  %v3847_v52 = vld [vmem:[%s6921_s3 + $0x310] sm:$0xff] }
 0x114   : > { %4666 = vmatprep.subr.bf16.mxu0 %v4665_v40  ;;  %v2043_v40 = vld [vmem:[%s6921_s3 + $0x58] sm:$0xff]  ;;  %v3845_v47 = vld [vmem:[%s6921_s3 + $0x300] sm:$0xff] }
 0x115   : > { %v4681_v50 = vpack.c.bf16 %v2043_v40, %v2041_v37  ;;  %v3809_v37 = vld [vmem:[%s6921_s3 + $0x210] sm:$0xff]  ;;  %v3811_v40 = vld [vmem:[%s6921_s3 + $0x220] sm:$0xff] }
 0x116   : > { %4708 = vmatpush1.bf16.msra.mxu1 %v4667_v60  ;;  %v6352_v17 = vpack.c.bf16 %v3811_v40, %v3809_v37 }
 0x117   : > { %4668 = vmatpush1.bf16.msra.mxu0 %v4667_v60  ;;  %4710 = vmatprep.subr.bf16.mxu1 %v4669_v34  ;;  %v2040_v60 = vld [vmem:[%s6921_s3 + $0x40] sm:$0xff] }
 0x118   : > { %4670 = vmatprep.subr.bf16.mxu0 %v4669_v34  ;;  %v4683_v34 = vpack.c.bf16 %v2042_v4, %v2040_v60  ;;  %v3816_v60 = vld [vmem:[%s6921_s3 + $0x248] sm:$0xff]  ;;  %v6350_v4 = vpack.c.bf16 %v3812_v30, %v3810_v19  ;;  %v3856_v30 = vld [vmem:[%s6921_s3 + $0x358] sm:$0xff] }
 0x119   : > { %v3854_v19 = vld [vmem:[%s6921_s3 + $0x348] sm:$0xff] }
 0x11a   : > { %4712 = vmatpush1.bf16.msra.mxu1 %v4671_v54  ;;  %v4829_v40 = vpack.c.bf16 %v3856_v30, %v3854_v19  ;;  %v3878_v19 = vld [vmem:[%s6923_s5 + $0xa8] sm:$0xff] }
 0x11b   : > { %4672 = vmatpush1.bf16.msra.mxu0 %v4671_v54  ;;  %3775 = vmatprep.subr.msk.mxu1 %vm2081_vm1, %v3768_v12  ;;  %v2049_v54 = vld [vmem:[%s6921_s3 + $0x88] sm:$0xff] }
 0x11c   : > { %3769 = vmatprep.subr.msk.mxu0 %vm2081_vm1, %v3768_v12  ;;  %v3782_v12 = vld [vmem:[%s6921_s3 + $0x168] sm:$0xff] }
 0x11e   : > { %3776 = vmatpush1.msk.msra.mxu1 %vm2081_vm1, %v3767_v7 }
 0x11f   : > { %3770 = vmatpush1.msk.msra.mxu0 %vm2081_vm1, %v3767_v7  ;;  %4714 = vmatprep.subr.bf16.mxu1 %v4673_v16 }
 0x120   : > { %4674 = vmatprep.subr.bf16.mxu0 %v4673_v16 }
 0x164   : > { %v882_v2 = vpop.f32.mrb[0].mxu0  ;;  %v1262_v23 = vpop.f32.mrb[0].mxu1 }
 0x165   : > { %v901_v24 = vadd.f32 %v894_v51, %v882_v2  ;;  %v1269_v43 = vadd.f32 %v1262_v23, %v894_v51  ;;  %v884_v48 = vpop.f32.mrb[1].mxu0  ;;  %v1264_v6 = vpop.f32.mrb[1].mxu1 }
 0x166   : > { %v902_v41 = vadd.f32 %v898_v63, %v884_v48  ;;  %v1270_v62 = vadd.f32 %v1264_v6, %v898_v63  ;;  %v6204_v6 = vld [vmem:[%s6921_s3 + $0xa8] sm:$0xf] }
 0x167   : > { %v903_v31 = vmax.f32 %v901_v24, 0.0  ;;  %v1271_v56 = vmax.f32 %v1269_v43, 0.0  ;;  %v2048_v24 = vld [vmem:[%s6921_s3 + $0x80] sm:$0xff]  ;;  %v2050_v43 = vld [vmem:[%s6921_s3 + $0x90] sm:$0xff] }
 0x168   : > { %v904_v13 = vmax.f32 %v902_v41, 0.0  ;;  %v1272_v25 = vmax.f32 %v1270_v62, 0.0  ;;  %v6198_v48 = vpack.c.bf16 %v2050_v43, %v2048_v24  ;;  %v3784_v41 = vld [vmem:[%s6921_s3 + $0x178] sm:$0xff]  ;;  %v6218_v62 = vld [vmem:[%s6921_s3 + $0xa0] sm:$0xf] }
 0x169   : > { %v2009_v61 = vmax.f32 %v903_v31, %v1271_v56  ;;  %v6220_v7 = vpack.c.bf16 %v3784_v41, %v3782_v12  ;;  %v3781_v56 = vld [vmem:[%s6921_s3 + $0x160] sm:$0xff]  ;;  %v3822_v43 = vld [vmem:[%s6921_s3 + $0x278] sm:$0xff]  ;;  %v3821_v41 = vld [vmem:[%s6921_s3 + $0x270] sm:$0xff] }
 0x16a   : > { %v2010_v3 = vmax.f32 %v904_v13, %v1272_v25  ;;  %v3788_v13 = vld [vmem:[%s6921_s3 + $0x198] sm:$0xff]  ;;  %v3819_v24 = vld [vmem:[%s6921_s3 + $0x260] sm:$0xff] }
 0x16b   : > { %2015 = vrot.lane.b32.xlu0 %v2009_v61, %s5121_s12 }
 0x16f   : > { %2017 = vrot.lane.b32.xlu0 %v2010_v3, %s5121_s12 }
 0x1dc   : > { %v1630_v8 = vpop.f32.mrb[2].mxu0  ;;  %v1998_v9 = vpop.f32.mrb[2].mxu1 }
 0x1dd   : > { %v1637_v14 = vadd.f32 %v1630_v8, %v894_v51  ;;  %v2005_v15 = vadd.f32 %v1998_v9, %v894_v51  ;;  %v2000_v20 = vpop.f32.mrb[3].mxu1  ;;  %v2016_v21 = vpop.permute.xlu0 %2015  ;;  %v2046_v51 = vld [vmem:[%s6921_s3 + $0x70] sm:$0xff]  ;;  %v6242_v8 = vpack.c.bf16 %v3788_v13, %v3786_v55  ;;  %v3785_v9 = vld [vmem:[%s6921_s3 + $0x180] sm:$0xff] }
 0x1de   : > { %v2006_v26 = vadd.f32 %v2000_v20, %v898_v63  ;;  %v1632_v27 = vpop.f32.mrb[3].mxu0  ;;  %v4687_v2 = vpack.c.bf16 %v2046_v51, %v2044_v36  ;;  %v3792_v20 = vld [vmem:[%s6921_s3 + $0x1b8] sm:$0xff]  ;;  %v3815_v36 = vld [vmem:[%s6921_s3 + $0x240] sm:$0xff]  ;;  %v3825_v55 = vld [vmem:[%s6921_s3 + $0x290] sm:$0xff] }
 0x1df   : > { %v1639_v32 = vmax.f32 %v1637_v14, 0.0  ;;  %v2007_v33 = vmax.f32 %v2005_v15, 0.0  ;;  %v1638_v38 = vadd.f32 %v1632_v27, %v898_v63  ;;  %v2051_v63 = vld [vmem:[%s6921_s3 + $0x98] sm:$0xff]  ;;  %v3787_v14 = vld [vmem:[%s6921_s3 + $0x190] sm:$0xff]  ;;  %v3790_v15 = vld [vmem:[%s6921_s3 + $0x1a8] sm:$0xff] }
 0x1e0   : > { %v2008_v39 = vmax.f32 %v2006_v26, 0.0  ;;  %v6190_v23 = vpack.c.bf16 %v2051_v63, %v2049_v54  ;;  %v6264_v26 = vpack.c.bf16 %v3792_v20, %v3790_v15  ;;  %v3789_v27 = vld [vmem:[%s6921_s3 + $0x1a0] sm:$0xff]  ;;  %v3818_v51 = vld [vmem:[%s6921_s3 + $0x258] sm:$0xff]  ;;  %v3820_v54 = vld [vmem:[%s6921_s3 + $0x268] sm:$0xff] }
 0x1e1   : > { %v1640_v44 = vmax.f32 %v1638_v38, 0.0  ;;  %v2018_v45 = vpop.permute.xlu0 %2017  ;;  %v2011_v46 = vmax.f32 %v1639_v32, %v2007_v33  ;;  %v3791_v32 = vld [vmem:[%s6921_s3 + $0x1b0] sm:$0xff]  ;;  %v3794_v33 = vld [vmem:[%s6921_s3 + $0x1c8] sm:$0xff]  ;;  %v3796_v38 = vld [vmem:[%s6921_s3 + $0x1d8] sm:$0xff] }
 0x1e2   : > { %v2020_v53 = vsel %vm2019_vm2, %v2016_v21, %v2018_v45  ;;  %v6261_v21 = vpack.c.bf16 %v3787_v14, %v3785_v9  ;;  %v3793_v45 = vld [vmem:[%s6921_s3 + $0x1c0] sm:$0xff]  ;;  %v3839_v14 = vld [vmem:[%s6921_s3 + $0x2d0] sm:$0xff]  ;;  %v3842_v20 = vld [vmem:[%s6921_s3 + $0x2e8] sm:$0xff] }
 0x1e3   : > { %v2012_v0 = vmax.f32 %v1640_v44, %v2008_v39  ;;  %v6142_v1 = vmax.f32 %v2009_v61, %v2020_v53  ;;  %2025 = vrot.lane.b32.xlu1 %v2011_v46, %s5121_s12  ;;  %v6238_v61 = vpack.c.bf16 %v3783_v42, %v3781_v56  ;;  %v6281_v39 = vpack.c.bf16 %v3791_v32, %v3789_v27  ;;  %v3827_v13 = vld [vmem:[%s6921_s3 + $0x2a0] sm:$0xff]  ;;  %v3829_v15 = vld [vmem:[%s6921_s3 + $0x2b0] sm:$0xf] }
 0x1e4   : > { %v6284_v44 = vpack.c.bf16 %v3796_v38, %v3794_v33  ;;  %v3837_v9 = vld [vmem:[%s6921_s3 + $0x2c0] sm:$0xff] }
 0x1e5   : > { %v2239_v11 = vrot.slane %v6142_v1, 1  ;;  %v4815_v27 = vpack.c.bf16 %v3839_v14, %v3837_v9  ;;  %v2664_v32 = vrot.slane %v6142_v1, 2  ;;  %v3841_v38 = vld [vmem:[%s6921_s3 + $0x2e0] sm:$0xff] }
 0x1e6   : > { %v2918_v9 = vld [vmem:[%s6922_s4] sm:$0x3] }
 0x1e7   : > { %2027 = vrot.lane.b32.xlu1 %v2012_v0, %s5121_s12  ;;  %3777 = vmatmul.mubr.msk.f32.vlgmr.msra.gmra.mrb[4].mxu1 %vm2077_vm3, %v2239_v11  ;;  %v3799_v0 = vld [vmem:[%s6921_s3 + $0x1f0] sm:$0xff]  ;;  %v2958_v14 = vld [vmem:[%s6923_s5 + $0x40] sm:$0xff] }
 0x1e8   : > { %4716 = vmatpush1.bf16.msra.mxu1 %v4675_v10  ;;  %2377 = vmatprep.mubr.f32.mxu1 %v6953_v28 }
 0x1e9   : > { %4718 = vmatprep.subr.bf16.mxu1 %v4677_v18 }
 0x1ec   : > { %4720 = vmatpush1.bf16.msra.mxu1 %v4679_v49 }
 0x1ed   : > { %4722 = vmatprep.subr.bf16.mxu1 %v4681_v50 }
 0x1f0   : > { %4724 = vmatpush1.bf16.msra.mxu1 %v4683_v34 }
 0x1f1   : > { %4726 = vmatprep.subr.bf16.mxu1 %v6175_v35 }
 0x1f4   : > { %4728 = vmatpush1.bf16.msra.mxu1 %v4687_v2 }
 0x1f5   : > { %4730 = vmatprep.subr.bf16.mxu1 %v6190_v23 }
 0x1f8   : > { %4732 = vmatpush1.bf16.msra.mxu1 %v6198_v48 }
 0x1f9   : > { %3778 = vmatprep.subr.msk.mxu1 %vm2081_vm1, %v6204_v6 }
 0x1fc   : > { %3779 = vmatpush1.msk.msra.mxu1 %vm2081_vm1, %v6218_v62 }
 0x1fd   : > { %4754 = vmatprep.subr.bf16.mxu1 %v6220_v7 }
 0x255   : > { %v2026_v31 = vpop.permute.xlu1 %2025 }
 0x259   : > { %v2028_v25 = vpop.permute.xlu1 %2027 }
 0x25a   : > { %v2029_v16 = vsel %vm2019_vm2, %v2026_v31, %v2028_v25  ;;  %v3828_v31 = vld [vmem:[%s6921_s3 + $0x2a8] sm:$0xff]  ;;  %v6438_v25 = vpack.c.bf16 %v3827_v13, %v3825_v55  ;;  %v3871_v55 = vld [vmem:[%s6923_s5 + $0x80] sm:$0xff] }
 0x25b   : > { %v6240_v3 = vmax.f32 %v2011_v46, %v2029_v16  ;;  %v3795_v46 = vld [vmem:[%s6921_s3 + $0x1d0] sm:$0xff]  ;;  %v6445_v16 = vld [vmem:[%s6921_s3 + $0x2b8] sm:$0xf]  ;;  %v3872_v13 = vld [vmem:[%s6923_s5 + $0x88] sm:$0xff] }
 0x25c   : > { %v6299_v53 = vpack.c.bf16 %v3795_v46, %v3793_v45  ;;  %v3848_v45 = vld [vmem:[%s6921_s3 + $0x318] sm:$0xff] }
 0x25d   : > { %3771 = vmatmul.mubr.msk.f32.vlgmr.msra.gmra.mrb[4].mxu0 %vm2077_vm3, %v6240_v3  ;;  %3780 = vmatmul.mubr.msk.f32.vlgmr.msra.gmra.mrb[4].mxu1 %vm2077_vm3, %v6240_v3  ;;  %v2486_v22 = vrot.slane %v6240_v3, 1 }
 0x25e   : > { %4676 = vmatpush1.bf16.msra.mxu0 %v4675_v10  ;;  %4756 = vmatpush1.bf16.msra.mxu1 %v6238_v61  ;;  %v6312_v10 = vpack.c.bf16 %v3799_v0, %v3797_v59  ;;  %v4823_v59 = vpack.c.bf16 %v3847_v52, %v3845_v47 }
 0x25f   : > { %4678 = vmatprep.subr.bf16.mxu0 %v4677_v18  ;;  %4758 = vmatprep.subr.bf16.mxu1 %v6242_v8  ;;  %v6319_v18 = vld [vmem:[%s6921_s3 + $0x208] sm:$0xf] }
 0x260   : > { %2232 = vmatprep.mubr.f32.mxu0 %v6953_v28  ;;  %2553 = vmatprep.mubr.f32.mxu1 %v6953_v28 }
 0x262   : > { %4680 = vmatpush1.bf16.msra.mxu0 %v4679_v49  ;;  %4760 = vmatpush1.bf16.msra.mxu1 %v6261_v21  ;;  %v6342_v49 = vld [vmem:[%s6921_s3 + $0x200] sm:$0xf] }
 0x263   : > { %4682 = vmatprep.subr.bf16.mxu0 %v4681_v50  ;;  %4762 = vmatprep.subr.bf16.mxu1 %v6264_v26  ;;  %v3814_v50 = vld [vmem:[%s6921_s3 + $0x238] sm:$0xff] }
 0x266   : > { %4684 = vmatpush1.bf16.msra.mxu0 %v4683_v34  ;;  %4764 = vmatpush1.bf16.msra.mxu1 %v6281_v39  ;;  %v6359_v34 = vpack.c.bf16 %v3816_v60, %v3814_v50  ;;  %v3855_v50 = vld [vmem:[%s6921_s3 + $0x350] sm:$0xff] }
 0x267   : > { %4686 = vmatprep.subr.bf16.mxu0 %v6175_v35  ;;  %4766 = vmatprep.subr.bf16.mxu1 %v6284_v44  ;;  %v3813_v35 = vld [vmem:[%s6921_s3 + $0x230] sm:$0xff] }
 0x268   : > { %v6382_v63 = vpack.c.bf16 %v3815_v36, %v3813_v35  ;;  %v3865_v35 = vld [vmem:[%s6923_s5 + $0x50] sm:$0xff]  ;;  %v5122_v36 = vmov 0.0|0.0  }
 0x26a   : > { %4688 = vmatpush1.bf16.msra.mxu0 %v4687_v2  ;;  %4768 = vmatpush1.bf16.msra.mxu1 %v6299_v53  ;;  %v6386_v2 = vpack.c.bf16 %v3820_v54, %v3818_v51  ;;  %v2952_v54 = vld [vmem:[%s6923_s5 + $0x10] sm:$0xff] }
 0x26b   : > { %4690 = vmatprep.subr.bf16.mxu0 %v6190_v23  ;;  %4770 = vmatprep.subr.bf16.mxu1 %v6303_v58  ;;  %v3817_v23 = vld [vmem:[%s6921_s3 + $0x250] sm:$0xff] }
 0x26e   : > { %4692 = vmatpush1.bf16.msra.mxu0 %v6198_v48  ;;  %4772 = vmatpush1.bf16.msra.mxu1 %v6312_v10  ;;  %v3824_v48 = vld [vmem:[%s6921_s3 + $0x288] sm:$0xff] }
 0x26f   : > { %3772 = vmatprep.subr.msk.mxu0 %vm2081_vm1, %v6204_v6  ;;  %3806 = vmatprep.subr.msk.mxu1 %vm2081_vm1, %v6319_v18  ;;  %v6404_v6 = vpack.c.bf16 %v3819_v24, %v3817_v23  ;;  %v6408_v12 = vpack.c.bf16 %v3824_v48, %v3822_v43  ;;  %v3867_v23 = vld [vmem:[%s6923_s5 + $0x60] sm:$0xff]  ;;  %v3868_v24 = vld [vmem:[%s6923_s5 + $0x68] sm:$0xff] }
 0x270   : > { %v4857_v48 = vpack.c.bf16 %v3868_v24, %v3867_v23  ;;  %v3895_v23 = vld [vmem:[%s6923_s5 + $0x128] sm:$0xff] }
 0x272   : > { %3773 = vmatpush1.msk.msra.mxu0 %vm2081_vm1, %v6218_v62  ;;  %3807 = vmatpush1.msk.msra.mxu1 %vm2081_vm1, %v6342_v49  ;;  %v3823_v62 = vld [vmem:[%s6921_s3 + $0x280] sm:$0xff] }
 0x273   : > { %3774 = vmatmul.mubr.msk.f32.vlgmr.msra.gmra.mrb[4].mxu0 %vm2077_vm3, %v6142_v1  ;;  %4734 = vmatprep.subr.bf16.mxu0 %v6220_v7  ;;  %v3826_v7 = vld [vmem:[%s6921_s3 + $0x298] sm:$0xff]  ;;  %v6424_v56 = vpack.c.bf16 %v3823_v62, %v3821_v41  ;;  %v3869_v41 = vld [vmem:[%s6923_s5 + $0x70] sm:$0xff] }
 0x274   : > { %3808 = vmatmul.mubr.msk.f32.vlgmr.msra.gmra.mrb[4].mxu1 %vm2077_vm3, %v2486_v22  ;;  %4794 = vmatprep.subr.bf16.mxu1 %v6350_v4  ;;  %v6428_v42 = vpack.c.bf16 %v3828_v31, %v3826_v7  ;;  %v3866_v1 = vld [vmem:[%s6923_s5 + $0x58] sm:$0xff] }
 0x275   : > { %4736 = vmatpush1.bf16.msra.mxu0 %v6238_v61  ;;  %4796 = vmatpush1.bf16.msra.mxu1 %v6352_v17  ;;  %v3838_v61 = vld [vmem:[%s6921_s3 + $0x2c8] sm:$0xff]  ;;  %v3870_v62 = vld [vmem:[%s6923_s5 + $0x78] sm:$0xff] }
 0x276   : > { %4738 = vmatprep.subr.bf16.mxu0 %v6242_v8  ;;  %4798 = vmatprep.subr.bf16.mxu1 %v6359_v34  ;;  %v3840_v8 = vld [vmem:[%s6921_s3 + $0x2d8] sm:$0xff]  ;;  %v4860_v31 = vpack.c.bf16 %v3870_v62, %v3869_v41 }
 0x277   : > { %2477 = vmatprep.mubr.f32.mxu0 %v6953_v28  ;;  %2731 = vmatprep.mubr.f32.mxu1 %v6953_v28  ;;  %v3897_v41 = vld [vmem:[%s6923_s5 + $0x138] sm:$0xff] }
 0x279   : > { %4740 = vmatpush1.bf16.msra.mxu0 %v6261_v21  ;;  %4800 = vmatpush1.bf16.msra.mxu1 %v6382_v63  ;;  %v3844_v21 = vld [vmem:[%s6921_s3 + $0x2f8] sm:$0xff] }
 0x27a   : > { %4742 = vmatprep.subr.bf16.mxu0 %v6264_v26  ;;  %4802 = vmatprep.subr.bf16.mxu1 %v6386_v2  ;;  %v4813_v26 = vpack.c.bf16 %v3840_v8, %v3838_v61  ;;  %v4817_v33 = vpack.c.bf16 %v3844_v21, %v3842_v20  ;;  %v3873_v21 = vld [vmem:[%s6923_s5 + $0x90] sm:$0xff] }
 0x27d   : > { %4744 = vmatpush1.bf16.msra.mxu0 %v6281_v39  ;;  %4804 = vmatpush1.bf16.msra.mxu1 %v6404_v6  ;;  %v3843_v39 = vld [vmem:[%s6921_s3 + $0x2f0] sm:$0xff] }
 0x27e   : > { %4746 = vmatprep.subr.bf16.mxu0 %v6284_v44  ;;  %4806 = vmatprep.subr.bf16.mxu1 %v6408_v12  ;;  %v3846_v44 = vld [vmem:[%s6921_s3 + $0x308] sm:$0xff]  ;;  %v4819_v46 = vpack.c.bf16 %v3843_v39, %v3841_v38 }
 0x281   : > { %4748 = vmatpush1.bf16.msra.mxu0 %v6299_v53  ;;  %4808 = vmatpush1.bf16.msra.mxu1 %v6424_v56  ;;  %v3850_v53 = vld [vmem:[%s6921_s3 + $0x328] sm:$0xff] }
 0x282   : > { %4750 = vmatprep.subr.bf16.mxu0 %v6303_v58  ;;  %4810 = vmatprep.subr.bf16.mxu1 %v6428_v42  ;;  %v3852_v58 = vld [vmem:[%s6921_s3 + $0x338] sm:$0xff] }
 0x283   : > { %v4825_v0 = vpack.c.bf16 %v3852_v58, %v3850_v53  ;;  %v3888_v58 = vld [vmem:[%s6923_s5 + $0xf0] sm:$0xff] }
 0x285   : > { %4752 = vmatpush1.bf16.msra.mxu0 %v6312_v10  ;;  %4812 = vmatpush1.bf16.msra.mxu1 %v6438_v25  ;;  %v3849_v10 = vld [vmem:[%s6921_s3 + $0x320] sm:$0xff] }
 0x286   : > { %3803 = vmatprep.subr.msk.mxu0 %vm2081_vm1, %v6319_v18  ;;  %3834 = vmatprep.subr.msk.mxu1 %vm2081_vm1, %v6445_v16  ;;  %v3851_v18 = vld [vmem:[%s6921_s3 + $0x330] sm:$0xff] }
 0x287   : > { %v4827_v37 = vpack.c.bf16 %v3851_v18, %v3849_v10  ;;  %v3877_v18 = vld [vmem:[%s6923_s5 + $0xa0] sm:$0xff] }
 0x289   : > { %3804 = vmatpush1.msk.msra.mxu0 %vm2081_vm1, %v6342_v49  ;;  %3835 = vmatpush1.msk.msra.mxu1 %vm2081_vm1, %v3829_v15  ;;  %v3853_v49 = vld [vmem:[%s6921_s3 + $0x340] sm:$0xff] }
 0x28a   : > { %3805 = vmatmul.mubr.msk.f32.vlgmr.msra.gmra.mrb[4].mxu0 %vm2077_vm3, %v2239_v11  ;;  %4774 = vmatprep.subr.bf16.mxu0 %v6350_v4  ;;  %v4821_v11 = vpack.c.bf16 %v3848_v45, %v3846_v44  ;;  %v4831_v60 = vpack.c.bf16 %v3855_v50, %v3853_v49  ;;  %v3858_v4 = vld [vmem:[%s6921_s3 + $0x368] sm:$0xf]  ;;  %v3890_v49 = vld [vmem:[%s6923_s5 + $0x100] sm:$0xff] }
 0x28b   : > { %3836 = vmatmul.mubr.msk.f32.vlgmr.msra.gmra.mrb[4].mxu1 %vm2077_vm3, %v2664_v32  ;;  %4834 = vmatprep.subr.bf16.mxu1 %v4813_v26  ;;  %v3891_v50 = vld [vmem:[%s6923_s5 + $0x108] sm:$0xff] }
 0x28c   : > { %4776 = vmatpush1.bf16.msra.mxu0 %v6352_v17  ;;  %4836 = vmatpush1.bf16.msra.mxu1 %v4815_v27  ;;  %v3857_v17 = vld [vmem:[%s6921_s3 + $0x360] sm:$0xf] }
 0x28d   : > { %4778 = vmatprep.subr.bf16.mxu0 %v6359_v34  ;;  %4838 = vmatprep.subr.bf16.mxu1 %v4817_v33  ;;  %v2842_v34 = vrot.slane %v6240_v3, 2  ;;  %v2950_v3 = vld [vmem:[%s6923_s5] sm:$0xff] }
 0x28e   : > { %2655 = vmatprep.mubr.f32.mxu0 %v6953_v28  ;;  %2909 = vmatprep.mubr.f32.mxu1 %v6953_v28 }
 0x290   : > { %4780 = vmatpush1.bf16.msra.mxu0 %v6382_v63  ;;  %4840 = vmatpush1.bf16.msra.mxu1 %v4819_v46  ;;  %v2953_v63 = vld [vmem:[%s6923_s5 + $0x18] sm:$0xff] }
 0x291   : > { %4782 = vmatprep.subr.bf16.mxu0 %v6386_v2  ;;  %4842 = vmatprep.subr.bf16.mxu1 %v4821_v11  ;;  %v4854_v2 = vpack.c.bf16 %v3866_v1, %v3865_v35  ;;  %v4872_v43 = vpack.c.bf16 %v2953_v63, %v2952_v54  ;;  %v3893_v35 = vld [vmem:[%s6923_s5 + $0x118] sm:$0xff]  ;;  %v3881_v1 = vld [vmem:[%s6923_s5 + $0xc0] sm:$0xff]  ;;  %v3882_v54 = vld [vmem:[%s6923_s5 + $0xc8] sm:$0xff] }
 0x292   : > { %v4890_v24 = vpack.c.bf16 %v3882_v54, %v3881_v1  ;;  %v3471_v1 = vld [vmem:[%s6927_s9 + $0x20] sm:$0xff]  ;;  %v3472_v54 = vld [vmem:[%s6927_s9 + $0x28] sm:$0xff] }
 0x294   : > { %4784 = vmatpush1.bf16.msra.mxu0 %v6404_v6  ;;  %4844 = vmatpush1.bf16.msra.mxu1 %v4823_v59  ;;  %v2954_v6 = vld [vmem:[%s6923_s5 + $0x20] sm:$0xff] }
 0x295   : > { %4786 = vmatprep.subr.bf16.mxu0 %v6408_v12  ;;  %4846 = vmatprep.subr.bf16.mxu1 %v4825_v0  ;;  %v2955_v12 = vld [vmem:[%s6923_s5 + $0x28] sm:$0xff] }
 0x296   : > { %v4875_v7 = vpack.c.bf16 %v2955_v12, %v2954_v6  ;;  %v3896_v12 = vld [vmem:[%s6923_s5 + $0x130] sm:$0xff] }
 0x298   : > { %4788 = vmatpush1.bf16.msra.mxu0 %v6424_v56  ;;  %4848 = vmatpush1.bf16.msra.mxu1 %v4827_v37  ;;  %v2956_v56 = vld [vmem:[%s6923_s5 + $0x30] sm:$0xff] }
 0x299   : > { %4790 = vmatprep.subr.bf16.mxu0 %v6428_v42  ;;  %4850 = vmatprep.subr.bf16.mxu1 %v4829_v40  ;;  %v2957_v42 = vld [vmem:[%s6923_s5 + $0x38] sm:$0xff] }
 0x29c   : > { %4792 = vmatpush1.bf16.msra.mxu0 %v6438_v25  ;;  %4852 = vmatpush1.bf16.msra.mxu1 %v4831_v60  ;;  %v4878_v25 = vpack.c.bf16 %v2957_v42, %v2956_v56  ;;  %v4911_v56 = vpack.c.bf16 %v3897_v41, %v3896_v12 }
 0x29d   : > { %3831 = vmatprep.subr.msk.mxu0 %vm2081_vm1, %v6445_v16  ;;  %3862 = vmatprep.subr.msk.mxu1 %vm2081_vm1, %v3858_v4  ;;  %v4863_v16 = vpack.c.bf16 %v3872_v13, %v3871_v55  ;;  %v3899_v55 = vld [vmem:[%s6923_s5 + $0x140] sm:$0xff]  ;;  %v3900_v13 = vld [vmem:[%s6923_s5 + $0x148] sm:$0xff] }
 0x2a0   : > { %3832 = vmatpush1.msk.msra.mxu0 %vm2081_vm1, %v3829_v15  ;;  %3863 = vmatpush1.msk.msra.mxu1 %vm2081_vm1, %v3857_v17  ;;  %v2959_v15 = vld [vmem:[%s6923_s5 + $0x48] sm:$0xff] }
 0x2a1   : > { %3833 = vmatmul.mubr.msk.f32.vlgmr.msra.gmra.mrb[4].mxu0 %vm2077_vm3, %v2486_v22  ;;  %4814 = vmatprep.subr.bf16.mxu0 %v4813_v26  ;;  %v2951_v22 = vld [vmem:[%s6923_s5 + $0x8] sm:$0xff]  ;;  %v4881_v20 = vpack.c.bf16 %v2959_v15, %v2958_v14  ;;  %v3874_v26 = vld [vmem:[%s6923_s5 + $0x98] sm:$0xff]  ;;  %v3903_v15 = vld [vmem:[%s6923_s5 + $0x160] sm:$0xff] }
 0x2a2   : > { %3864 = vmatmul.mubr.msk.f32.vlgmr.msra.gmra.mrb[4].mxu1 %vm2077_vm3, %v2842_v34  ;;  %4816 = vmatpush1.bf16.msra.mxu0 %v4815_v27  ;;  %v4869_v51 = vpack.c.bf16 %v2951_v22, %v2950_v3  ;;  %v2923_v27 = vrot.slane %v2918_v9, %v893_v57  ;;  %v3880_v34 = vld [vmem:[%s6923_s5 + $0xb8] sm:$0xff]  ;;  %v4902_v3 = vpack.c.bf16 %v3891_v50, %v3890_v49  ;;  %v3892_v22 = vld [vmem:[%s6923_s5 + $0x110] sm:$0xff]  ;;  %v3388_v49 = vld [vmem:[%s6925_s7 + $0x60] sm:$0xff] }
 0x2a3   : > { %4818 = vmatprep.subr.bf16.mxu0 %v4817_v33  ;;  %2833 = vmatprep.mubr.f32.mxu0 %v6953_v28  ;;  %v2927_v33 = vrot.slane %v2918_v9, %v897_v5  ;;  %v4905_v63 = vpack.c.bf16 %v3893_v35, %v3892_v22  ;;  %v3902_v9 = vld [vmem:[%s6923_s5 + $0x158] sm:$0xff]  ;;  %v3389_v50 = vld [vmem:[%s6925_s7 + $0x68] sm:$0xff] }
 0x2a4   : > { %4868 = vmatprep.subr.bf16.mxu1 %v5122_v36  ;;  %4043 = vmatprep.mubr.msk.f32.mxu1 %vm5123_vm4, %v6953_v28  ;;  %v3470_v35 = vld [vmem:[%s6927_s9 + $0x18] sm:$0xff] }
 0x2a5   : > { %4870 = vmatpush3.bf16.msra.mxu1 %v4869_v51 }
 0x2a6   : > { %4820 = vmatpush1.bf16.msra.mxu0 %v4819_v46  ;;  %4871 = vmatprep.subr.bf16.mxu1 %v5122_v36 }
 0x2a7   : > { %4822 = vmatprep.subr.bf16.mxu0 %v4821_v11 }
 0x2a9   : > { %4873 = vmatpush3.bf16.msra.mxu1 %v4872_v43  ;;  %v3883_v43 = vld [vmem:[%s6923_s5 + $0xd0] sm:$0xff] }
 0x2aa   : > { %4824 = vmatpush1.bf16.msra.mxu0 %v4823_v59  ;;  %4874 = vmatprep.subr.bf16.mxu1 %v5122_v36  ;;  %v3889_v59 = vld [vmem:[%s6923_s5 + $0xf8] sm:$0xff] }
 0x2ab   : > { %4826 = vmatprep.subr.bf16.mxu0 %v4825_v0 }
 0x2ad   : > { %4876 = vmatpush3.bf16.msra.mxu1 %v4875_v7  ;;  %v3885_v7 = vld [vmem:[%s6923_s5 + $0xe0] sm:$0xff] }
 0x2ae   : > { %4828 = vmatpush1.bf16.msra.mxu0 %v4827_v37  ;;  %4877 = vmatprep.subr.bf16.mxu1 %v5122_v36  ;;  %v4899_v37 = vpack.c.bf16 %v3889_v59, %v3888_v58  ;;  %v3382_v58 = vld [vmem:[%s6925_s7 + $0x30] sm:$0xff]  ;;  %v3383_v59 = vld [vmem:[%s6925_s7 + $0x38] sm:$0xff] }
 0x2af   : > { %4830 = vmatprep.subr.bf16.mxu0 %v4829_v40 }
 0x2b1   : > { %4879 = vmatpush3.bf16.msra.mxu1 %v4878_v25 }
 0x2b2   : > { %4832 = vmatpush1.bf16.msra.mxu0 %v4831_v60  ;;  %4880 = vmatprep.subr.bf16.mxu1 %v5122_v36  ;;  %v4884_v60 = vpack.c.bf16 %v3878_v19, %v3877_v18  ;;  %v3385_v18 = vld [vmem:[%s6925_s7 + $0x48] sm:$0xff] }
 0x2b3   : > { %3859 = vmatprep.subr.msk.mxu0 %vm2081_vm1, %v3858_v4 }
 0x2b5   : > { %4882 = vmatpush3.bf16.msra.mxu1 %v4881_v20  ;;  %v3904_v20 = vld [vmem:[%s6923_s5 + $0x168] sm:$0xff] }
 0x2b6   : > { %3860 = vmatpush1.msk.msra.mxu0 %vm2081_vm1, %v3857_v17  ;;  %4898 = vmatprep.subr.bf16.mxu1 %v5122_v36  ;;  %v3879_v17 = vld [vmem:[%s6923_s5 + $0xb0] sm:$0xff] }
 0x2b7   : > { %3861 = vmatmul.mubr.msk.f32.vlgmr.msra.gmra.mrb[4].mxu0 %vm2077_vm3, %v2664_v32  ;;  %4853 = vmatprep.subr.bf16.mxu0 %v5122_v36  ;;  %v4866_v32 = vpack.c.bf16 %v3874_v26, %v3873_v21  ;;  %v4887_v51 = vpack.c.bf16 %v3880_v34, %v3879_v17  ;;  %v4920_v21 = vpack.c.bf16 %v3904_v20, %v3903_v15  ;;  %v3905_v26 = vld [vmem:[%s6923_s5 + $0x170] sm:$0xff]  ;;  %v3467_v17 = vld [vmem:[%s6927_s9] sm:$0xff]  ;;  %v3468_v34 = vld [vmem:[%s6927_s9 + $0x8] sm:$0xff] }
 0x2b8   : > { %4855 = vmatpush3.bf16.msra.mxu0 %v4854_v2  ;;  %4020 = vmatprep.mubr.msk.f32.mxu0 %vm5123_vm4, %v6953_v28  ;;  %v3894_v2 = vld [vmem:[%s6923_s5 + $0x120] sm:$0xff]  ;;  %v4950_v22 = vpack.c.bf16 %v3468_v34, %v3467_v17  ;;  %v3477_v20 = vld [vmem:[%s6927_s9 + $0x50] sm:$0xf] }
 0x2b9   : > { %4856 = vmatprep.subr.bf16.mxu0 %v5122_v36  ;;  %v4908_v6 = vpack.c.bf16 %v3895_v23, %v3894_v2  ;;  %v3473_v2 = vld [vmem:[%s6927_s9 + $0x30] sm:$0xff]  ;;  %v3474_v23 = vld [vmem:[%s6927_s9 + $0x38] sm:$0xff] }
 0x2bc   : > { %4858 = vmatpush3.bf16.msra.mxu0 %v4857_v48  ;;  %v3884_v48 = vld [vmem:[%s6923_s5 + $0xd8] sm:$0xff] }
 0x2bd   : > { %4859 = vmatprep.subr.bf16.mxu0 %v5122_v36  ;;  %v4893_v62 = vpack.c.bf16 %v3884_v48, %v3883_v43 }
 0x2c0   : > { %4861 = vmatpush3.bf16.msra.mxu0 %v4860_v31  ;;  %v3886_v31 = vld [vmem:[%s6923_s5 + $0xe8] sm:$0xff] }
 0x2c1   : > { %4862 = vmatprep.subr.bf16.mxu0 %v5122_v36  ;;  %v4896_v42 = vpack.c.bf16 %v3886_v31, %v3885_v7 }
 0x2c4   : > { %4864 = vmatpush3.bf16.msra.mxu0 %v4863_v16  ;;  %v4914_v16 = vpack.c.bf16 %v3900_v13, %v3899_v55 }
 0x2c5   : > { %4865 = vmatprep.subr.bf16.mxu0 %v5122_v36 }
 0x2c8   : > { %4867 = vmatpush3.bf16.msra.mxu0 %v4866_v32 }
 0x2c9   : > { %4883 = vmatprep.subr.bf16.mxu0 %v5122_v36 }
 0x375   : > { %v2911_v61 = vpop.f32.mrb[4].mxu1 }
 0x376   : > { %v2913_v8 = vpop.f32.mrb[5].mxu1  ;;  %v2934_v38 = vadd.f32 %v2923_v27, %v2911_v61 }
 0x377   : > { %v2935_v39 = vadd.f32 %v2927_v33, %v2913_v8  ;;  %v3901_v8 = vld [vmem:[%s6923_s5 + $0x150] sm:$0xff] }
 0x378   : > { %v2936_v29 = vmax.f32 %v2934_v38, 0.0  ;;  %v4917_v14 = vpack.c.bf16 %v3902_v9, %v3901_v8  ;;  %v3908_v38 = vld [vmem:[%s6923_s5 + $0x188] sm:$0xff]  ;;  %v3475_v9 = vld [vmem:[%s6927_s9 + $0x40] sm:$0xff] }
 0x379   : > { %v2937_v11 = vmax.f32 %v2935_v39, 0.0 }
 0x38a   : > { %v2835_v57 = vpop.f32.mrb[4].mxu0 }
 0x38b   : > { %v2930_v44 = vadd.f32 %v2923_v27, %v2835_v57  ;;  %v2837_v45 = vpop.f32.mrb[5].mxu0  ;;  %v3906_v27 = vld [vmem:[%s6923_s5 + $0x178] sm:$0xff] }
 0x38c   : > { %v2931_v46 = vadd.f32 %v2927_v33, %v2837_v45  ;;  %v4923_v32 = vpack.c.bf16 %v3906_v27, %v3905_v26  ;;  %v3907_v33 = vld [vmem:[%s6923_s5 + $0x180] sm:$0xff]  ;;  %v3377_v45 = vld [vmem:[%s6925_s7 + $0x8] sm:$0xff] }
 0x38d   : > { %v2932_v5 = vmax.f32 %v2930_v44, 0.0  ;;  %v4926_v39 = vpack.c.bf16 %v3908_v38, %v3907_v33  ;;  %v3376_v44 = vld [vmem:[%s6925_s7] sm:$0xff] }
 0x38e   : > { %v2933_v47 = vmax.f32 %v2931_v46, 0.0  ;;  %v4929_v46 = vpack.c.bf16 %v3377_v45, %v3376_v44 }
 0x38f   : > { %v2938_v52 = vmax.f32 %v2932_v5, %v2936_v29  ;;  %v3378_v29 = vld [vmem:[%s6925_s7 + $0x10] sm:$0xff]  ;;  %v3379_v5 = vld [vmem:[%s6925_s7 + $0x18] sm:$0xff] }
 0x390   : > { %v2939_v53 = vmax.f32 %v2933_v47, %v2937_v11  ;;  %v4932_v11 = vpack.c.bf16 %v3379_v5, %v3378_v29  ;;  %v3380_v47 = vld [vmem:[%s6925_s7 + $0x20] sm:$0xff] }
 0x391   : > { %2942 = vrot.lane.b32.xlu0 %v2938_v52, %s5124_s30 }
 0x392   : > { %2944 = vrot.lane.b32.xlu1 %v2939_v53, %s5124_s30  ;;  %s3913_s30 = sshll.u32 %s5207_s21, 4  ;;  %s5125_s21 = smov [#allocation2]  }
 0x393   : > { %s6876_s15 = scalar_lea.hbm %s6929_s11, %s3913_s30  ;;  %s5060_s25 = sshll.u32 %s5125_s21, 4  ;;  %s5061_s25 = int_to_ptr.vmem [resolvable:$false] %s5060_s25 }
 0x394   : > { %s5062_s29 = scalar_lea.vmem %s5061_s25, 32  ;;  %p5063_p0 = scmp.lt.s32.totalorder %s6878_s19, %s5061_s25 }
 0x395   : > { %p5064_p1 = scmp.lt.s32.totalorder %s5062_s29, %s5056_s24 }
 0x397   : > { %p5065_p2 = por %p5064_p1, %p5063_p0 }
 0x399   : > { %p5066_p3 = pnand %p5065_p2, %p5059_p13 }
 0x403   : > { %v2943_v0 = vpop.permute.xlu0 %2942 }
 0x404   : > { %v2945_v10 = vpop.permute.xlu1 %2944 }
 0x405   : > { %v2947_v30 = vsel %vm2946_vm5, %v2943_v0, %v2945_v10  ;;  %v4938_v0 = vpack.c.bf16 %v3383_v59, %v3382_v58  ;;  %v3384_v10 = vld [vmem:[%s6925_s7 + $0x40] sm:$0xff] }
 0x406   : > { %v6655_v40 = vmax.f32 %v2938_v52, %v2947_v30  ;;  %v3381_v52 = vld [vmem:[%s6925_s7 + $0x28] sm:$0xff]  ;;  %v4941_v19 = vpack.c.bf16 %v3385_v18, %v3384_v10  ;;  %v3386_v30 = vld [vmem:[%s6925_s7 + $0x50] sm:$0xff] }
 0x407   : > { %v4935_v53 = vpack.c.bf16 %v3381_v52, %v3380_v47 }
 0x408   : > { %4044 = vmatmul.mubr.msk.f32.vlgmr.msra.gmra.mrb[6].mxu1 %vm2973_vm6, %v6655_v40  ;;  %v2972_v4 = vrot.slane %v6655_v40, 1  ;;  %v3214_v25 = vrot.slane %v6655_v40, 3  ;;  %v3129_v61 = vrot.slane %v6655_v40, 2  ;;  %v3299_v57 = vrot.slane %v6655_v40, 4 }
 0x409   : > { %4900 = vmatpush3.bf16.msra.mxu1 %v4899_v37  ;;  %4089 = vmatprep.mubr.msk.f32.mxu1 %vm5123_vm4, %v6953_v28  ;;  %v3387_v37 = vld [vmem:[%s6925_s7 + $0x58] sm:$0xff] }
 0x40a   : > { %4021 = vmatmul.mubr.msk.f32.vlgmr.msra.gmra.mrb[6].mxu0 %vm2973_vm6, %v2972_v4  ;;  %4901 = vmatprep.subr.bf16.mxu1 %v5122_v36  ;;  %v4944_v40 = vpack.c.bf16 %v3387_v37, %v3386_v30  ;;  %v3390_v4 = vld [vmem:[%s6925_s7 + $0x70] sm:$0xff] }
 0x40b   : > { %4885 = vmatpush3.bf16.msra.mxu0 %v4884_v60  ;;  %4066 = vmatprep.mubr.msk.f32.mxu0 %vm5123_vm4, %v6953_v28  ;;  %v4947_v60 = vpack.c.bf16 %v3389_v50, %v3388_v49 }
 0x40c   : > { %4886 = vmatprep.subr.bf16.mxu0 %v5122_v36 }
 0x40d   : > { %4903 = vmatpush3.bf16.msra.mxu1 %v4902_v3  ;;  %v3469_v3 = vld [vmem:[%s6927_s9 + $0x10] sm:$0xff] }
 0x40e   : > { %4904 = vmatprep.subr.bf16.mxu1 %v5122_v36 }
 0x40f   : > { %4888 = vmatpush3.bf16.msra.mxu0 %v4887_v51  ;;  %v4953_v51 = vpack.c.bf16 %v3470_v35, %v3469_v3 }
 0x410   : > { %4889 = vmatprep.subr.bf16.mxu0 %v5122_v36 }
 0x411   : > { %4906 = vmatpush3.bf16.msra.mxu1 %v4905_v63  ;;  %v4956_v63 = vpack.c.bf16 %v3472_v54, %v3471_v1 }
 0x412   : > { %4907 = vmatprep.subr.bf16.mxu1 %v5122_v36 }
 0x413   : > { %4891 = vmatpush3.bf16.msra.mxu0 %v4890_v24  ;;  %v4959_v24 = vpack.c.bf16 %v3474_v23, %v3473_v2 }
 0x414   : > { %4892 = vmatprep.subr.bf16.mxu0 %v5122_v36 }
 0x415   : > { %4909 = vmatpush3.bf16.msra.mxu1 %v4908_v6 }
 0x416   : > { %4910 = vmatprep.subr.bf16.mxu1 %v5122_v36 }
 0x417   : > { %4894 = vmatpush3.bf16.msra.mxu0 %v4893_v62 }
 0x418   : > { %4895 = vmatprep.subr.bf16.mxu0 %v5122_v36 }
 0x419   : > { %4912 = vmatpush3.bf16.msra.mxu1 %v4911_v56 }
 0x41a   : > { %4928 = vmatprep.subr.bf16.mxu1 %v5122_v36 }
 0x41b   : > { %4897 = vmatpush3.bf16.msra.mxu0 %v4896_v42 }
 0x41c   : > { %4090 = vmatmul.mubr.msk.f32.vlgmr.msra.gmra.mrb[8].mxu1 %vm2973_vm6, %v3214_v25  ;;  %4913 = vmatprep.subr.bf16.mxu0 %v5122_v36  ;;  %v3373_v25 = vld [vmem:[%s6924_s6] sm:$0x1] }
 0x41d   : > { %4145 = vmatprep.mubr.msk.f32.mxu1 %vm5123_vm4, %v6953_v28  ;;  %4930 = vmatpush3.bf16.msra.mxu1 %v4929_v46 }
 0x41e   : > { %4067 = vmatmul.mubr.msk.f32.vlgmr.msra.gmra.mrb[8].mxu0 %vm2973_vm6, %v3129_v61  ;;  %4931 = vmatprep.subr.bf16.mxu1 %v5122_v36 }
 0x41f   : > { %4915 = vmatpush3.bf16.msra.mxu0 %v4914_v16  ;;  %4112 = vmatprep.mubr.msk.f32.mxu0 %vm5123_vm4, %v6953_v28 }
 0x420   : > { %4916 = vmatprep.subr.bf16.mxu0 %v5122_v36 }
 0x421   : > { %4933 = vmatpush3.bf16.msra.mxu1 %v4932_v11 }
 0x422   : > { %4934 = vmatprep.subr.bf16.mxu1 %v5122_v36 }
 0x423   : > { %4918 = vmatpush3.bf16.msra.mxu0 %v4917_v14  ;;  %v3476_v14 = vld [vmem:[%s6927_s9 + $0x48] sm:$0xff] }
 0x424   : > { %4919 = vmatprep.subr.bf16.mxu0 %v5122_v36  ;;  %v4962_v15 = vpack.c.bf16 %v3476_v14, %v3475_v9 }
 0x425   : > { %4936 = vmatpush3.bf16.msra.mxu1 %v4935_v53 }
 0x426   : > { %4937 = vmatprep.subr.bf16.mxu1 %v5122_v36 }
 0x427   : > { %4921 = vmatpush3.bf16.msra.mxu0 %v4920_v21  ;;  %v3391_v21 = vld [vmem:[%s6926_s8] sm:$0x1] }
 0x428   : > { %4922 = vmatprep.subr.bf16.mxu0 %v5122_v36 }
 0x429   : > { %4939 = vmatpush3.bf16.msra.mxu1 %v4938_v0 }
 0x42a   : > { %4940 = vmatprep.subr.bf16.mxu1 %v5122_v36 }
 0x42b   : > { %4924 = vmatpush3.bf16.msra.mxu0 %v4923_v32 }
 0x42c   : > { %4925 = vmatprep.subr.bf16.mxu0 %v5122_v36 }
 0x42d   : > { %4942 = vmatpush3.bf16.msra.mxu1 %v4941_v19 }
 0x42e   : > { %4943 = vmatprep.subr.bf16.mxu1 %v5122_v36 }
 0x42f   : > { %4927 = vmatpush3.bf16.msra.mxu0 %v4926_v39 }
 0x430   : > { %4949 = vmatprep.subr.bf16.mxu0 %v5122_v36 }
 0x431   : > { %4945 = vmatpush3.bf16.msra.mxu1 %v4944_v40 }
 0x432   : > { %4113 = vmatmul.mubr.msk.f32.vlgmr.msra.gmra.mrb[10].mxu0 %vm2973_vm6, %v3299_v57  ;;  %4946 = vmatprep.subr.bf16.mxu1 %v5122_v36 }
 0x433   : > { %4170 = vmatprep.mubr.msk.f32.mxu0 %vm5123_vm4, %v6953_v28  ;;  %4951 = vmatpush3.bf16.msra.mxu0 %v4950_v22 }
 0x434   : > { %4952 = vmatprep.subr.bf16.mxu0 %v5122_v36 }
 0x435   : > { %4948 = vmatpush3.bf16.msra.mxu1 %v4947_v60 }
 0x436   : > { %4143 = vmatprep.subr.mxu1 %v6953_v28 }
 0x437   : > { %4954 = vmatpush3.bf16.msra.mxu0 %v4953_v51 }
 0x438   : > { %4955 = vmatprep.subr.bf16.mxu0 %v5122_v36 }
 0x439   : > { %4144 = vmatpush3.msra.mxu1 %v3390_v4 }
 0x43b   : > { %4957 = vmatpush3.bf16.msra.mxu0 %v4956_v63 }
 0x43c   : > { %4958 = vmatprep.subr.bf16.mxu0 %v5122_v36 }
 0x43f   : > { %4960 = vmatpush3.bf16.msra.mxu0 %v4959_v24 }
 0x440   : > { %4961 = vmatprep.subr.bf16.mxu0 %v5122_v36 }
 0x443   : > { %4963 = vmatpush3.bf16.msra.mxu0 %v4962_v15 }
 0x444   : > { %4168 = vmatprep.subr.mxu0 %v6953_v28  ;;  %v3478_v28 = vld [vmem:[%s6928_s10] sm:$0x1] }
 0x447   : > { %4169 = vmatpush3.msk.msra.mxu0 %vm2081_vm1, %v3477_v20 }
 0x4db   : > { %v3114_v43 = vpop.f32.mrb[6].mxu1 }
 0x4dc   : > { %v4045_v48 = vpop.f32.mrb[7].mxu1 }
 0x4dd   : > { %v3042_v6 = vpop.f32.mrb[6].mxu0 }
 0x4de   : > { %v3115_v12 = vadd.f32 %v3114_v43, %v3042_v6  ;;  %v4022_v41 = vpop.f32.mrb[7].mxu0 }
 0x4ef   : > { %v3283_v62 = vpop.f32.mrb[8].mxu1 }
 0x4f0   : > { %v4091_v7 = vpop.f32.mrb[9].mxu1 }
 0x4f1   : > { %v3198_v31 = vpop.f32.mrb[8].mxu0 }
 0x4f2   : > { %v3202_v56 = vadd.f32 %v3198_v31, %v3115_v12  ;;  %v4068_v42 = vpop.f32.mrb[9].mxu0 }
 0x4f4   : > { %v3287_v55 = vadd.f32 %v3283_v62, %v3202_v56 }
 0x505   : > { %v3368_v13 = vpop.f32.mrb[10].mxu0 }
 0x506   : > { %v3372_v16 = vadd.f32 %v3368_v13, %v3287_v55  ;;  %v4114_v61 = vpop.f32.mrb[11].mxu0 }
 0x508   : > { %v3374_v8 = vadd.f32 %v3373_v25, %v3372_v16 }
 0x50a   : > { %v3375_v36 = vmax.f32 %v3374_v8, 0.0 }
 0x50c   : > { %4146 = vmatmul.mubr.msk.f32.vlgmr.msra.gmra.mrb[10].mxu1 %vm3392_vm7, %v3375_v36 }
 0x5df   : > { %v3462_v26 = vpop.f32.mrb[10].mxu1 }
 0x5e0   : > { %v3463_v27 = vadd.f32 %v3462_v26, %v3391_v21  ;;  %v4147_v32 = vpop.f32.mrb[11].mxu1 }
 0x5e2   : > { %v3466_v33 = vmax.f32 %v3463_v27, 0.0 }
 0x5e4   : > { %4171 = vmatmul.mubr.msk.f32.vlgmr.msra.gmra.mrb[12].mxu0 %vm2077_vm3, %v3466_v33 }
 0x6b7   : > { %v3551_v38 = vpop.f32.mrb[12].mxu0 }
 0x6b8   : > { %v3552_v39 = vadd.f32 %v3551_v38, %v3478_v28  ;;  %v4172_v57 = vpop.f32.mrb[13].mxu0 }
 0x6ba   : > { %3556 = vst.msk [vmem:[%s378_s13] sm:$0x1] %vm3555_vm8, %v3552_v39 }
 0x6bb   : > { %5069 = shalt.err (!%p5066_p3)
}
 0x6bc   : > { %s5070_s14 = scalar_lea.hbm %s6876_s15, 16  ;;  %s5074_s13 = scalar_lea.hbm %s6929_s11, 32 }
 0x6bd   : > { %p5071_p4 = scmp.ne.s32.totalorder %s6876_s15, %s5070_s14  ;;  %p5075_p9 = scmp.lt.u32.totalorder %s6876_s15, %s6929_s11 }
 0x6be   : > { %p5076_p10 = scmp.lt.u32.totalorder %s5074_s13, %s5070_s14  ;;  %p5078_p12 = scmp.lt.u32.totalorder %s5070_s14, %s6876_s15 }
 0x6bf   : > { %p5072_p7 = pnand %p5071_p4, %p5224_p5 }
 0x6c0   : > { %p5077_p11 = por %p5076_p10, %p5075_p9 }
 0x6c1   : > { %p5073_p8 = pneg %p5072_p7 }
 0x6c2   : > { %p5079_p13 = por %p5078_p12, %p5077_p11 }
 0x6c4   : > { %p5080_p0 = pnand %p5079_p13, %p5073_p8 }
 0x6c6   : > { %5083 = shalt.err (!%p5080_p0)
}
 0x6c7   : > { %5012 = dma.vmem_to_hbm [thread:$0]  (%p5224_p5), %s6878_s19, 16, %s6876_s15, %s3558_s16  }
 0x6c8 PF: > { %p5018_p1 = scmp.ge.s32.totalorder %s5118_s20, 2  ;;  %s3582_s24 = sand.u32 1, %s5106_s17  }
 0x6c9   : > { %s3583_s21 = scalar_lea.sflag [#allocation3], %s3582_s24 }
 0x6ca   : > { %p5015_p2 = pnand %p5018_p1, %p5228_p6 }
 0x6cc   : > { %5101 = dma.done.wait (!%p5015_p2), %s3583_s21, 16  }
 0x6cd   : > { %5103 = vsyncadd (!%p5015_p2), %s3583_s21, 4294967280  ;;  %s6962_s25 = sld [smem:[#allocation5_spill]]  ;;  %s6963_s19 = sld [smem:[#allocation6_spill]] }
 0x6ce   : > { %p21_p3 = scmp.ge.s32.totalorder %s5211_s23, 4   ;;  %s6964_s17 = smov %s5110_s18 }
 0x6cf   : > { %s6966_s20 = smov %s5211_s23 }
 0x6d0   :  { %23 = sbr.rel (!%p21_p3) target bundleno = 3 (0x3), region = 111 }
 0x6d3   : > { %s6965_s18 = smov %s6962_s25 }
 0x6d7   :  { %3587 = vsyncpa [#allocation3], 1 }
 0x6d8   :  { %3589 = vsyncpa [#allocation3 + $0x1], 1 }

</bundles_post_ra>
